<compile_context>
chip_gen: v5e
topology: v5e:2x2
jax: 0.10.0
libtpu: 0.0.40
codegen_flags: <defaults>
</compile_context>

<pallas_src>
import jax
import jax.numpy as jnp
from jax.experimental import pallas as pl
from jax.experimental.pallas import tpu as pltpu

STATE_SIZE = 100            # forced by nn.BatchNorm1d(100) in the module
ACTION_SIZE = 4
ACTOR_FC = [256, 128, 64]
CRITIC_FC = [256, 128, 64]
BN_EPS = 1e-5
RRELU_SLOPE = (1.0 / 8.0 + 1.0 / 3.0) / 2.0   # eval-mode RReLU negative slope

HIDDEN_PAD = 128            # 64-wide hidden layers zero-padded to a full lane tile
HEAD_PAD = 128              # packed output width: action lanes 0..3, value lane 4
VALUE_LANE = ACTION_SIZE    # lane index of the value inside the packed output
MAX_BATCH_TILE = 512        # rows per grid step (few-MiB VMEM footprint)


def _rrelu(x):
    return jnp.where(x >= 0, x, RRELU_SLOPE * x)


def _round_up(x, m):
    return ((x + m - 1) // m) * m


# -----------------------------------------------------------------------------
# Kernel
# -----------------------------------------------------------------------------
def actor_critic_kernel(
    state_ref,                                     # [TB, 100] f32 (BN folded away)
    wf_ref,                                        # [100, 512] bf16 (actor fc0 | critic first)
    wa1_ref, wa2_ref, wa3_ref,                     # [256,128], [128,128], [128,128] bf16
    wc0a_ref, wc0b_ref,                            # [256,256], [128,256] bf16
    wc1_ref, wc2_ref, wc3_ref,                     # [256,128], [128,128], [128,128] bf16
    bias_ref,                                      # [8, 512] f32 bias slab
    out_ref,                                       # [TB, 128] f32 packed output
):
    bf = jnp.bfloat16
    x = state_ref[...].astype(bf)

    # Fused first layers: [TB,100] @ [100,512] -> cols 0..255 actor fc0,
    # cols 256..511 critic first layer (NO activation -- faithful to the bug).
    first = jnp.dot(x, wf_ref[...], preferred_element_type=jnp.float32)
    first = first + bias_ref[0:1, :]
    h = _rrelu(first[:, :ACTOR_FC[0]])
    c = first[:, ACTOR_FC[0]:]

    # --- Actor: 256 -> 128 -> 128(pad of 64) -> 128-lane head, tanh at the end
    h = _rrelu(jnp.dot(h.astype(bf), wa1_ref[...],
                       preferred_element_type=jnp.float32) + bias_ref[1:2, :HIDDEN_PAD])
    h = _rrelu(jnp.dot(h.astype(bf), wa2_ref[...],
                       preferred_element_type=jnp.float32) + bias_ref[2:3, :HIDDEN_PAD])
    action = jnp.tanh(jnp.dot(h.astype(bf), wa3_ref[...],
                              preferred_element_type=jnp.float32) + bias_ref[3:4, :HEAD_PAD])
    # padded lanes 4..127 are exactly tanh(0) = 0

    # --- Critic: cat(first_layer_out, action) -> 256 -> 128 -> 128(pad) -> head
    g = jnp.dot(c.astype(bf), wc0a_ref[...], preferred_element_type=jnp.float32)
    g = g + jnp.dot(action.astype(bf), wc0b_ref[...], preferred_element_type=jnp.float32)
    g = _rrelu(g + bias_ref[4:5, :CRITIC_FC[0]])
    g = _rrelu(jnp.dot(g.astype(bf), wc1_ref[...],
                       preferred_element_type=jnp.float32) + bias_ref[5:6, :HIDDEN_PAD])
    g = _rrelu(jnp.dot(g.astype(bf), wc2_ref[...],
                       preferred_element_type=jnp.float32) + bias_ref[6:7, :HIDDEN_PAD])
    value = jnp.dot(g.astype(bf), wc3_ref[...],
                    preferred_element_type=jnp.float32) + bias_ref[7:8, :HEAD_PAD]
    # value is non-zero only in lane VALUE_LANE (=4); all other lanes are 0.

    # Single lane-dense writeback: [action(0..3) | value(4) | zeros(5..127)]
    out_ref[...] = action + value


# -----------------------------------------------------------------------------
# Wrapper
# -----------------------------------------------------------------------------
def actor_critic_forward(state, packed):
    """state: [B, STATE_SIZE] f32 -> (action [B, ACTION_SIZE], value [B, 1])."""
    weights, bias_slab = packed
    B = state.shape[0]

    # Big tiles amortize per-step overhead; keep >=2 grid steps when B allows
    # so v7x's 2 TensorCores are both used; rows stay a multiple of 8.
    TB = min(MAX_BATCH_TILE, max(8, _round_up(pl.cdiv(B, 2), 8)))
    n_tiles = pl.cdiv(B, TB)   # ragged last tile handled by Pallas masking

    weight_specs = [pl.BlockSpec(w.shape, lambda i: (0, 0)) for w in weights]

    out = pl.pallas_call(
        actor_critic_kernel,
        out_shape=jax.ShapeDtypeStruct((B, HEAD_PAD), jnp.float32),
        grid_spec=pltpu.PrefetchScalarGridSpec(
            num_scalar_prefetch=0,
            grid=(n_tiles,),
            in_specs=[pl.BlockSpec((TB, STATE_SIZE), lambda i: (i, 0))]
                     + weight_specs
                     + [pl.BlockSpec(bias_slab.shape, lambda i: (0, 0))],
            out_specs=pl.BlockSpec((TB, HEAD_PAD), lambda i: (i, 0)),
        ),
        compiler_params=pltpu.CompilerParams(
            dimension_semantics=("parallel",),   # megacore shards batch tiles
        ),
    )(state, *weights, bias_slab)

    action = out[:, :ACTION_SIZE]
    value = out[:, VALUE_LANE:VALUE_LANE + 1]
    return action, value


# -----------------------------------------------------------------------------
# Parameters: raw (PyTorch-layout equivalent) + packing (BN fold / fuse / pad).
# Mirrors ActorCritic.init_weights: xavier_uniform_ weights, bias = 0.01,
# BatchNorm1d at PyTorch defaults.
# -----------------------------------------------------------------------------
def _xavier(key, fan_in, fan_out):
    bound = (6.0 / (fan_in + fan_out)) ** 0.5
    return jax.random.uniform(key, (fan_in, fan_out), jnp.float32, -bound, bound)


def make_params(key):
    keys = jax.random.split(key, 16)
    ki = iter(keys)

    # BatchNorm1d(100) defaults: gamma=1, beta=0, running_mean=0, running_var=1
    bn_g = jnp.ones((1, STATE_SIZE), jnp.float32)
    bn_b = jnp.zeros((1, STATE_SIZE), jnp.float32)
    bn_m = jnp.zeros((1, STATE_SIZE), jnp.float32)
    bn_v = jnp.ones((1, STATE_SIZE), jnp.float32)

    def bias(n):
        return jnp.full((1, n), 0.01, jnp.float32)

    # Actor
    wa0, ba0 = _xavier(next(ki), STATE_SIZE, ACTOR_FC[0]), bias(ACTOR_FC[0])
    wa1, ba1 = _xavier(next(ki), ACTOR_FC[0], ACTOR_FC[1]), bias(ACTOR_FC[1])
    wa2, ba2 = _xavier(next(ki), ACTOR_FC[1], ACTOR_FC[2]), bias(ACTOR_FC[2])
    wa3, ba3 = _xavier(next(ki), ACTOR_FC[2], ACTION_SIZE), bias(ACTION_SIZE)

    # Critic
    wcf, bcf = _xavier(next(ki), STATE_SIZE, CRITIC_FC[0]), bias(CRITIC_FC[0])
    wc0_full = _xavier(next(ki), CRITIC_FC[0] + ACTION_SIZE, CRITIC_FC[0])
    wc0a, wc0b = wc0_full[:CRITIC_FC[0], :], wc0_full[CRITIC_FC[0]:, :]
    bc0 = bias(CRITIC_FC[0])
    wc1, bc1 = _xavier(next(ki), CRITIC_FC[0], CRITIC_FC[1]), bias(CRITIC_FC[1])
    wc2, bc2 = _xavier(next(ki), CRITIC_FC[1], CRITIC_FC[2]), bias(CRITIC_FC[2])
    wc3, bc3 = _xavier(next(ki), CRITIC_FC[2], 1), bias(1)

    return (bn_g, bn_b, bn_m, bn_v,
            wa0, ba0, wa1, ba1, wa2, ba2, wa3, ba3,
            wcf, bcf, wc0a, wc0b, bc0,
            wc1, bc1, wc2, bc2, wc3, bc3)


def pack_params(raw):
    (bn_g, bn_b, bn_m, bn_v,
     wa0, ba0, wa1, ba1, wa2, ba2, wa3, ba3,
     wcf, bcf, wc0a, wc0b, bc0, wc1, bc1, wc2, bc2, wc3, bc3) = raw

    # Fold eval-mode BatchNorm into the first-layer weights/biases.
    scale = bn_g * jax.lax.rsqrt(bn_v + BN_EPS)          # [1, S]
    shift = bn_b - bn_m * scale                          # [1, S]
    wa0f, ba0f = wa0 * scale.T, ba0 + shift @ wa0
    wcff, bcff = wcf * scale.T, bcf + shift @ wcf

    # Fuse the shared-input first layers; K stays at STATE_SIZE (no lane pad).
    w_first = jnp.concatenate([wa0f, wcff], axis=1)                       # [100, 512]
    b_first = jnp.concatenate([ba0f, bcff], axis=1)                       # [1, 512]

    # Pad the 64-wide hidden layers to 128 lanes (RReLU(0)=0 keeps them exact).
    wa2p = jnp.pad(wa2, ((0, 0), (0, HIDDEN_PAD - ACTOR_FC[2])))          # [128, 128]
    ba2p = jnp.pad(ba2, ((0, 0), (0, HIDDEN_PAD - ACTOR_FC[2])))          # [1, 128]
    wc2p = jnp.pad(wc2, ((0, 0), (0, HIDDEN_PAD - CRITIC_FC[2])))         # [128, 128]
    bc2p = jnp.pad(bc2, ((0, 0), (0, HIDDEN_PAD - CRITIC_FC[2])))         # [1, 128]

    # Output heads share one 128-lane slab: action -> lanes 0..3, value -> lane 4.
    wa3p = (jnp.zeros((HIDDEN_PAD, HEAD_PAD), jnp.float32)
            .at[:ACTOR_FC[2], :ACTION_SIZE].set(wa3))                     # [128, 128]
    ba3p = jnp.zeros((1, HEAD_PAD), jnp.float32).at[:, :ACTION_SIZE].set(ba3)
    wc3p = (jnp.zeros((HIDDEN_PAD, HEAD_PAD), jnp.float32)
            .at[:CRITIC_FC[2], VALUE_LANE:VALUE_LANE + 1].set(wc3))       # [128, 128]
    bc3p = (jnp.zeros((1, HEAD_PAD), jnp.float32)
            .at[:, VALUE_LANE:VALUE_LANE + 1].set(bc3))

    wc0bp = jnp.pad(wc0b, ((0, HEAD_PAD - ACTION_SIZE), (0, 0)))          # [128, 256]

    # Invariants the single-slab writeback (out = action + value) relies on:
    assert bool(jnp.all(wa3p[:, ACTION_SIZE:] == 0))
    assert bool(jnp.all(ba3p[:, ACTION_SIZE:] == 0))
    assert bool(jnp.all(wc3p[:, :VALUE_LANE] == 0))
    assert bool(jnp.all(wc3p[:, VALUE_LANE + 1:] == 0))
    assert bool(jnp.all(bc3p[:, :VALUE_LANE] == 0))
    assert bool(jnp.all(bc3p[:, VALUE_LANE + 1:] == 0))

    # Single [8, 512] f32 bias slab (one DMA for all biases).
    def row(b):
        return jnp.pad(b, ((0, 0), (0, 512 - b.shape[1])))
    bias_slab = jnp.concatenate(
        [row(b_first), row(ba1), row(ba2p), row(ba3p),
         row(bc0), row(bc1), row(bc2p), row(bc3p)], axis=0).astype(jnp.float32)

    bf = lambda w: w.astype(jnp.bfloat16)
    weights = (bf(w_first), bf(wa1), bf(wa2p), bf(wa3p),
               bf(wc0a), bf(wc0bp), bf(wc1), bf(wc2p), bf(wc3p))
    return weights, bias_slab


# -----------------------------------------------------------------------------
# References
# -----------------------------------------------------------------------------
def reference_packed(state, packed):
    """Pure-JAX mirror of the exact kernel math (same packing + bf16 casts)."""
    (w_first, wa1, wa2p, wa3p, wc0a, wc0bp, wc1, wc2p, wc3p), bias = packed
    bf = jnp.bfloat16
    dot = lambda a, w: jnp.dot(a.astype(bf), w, preferred_element_type=jnp.float32)

    first = dot(state, w_first) + bias[0:1, :]
    h = _rrelu(first[:, :ACTOR_FC[0]])
    c = first[:, ACTOR_FC[0]:]
    h = _rrelu(dot(h, wa1) + bias[1:2, :HIDDEN_PAD])
    h = _rrelu(dot(h, wa2p) + bias[2:3, :HIDDEN_PAD])
    action = jnp.tanh(dot(h, wa3p) + bias[3:4, :HEAD_PAD])
    g = dot(c, wc0a) + dot(action, wc0bp)
    g = _rrelu(g + bias[4:5, :CRITIC_FC[0]])
    g = _rrelu(dot(g, wc1) + bias[5:6, :HIDDEN_PAD])
    g = _rrelu(dot(g, wc2p) + bias[6:7, :HIDDEN_PAD])
    value = dot(g, wc3p) + bias[7:8, :HEAD_PAD]
    out = action + value
    return out[:, :ACTION_SIZE], out[:, VALUE_LANE:VALUE_LANE + 1]


def reference_f32(state, raw):
    """Original module semantics, all-f32, un-fused (validates the packing)."""
    (bn_g, bn_b, bn_m, bn_v,
     wa0, ba0, wa1, ba1, wa2, ba2, wa3, ba3,
     wcf, bcf, wc0a, wc0b, bc0, wc1, bc1, wc2, bc2, wc3, bc3) = raw
    x = (state - bn_m) * jax.lax.rsqrt(bn_v + BN_EPS) * bn_g + bn_b
    h = _rrelu(x @ wa0 + ba0)
    h = _rrelu(h @ wa1 + ba1)
    h = _rrelu(h @ wa2 + ba2)
    action = jnp.tanh(h @ wa3 + ba3)
    c = x @ wcf + bcf                      # no activation (faithful to the bug)
    g = _rrelu(c @ wc0a + action @ wc0b + bc0)
    g = _rrelu(g @ wc1 + bc1)
    g = _rrelu(g @ wc2 + bc2)
    value = g @ wc3 + bc3
    return action, value


# -----------------------------------------------------------------------------
if __name__ == "__main__":
    key = jax.random.PRNGKey(0)
    k_state, k_params = jax.random.split(key)

    B = 200  # not a tile multiple on purpose: exercises the ragged last tile
    state = jax.random.normal(k_state, (B, STATE_SIZE), jnp.float32)
    raw = make_params(k_params)
    packed = pack_params(raw)

    action, value = actor_critic_forward(state, packed)
    jax.block_until_ready((action, value))
    assert action.shape == (B, ACTION_SIZE) and value.shape == (B, 1)

    # 1) Tight check against a pure-JAX mirror of the exact kernel math.
    a_ref, v_ref = reference_packed(state, packed)
    assert jnp.allclose(action, a_ref, atol=1e-3, rtol=1e-3)
    assert jnp.allclose(value, v_ref, atol=1e-3, rtol=1e-3)

    # 2) Loose check against the original f32 module semantics
    #    (bf16 weights keep accumulation in f32, so error stays small).
    a_f32, v_f32 = reference_f32(state, raw)
    assert jnp.allclose(action, a_f32, atol=5e-2, rtol=5e-2)
    assert jnp.allclose(value, v_f32, atol=5e-2, rtol=5e-2)

    print("KERNEL_OK")
</pallas_src>

<mosaic_0001>
module attributes {stable_mosaic.version = 11 : i64} {
  func.func @actor_critic_kernel(%arg0: i32, %arg1: memref<104x100xf32, #tpu.memory_space<vmem>>, %arg2: memref<100x512xbf16, #tpu.memory_space<vmem>>, %arg3: memref<256x128xbf16, #tpu.memory_space<vmem>>, %arg4: memref<128x128xbf16, #tpu.memory_space<vmem>>, %arg5: memref<128x128xbf16, #tpu.memory_space<vmem>>, %arg6: memref<256x256xbf16, #tpu.memory_space<vmem>>, %arg7: memref<128x256xbf16, #tpu.memory_space<vmem>>, %arg8: memref<256x128xbf16, #tpu.memory_space<vmem>>, %arg9: memref<128x128xbf16, #tpu.memory_space<vmem>>, %arg10: memref<128x128xbf16, #tpu.memory_space<vmem>>, %arg11: memref<8x512xf32, #tpu.memory_space<vmem>>, %arg12: memref<104x128xf32, #tpu.memory_space<vmem>>) attributes {dimension_semantics = [#tpu.dimension_semantics<parallel>], iteration_bounds = array<i64: 2>, scalar_prefetch = 0 : i64, scratch_operands = 0 : i64, tpu.core_type = #tpu.core_type<tc>, window_params = [{transform_indices = @transform_0, window_bounds = array<i64: 104, 100>}, {pipeline_mode = #tpu.pipeline_mode<synchronous>, transform_indices = @transform_1, window_bounds = array<i64: 100, 512>}, {pipeline_mode = #tpu.pipeline_mode<synchronous>, transform_indices = @transform_2, window_bounds = array<i64: 256, 128>}, {pipeline_mode = #tpu.pipeline_mode<synchronous>, transform_indices = @transform_3, window_bounds = array<i64: 128, 128>}, {pipeline_mode = #tpu.pipeline_mode<synchronous>, transform_indices = @transform_4, window_bounds = array<i64: 128, 128>}, {pipeline_mode = #tpu.pipeline_mode<synchronous>, transform_indices = @transform_5, window_bounds = array<i64: 256, 256>}, {pipeline_mode = #tpu.pipeline_mode<synchronous>, transform_indices = @transform_6, window_bounds = array<i64: 128, 256>}, {pipeline_mode = #tpu.pipeline_mode<synchronous>, transform_indices = @transform_7, window_bounds = array<i64: 256, 128>}, {pipeline_mode = #tpu.pipeline_mode<synchronous>, transform_indices = @transform_8, window_bounds = array<i64: 128, 128>}, {pipeline_mode = #tpu.pipeline_mode<synchronous>, transform_indices = @transform_9, window_bounds = array<i64: 128, 128>}, {pipeline_mode = #tpu.pipeline_mode<synchronous>, transform_indices = @transform_10, window_bounds = array<i64: 8, 512>}, {transform_indices = @transform_11, window_bounds = array<i64: 104, 128>}]} {
    %c0 = arith.constant 0 : index
    %c0_0 = arith.constant 0 : index
    %0 = vector.load %arg1[%c0, %c0_0] : memref<104x100xf32, #tpu.memory_space<vmem>>, vector<104x100xf32>
    %1 = arith.truncf %0 : vector<104x100xf32> to vector<104x100xbf16>
    %c0_1 = arith.constant 0 : index
    %c0_2 = arith.constant 0 : index
    %2 = vector.load %arg2[%c0_1, %c0_2] : memref<100x512xbf16, #tpu.memory_space<vmem>>, vector<100x512xbf16>
    %cst = arith.constant dense<0.000000e+00> : vector<104x512xf32>
    %3 = tpu.matmul %1, %2, %cst {dimension_numbers = #tpu.dot_dimension_numbers<[1], [0], [0], [1], [0, 0, 1, 1], [], []>} : vector<104x100xbf16>, vector<100x512xbf16>, vector<104x512xf32> -> vector<104x512xf32>
    %c0_3 = arith.constant 0 : index
    %c0_4 = arith.constant 0 : index
    %4 = vector.load %arg11[%c0_3, %c0_4] : memref<8x512xf32, #tpu.memory_space<vmem>>, vector<1x512xf32>
    %5 = vector.broadcast %4 : vector<1x512xf32> to vector<104x512xf32>
    %6 = arith.addf %3, %5 : vector<104x512xf32>
    %7 = vector.extract_strided_slice %6 {offsets = [0, 0], sizes = [104, 256], strides = [1, 1]} : vector<104x512xf32> to vector<104x256xf32>
    %cst_5 = arith.constant 0.000000e+00 : f32
    %8 = vector.broadcast %cst_5 : f32 to vector<104x256xf32>
    %9 = arith.cmpf oge, %7, %8 : vector<104x256xf32>
    %cst_6 = arith.constant 0.229166672 : f32
    %10 = vector.broadcast %cst_6 : f32 to vector<104x256xf32>
    %11 = arith.mulf %10, %7 : vector<104x256xf32>
    %12 = arith.select %9, %7, %11 : vector<104x256xi1>, vector<104x256xf32>
    %13 = vector.extract_strided_slice %6 {offsets = [0, 256], sizes = [104, 256], strides = [1, 1]} : vector<104x512xf32> to vector<104x256xf32>
    %14 = arith.truncf %12 : vector<104x256xf32> to vector<104x256xbf16>
    %c0_7 = arith.constant 0 : index
    %c0_8 = arith.constant 0 : index
    %15 = vector.load %arg3[%c0_7, %c0_8] : memref<256x128xbf16, #tpu.memory_space<vmem>>, vector<256x128xbf16>
    %cst_9 = arith.constant dense<0.000000e+00> : vector<104x128xf32>
    %16 = tpu.matmul %14, %15, %cst_9 {dimension_numbers = #tpu.dot_dimension_numbers<[1], [0], [0], [1], [0, 0, 1, 1], [], []>} : vector<104x256xbf16>, vector<256x128xbf16>, vector<104x128xf32> -> vector<104x128xf32>
    %c1 = arith.constant 1 : index
    %c0_10 = arith.constant 0 : index
    %17 = vector.load %arg11[%c1, %c0_10] : memref<8x512xf32, #tpu.memory_space<vmem>>, vector<1x128xf32>
    %18 = vector.broadcast %17 : vector<1x128xf32> to vector<104x128xf32>
    %19 = arith.addf %16, %18 : vector<104x128xf32>
    %cst_11 = arith.constant 0.000000e+00 : f32
    %20 = vector.broadcast %cst_11 : f32 to vector<104x128xf32>
    %21 = arith.cmpf oge, %19, %20 : vector<104x128xf32>
    %cst_12 = arith.constant 0.229166672 : f32
    %22 = vector.broadcast %cst_12 : f32 to vector<104x128xf32>
    %23 = arith.mulf %22, %19 : vector<104x128xf32>
    %24 = arith.select %21, %19, %23 : vector<104x128xi1>, vector<104x128xf32>
    %25 = arith.truncf %24 : vector<104x128xf32> to vector<104x128xbf16>
    %c0_13 = arith.constant 0 : index
    %c0_14 = arith.constant 0 : index
    %26 = vector.load %arg4[%c0_13, %c0_14] : memref<128x128xbf16, #tpu.memory_space<vmem>>, vector<128x128xbf16>
    %cst_15 = arith.constant dense<0.000000e+00> : vector<104x128xf32>
    %27 = tpu.matmul %25, %26, %cst_15 {dimension_numbers = #tpu.dot_dimension_numbers<[1], [0], [0], [1], [0, 0, 1, 1], [], []>} : vector<104x128xbf16>, vector<128x128xbf16>, vector<104x128xf32> -> vector<104x128xf32>
    %c2 = arith.constant 2 : index
    %c0_16 = arith.constant 0 : index
    %28 = vector.load %arg11[%c2, %c0_16] : memref<8x512xf32, #tpu.memory_space<vmem>>, vector<1x128xf32>
    %29 = vector.broadcast %28 : vector<1x128xf32> to vector<104x128xf32>
    %30 = arith.addf %27, %29 : vector<104x128xf32>
    %cst_17 = arith.constant 0.000000e+00 : f32
    %31 = vector.broadcast %cst_17 : f32 to vector<104x128xf32>
    %32 = arith.cmpf oge, %30, %31 : vector<104x128xf32>
    %cst_18 = arith.constant 0.229166672 : f32
    %33 = vector.broadcast %cst_18 : f32 to vector<104x128xf32>
    %34 = arith.mulf %33, %30 : vector<104x128xf32>
    %35 = arith.select %32, %30, %34 : vector<104x128xi1>, vector<104x128xf32>
    %36 = arith.truncf %35 : vector<104x128xf32> to vector<104x128xbf16>
    %c0_19 = arith.constant 0 : index
    %c0_20 = arith.constant 0 : index
    %37 = vector.load %arg5[%c0_19, %c0_20] : memref<128x128xbf16, #tpu.memory_space<vmem>>, vector<128x128xbf16>
    %cst_21 = arith.constant dense<0.000000e+00> : vector<104x128xf32>
    %38 = tpu.matmul %36, %37, %cst_21 {dimension_numbers = #tpu.dot_dimension_numbers<[1], [0], [0], [1], [0, 0, 1, 1], [], []>} : vector<104x128xbf16>, vector<128x128xbf16>, vector<104x128xf32> -> vector<104x128xf32>
    %c3 = arith.constant 3 : index
    %c0_22 = arith.constant 0 : index
    %39 = vector.load %arg11[%c3, %c0_22] : memref<8x512xf32, #tpu.memory_space<vmem>>, vector<1x128xf32>
    %40 = vector.broadcast %39 : vector<1x128xf32> to vector<104x128xf32>
    %41 = arith.addf %38, %40 : vector<104x128xf32>
    %42 = math.tanh %41 : vector<104x128xf32>
    %43 = arith.truncf %13 : vector<104x256xf32> to vector<104x256xbf16>
    %c0_23 = arith.constant 0 : index
    %c0_24 = arith.constant 0 : index
    %44 = vector.load %arg6[%c0_23, %c0_24] : memref<256x256xbf16, #tpu.memory_space<vmem>>, vector<256x256xbf16>
    %cst_25 = arith.constant dense<0.000000e+00> : vector<104x256xf32>
    %45 = tpu.matmul %43, %44, %cst_25 {dimension_numbers = #tpu.dot_dimension_numbers<[1], [0], [0], [1], [0, 0, 1, 1], [], []>} : vector<104x256xbf16>, vector<256x256xbf16>, vector<104x256xf32> -> vector<104x256xf32>
    %46 = arith.truncf %42 : vector<104x128xf32> to vector<104x128xbf16>
    %c0_26 = arith.constant 0 : index
    %c0_27 = arith.constant 0 : index
    %47 = vector.load %arg7[%c0_26, %c0_27] : memref<128x256xbf16, #tpu.memory_space<vmem>>, vector<128x256xbf16>
    %cst_28 = arith.constant dense<0.000000e+00> : vector<104x256xf32>
    %48 = tpu.matmul %46, %47, %cst_28 {dimension_numbers = #tpu.dot_dimension_numbers<[1], [0], [0], [1], [0, 0, 1, 1], [], []>} : vector<104x128xbf16>, vector<128x256xbf16>, vector<104x256xf32> -> vector<104x256xf32>
    %49 = arith.addf %45, %48 : vector<104x256xf32>
    %c4 = arith.constant 4 : index
    %c0_29 = arith.constant 0 : index
    %50 = vector.load %arg11[%c4, %c0_29] : memref<8x512xf32, #tpu.memory_space<vmem>>, vector<1x256xf32>
    %51 = vector.broadcast %50 : vector<1x256xf32> to vector<104x256xf32>
    %52 = arith.addf %49, %51 : vector<104x256xf32>
    %cst_30 = arith.constant 0.000000e+00 : f32
    %53 = vector.broadcast %cst_30 : f32 to vector<104x256xf32>
    %54 = arith.cmpf oge, %52, %53 : vector<104x256xf32>
    %cst_31 = arith.constant 0.229166672 : f32
    %55 = vector.broadcast %cst_31 : f32 to vector<104x256xf32>
    %56 = arith.mulf %55, %52 : vector<104x256xf32>
    %57 = arith.select %54, %52, %56 : vector<104x256xi1>, vector<104x256xf32>
    %58 = arith.truncf %57 : vector<104x256xf32> to vector<104x256xbf16>
    %c0_32 = arith.constant 0 : index
    %c0_33 = arith.constant 0 : index
    %59 = vector.load %arg8[%c0_32, %c0_33] : memref<256x128xbf16, #tpu.memory_space<vmem>>, vector<256x128xbf16>
    %cst_34 = arith.constant dense<0.000000e+00> : vector<104x128xf32>
    %60 = tpu.matmul %58, %59, %cst_34 {dimension_numbers = #tpu.dot_dimension_numbers<[1], [0], [0], [1], [0, 0, 1, 1], [], []>} : vector<104x256xbf16>, vector<256x128xbf16>, vector<104x128xf32> -> vector<104x128xf32>
    %c5 = arith.constant 5 : index
    %c0_35 = arith.constant 0 : index
    %61 = vector.load %arg11[%c5, %c0_35] : memref<8x512xf32, #tpu.memory_space<vmem>>, vector<1x128xf32>
    %62 = vector.broadcast %61 : vector<1x128xf32> to vector<104x128xf32>
    %63 = arith.addf %60, %62 : vector<104x128xf32>
    %cst_36 = arith.constant 0.000000e+00 : f32
    %64 = vector.broadcast %cst_36 : f32 to vector<104x128xf32>
    %65 = arith.cmpf oge, %63, %64 : vector<104x128xf32>
    %cst_37 = arith.constant 0.229166672 : f32
    %66 = vector.broadcast %cst_37 : f32 to vector<104x128xf32>
    %67 = arith.mulf %66, %63 : vector<104x128xf32>
    %68 = arith.select %65, %63, %67 : vector<104x128xi1>, vector<104x128xf32>
    %69 = arith.truncf %68 : vector<104x128xf32> to vector<104x128xbf16>
    %c0_38 = arith.constant 0 : index
    %c0_39 = arith.constant 0 : index
    %70 = vector.load %arg9[%c0_38, %c0_39] : memref<128x128xbf16, #tpu.memory_space<vmem>>, vector<128x128xbf16>
    %cst_40 = arith.constant dense<0.000000e+00> : vector<104x128xf32>
    %71 = tpu.matmul %69, %70, %cst_40 {dimension_numbers = #tpu.dot_dimension_numbers<[1], [0], [0], [1], [0, 0, 1, 1], [], []>} : vector<104x128xbf16>, vector<128x128xbf16>, vector<104x128xf32> -> vector<104x128xf32>
    %c6 = arith.constant 6 : index
    %c0_41 = arith.constant 0 : index
    %72 = vector.load %arg11[%c6, %c0_41] : memref<8x512xf32, #tpu.memory_space<vmem>>, vector<1x128xf32>
    %73 = vector.broadcast %72 : vector<1x128xf32> to vector<104x128xf32>
    %74 = arith.addf %71, %73 : vector<104x128xf32>
    %cst_42 = arith.constant 0.000000e+00 : f32
    %75 = vector.broadcast %cst_42 : f32 to vector<104x128xf32>
    %76 = arith.cmpf oge, %74, %75 : vector<104x128xf32>
    %cst_43 = arith.constant 0.229166672 : f32
    %77 = vector.broadcast %cst_43 : f32 to vector<104x128xf32>
    %78 = arith.mulf %77, %74 : vector<104x128xf32>
    %79 = arith.select %76, %74, %78 : vector<104x128xi1>, vector<104x128xf32>
    %80 = arith.truncf %79 : vector<104x128xf32> to vector<104x128xbf16>
    %c0_44 = arith.constant 0 : index
    %c0_45 = arith.constant 0 : index
    %81 = vector.load %arg10[%c0_44, %c0_45] : memref<128x128xbf16, #tpu.memory_space<vmem>>, vector<128x128xbf16>
    %cst_46 = arith.constant dense<0.000000e+00> : vector<104x128xf32>
    %82 = tpu.matmul %80, %81, %cst_46 {dimension_numbers = #tpu.dot_dimension_numbers<[1], [0], [0], [1], [0, 0, 1, 1], [], []>} : vector<104x128xbf16>, vector<128x128xbf16>, vector<104x128xf32> -> vector<104x128xf32>
    %c7 = arith.constant 7 : index
    %c0_47 = arith.constant 0 : index
    %83 = vector.load %arg11[%c7, %c0_47] : memref<8x512xf32, #tpu.memory_space<vmem>>, vector<1x128xf32>
    %84 = vector.broadcast %83 : vector<1x128xf32> to vector<104x128xf32>
    %85 = arith.addf %82, %84 : vector<104x128xf32>
    %86 = arith.addf %42, %85 : vector<104x128xf32>
    %c0_48 = arith.constant 0 : index
    %c0_49 = arith.constant 0 : index
    %87 = vector.load %arg12[%c0_48, %c0_49] : memref<104x128xf32, #tpu.memory_space<vmem>>, vector<104x128xf32>
    tpu.vector_store %arg12[%c0_48, %c0_49], %86 {strides = array<i32>} : memref<104x128xf32, #tpu.memory_space<vmem>>, vector<104x128xf32>,
    return
  }
  func.func @transform_0(%arg0: i32) -> (i32, i32) {
    %c0_i32 = arith.constant 0 : i32
    %c0_i32_0 = arith.constant 0 : i32
    return %arg0, %c0_i32 : i32, i32
  }
  func.func @transform_1(%arg0: i32) -> (i32, i32) {
    %c0_i32 = arith.constant 0 : i32
    %c0_i32_0 = arith.constant 0 : i32
    %c0_i32_1 = arith.constant 0 : i32
    return %c0_i32, %c0_i32_0 : i32, i32
  }
  func.func @transform_2(%arg0: i32) -> (i32, i32) {
    %c0_i32 = arith.constant 0 : i32
    %c0_i32_0 = arith.constant 0 : i32
    %c0_i32_1 = arith.constant 0 : i32
    return %c0_i32, %c0_i32_0 : i32, i32
  }
  func.func @transform_3(%arg0: i32) -> (i32, i32) {
    %c0_i32 = arith.constant 0 : i32
    %c0_i32_0 = arith.constant 0 : i32
    %c0_i32_1 = arith.constant 0 : i32
    return %c0_i32, %c0_i32_0 : i32, i32
  }
  func.func @transform_4(%arg0: i32) -> (i32, i32) {
    %c0_i32 = arith.constant 0 : i32
    %c0_i32_0 = arith.constant 0 : i32
    %c0_i32_1 = arith.constant 0 : i32
    return %c0_i32, %c0_i32_0 : i32, i32
  }
  func.func @transform_5(%arg0: i32) -> (i32, i32) {
    %c0_i32 = arith.constant 0 : i32
    %c0_i32_0 = arith.constant 0 : i32
    %c0_i32_1 = arith.constant 0 : i32
    return %c0_i32, %c0_i32_0 : i32, i32
  }
  func.func @transform_6(%arg0: i32) -> (i32, i32) {
    %c0_i32 = arith.constant 0 : i32
    %c0_i32_0 = arith.constant 0 : i32
    %c0_i32_1 = arith.constant 0 : i32
    return %c0_i32, %c0_i32_0 : i32, i32
  }
  func.func @transform_7(%arg0: i32) -> (i32, i32) {
    %c0_i32 = arith.constant 0 : i32
    %c0_i32_0 = arith.constant 0 : i32
    %c0_i32_1 = arith.constant 0 : i32
    return %c0_i32, %c0_i32_0 : i32, i32
  }
  func.func @transform_8(%arg0: i32) -> (i32, i32) {
    %c0_i32 = arith.constant 0 : i32
    %c0_i32_0 = arith.constant 0 : i32
    %c0_i32_1 = arith.constant 0 : i32
    return %c0_i32, %c0_i32_0 : i32, i32
  }
  func.func @transform_9(%arg0: i32) -> (i32, i32) {
    %c0_i32 = arith.constant 0 : i32
    %c0_i32_0 = arith.constant 0 : i32
    %c0_i32_1 = arith.constant 0 : i32
    return %c0_i32, %c0_i32_0 : i32, i32
  }
  func.func @transform_10(%arg0: i32) -> (i32, i32) {
    %c0_i32 = arith.constant 0 : i32
    %c0_i32_0 = arith.constant 0 : i32
    %c0_i32_1 = arith.constant 0 : i32
    return %c0_i32, %c0_i32_0 : i32, i32
  }
  func.func @transform_11(%arg0: i32) -> (i32, i32) {
    %c0_i32 = arith.constant 0 : i32
    %c0_i32_0 = arith.constant 0 : i32
    return %arg0, %c0_i32 : i32, i32
  }
}

</mosaic_0001>

<bundles_post_ra>
// kernel: tpu_custom_call.1
= control target key start
LH: loop header
LB: loop body
LE: loop exit
PB: predicated region body
PF: predicated region fallthrough
CT: control target
= control target key end

     0   :  { %s5398_s0 = inlined_call_operand.hbm [shape: f32[200,100], index: 0, kind: input, shape index: {}]   ;;  %s5399_s1 = inlined_call_operand.hbm [shape: bf16[100,512], index: 1, kind: input, shape index: {}]   ;;  %s5400_s2 = inlined_call_operand.hbm [shape: bf16[256,128], index: 2, kind: input, shape index: {}]   ;;  %s5401_s3 = inlined_call_operand.hbm [shape: bf16[128,128], index: 3, kind: input, shape index: {}]   ;;  %s5402_s4 = inlined_call_operand.hbm [shape: bf16[128,128], index: 4, kind: input, shape index: {}]   ;;  %s5403_s5 = inlined_call_operand.hbm [shape: bf16[256,256], index: 5, kind: input, shape index: {}]   ;;  %s5404_s6 = inlined_call_operand.hbm [shape: bf16[128,256], index: 6, kind: input, shape index: {}]   ;;  %s5405_s7 = inlined_call_operand.hbm [shape: bf16[256,128], index: 7, kind: input, shape index: {}]   ;;  %s5406_s8 = inlined_call_operand.hbm [shape: bf16[128,128], index: 8, kind: input, shape index: {}]   ;;  %s5407_s9 = inlined_call_operand.hbm [shape: bf16[128,128], index: 9, kind: input, shape index: {}]   ;;  %s5408_s10 = inlined_call_operand.hbm [shape: f32[8,512], index: 10, kind: input, shape index: {}]   ;;  %s5409_s11 = inlined_call_operand.hbm [shape: f32[200,128], index: 11, kind: output, shape index: {}]  }
   0x1   :  { %5423 = sst [smem:[#allocation34_spill]] %s5399_s1 }
   0x2   :  { %5424 = sst [smem:[#allocation35_spill]] %s5400_s2 }
   0x3   :  { %5425 = sst [smem:[#allocation36_spill]] %s5401_s3 }
   0x4   :  { %5426 = sst [smem:[#allocation37_spill]] %s5409_s11 }
   0x5   :  { %16 = vsyncpa [#allocation3], 0 }
   0x6   :  { %18 = vsyncpa [#allocation3 + $0x1], 0 }
   0x7   :  { %19 = vsyncpa [#allocation6], 0 }
   0x8   :  { %20 = vsyncpa [#allocation9], 0 }
   0x9   :  { %21 = vsyncpa [#allocation12], 0 }
   0xa   :  { %22 = vsyncpa [#allocation15], 0 }
   0xb   :  { %23 = vsyncpa [#allocation18], 0 }
   0xc   :  { %24 = vsyncpa [#allocation4], 0 }
   0xd   :  { %26 = vsyncpa [#allocation4 + $0x1], 0  ;;  %s4500_s17 = smov 0   ;;  %s4502_s18 = smov 0  }
   0xe   :  { %s4504_s19 = smov 0   ;;  %s4506_s20 = smov 0  }
   0xf LB: > { %5427 = sst [smem:[#allocation28_spill]] %s4404_s17  ;;  %s4521_s21 = sadd.s32 4294967295, %s4416_s20   ;;  %s4416_s20 = sphi %s4506_s20, %s5464_s20   ;;  %s4412_s19 = sphi %s4504_s19, %s5468_s19   ;;  %s4408_s18 = sphi %s4502_s18, %s5467_s18   ;;  %s4404_s17 = sphi %s4500_s17, %s5466_s17  }
  0x10   : > { %5428 = sst [smem:[#allocation29_spill]] %s4521_s21  ;;  %s3041_s22 = sadd.s32 4294967294, %s4416_s20  }
  0x11   : > { %s4525_s23 = sadd.s32 1, %s4416_s20   ;;  %s39_s24 = sadd.s32 1, %s4412_s19 }
  0x12   : > { %5429 = sst [smem:[#allocation30_spill]] %s4525_s23  ;;  %s36_s25 = ssub.s32 %s4416_s20, %s4525_s23 }
  0x13   : > { %p46_p0 = scmp.ne.s32.totalorder %s4412_s19, %s4408_s18  ;;  %p37_p1 = scmp.eq.s32.totalorder %s36_s25, 0 }
  0x14   : > { %p47_p2 = scmp.eq.s32.totalorder %s4416_s20, 0  ;;  %p52_p3 = scmp.ne.s32.totalorder %s4408_s18, %s4404_s17 }
  0x15   : > { %p5422_p4 = scmp.eq.s32.totalorder %s4521_s21, 0  ;;  %p286_p7 = scmp.eq.s32.totalorder %s4521_s21, 1 }
  0x16   : > { %s4537_s26 = scalar_select %p37_p1, %s4412_s19, %s39_s24  }
  0x17   : > { %p4539_p5 = por %p47_p2, %p46_p0  ;;  %p4545_p6 = por %p5422_p4, %p52_p3 }
  0x18   : > { %5430 = sst [smem:[#allocation31_spill]] %s4537_s26  ;;  %p292_p8 = scmp.eq.s32.totalorder %s3041_s22, 1 }
  0x19   : > { %p3042_p9 = scmp.ge.s32.totalorder %s4416_s20, 1  ;;  %p299_p10 = scmp.lt.s32.totalorder %s4416_s20, 3 }
  0x1a   : > { %p4552_p11 = por %p286_p7, %p46_p0  ;;  %p4556_p12 = por %p292_p8, %p52_p3 }
  0x1b   : > { %p4560_p13 = pnand %p3042_p9, %p299_p10  ;;  %s5438_s1 = sld [smem:[#allocation34_spill]] }
  0x1c   : > { %s5433_s29 = scalar_select %p4552_p11, 1, 0 }
  0x1d   : > { %s5435_s30 = scalar_select %p4556_p12, 1, 0 }
  0x1e   : > { %5434 = sst [smem:[#allocation32_spill]] %s5433_s29  ;;  %p3845_p1 = pneg %p4560_p13 }
  0x1f   : > { %5436 = sst [smem:[#allocation33_spill]] %s5435_s30  ;;  %s4418_s16 = smov [#allocation5]  }
  0x20   : > { %s312_s22 = sshll.u32 %s4418_s16, 4  ;;  %p4571_p0 = pnand %p3845_p1, %p5422_p4  ;;  %s313_s22 = int_to_ptr.vmem [resolvable:$true] %s312_s22 }
  0x21   : > { %s310_s15 = sshll.u32 %s5438_s1, 4  ;;  %s4419_s25 = smov 256   ;;  %s311_s15 = int_to_ptr.hbm [resolvable:$true] %s310_s15 }
  0x22   : > { %s4420_s26 = smov 16   ;;  %s5440_s3 = sld [smem:[#allocation36_spill]] }
  0x23   : > { %3848 = dma.hbm_to_vmem [thread:$0]  (!%p4571_p0), %s311_s15, 3328, %s313_s22, [#allocation6], %s4419_s25, %s4419_s25, %s4420_s26  }
  0x24   : > { %s4421_s23 = smov [#allocation8]   ;;  %s366_s11 = sshll.u32 %s5403_s5, 4  ;;  %s367_s11 = int_to_ptr.hbm [resolvable:$true] %s366_s11 }
  0x25   : > { %s340_s16 = sshll.u32 %s4421_s23, 4  ;;  %s4422_s29 = smov 64   ;;  %s341_s16 = int_to_ptr.vmem [resolvable:$true] %s340_s16 }
  0x26   : > { %s4423_s21 = smov 4   ;;  %s4424_s26 = smov [#allocation11]  }
  0x27   : > { %s368_s15 = sshll.u32 %s4424_s26, 4  ;;  %s5419_s22 = smov 128   ;;  %s369_s15 = int_to_ptr.vmem [resolvable:$true] %s368_s15 }
  0x28   : > { %s338_s1 = sshll.u32 %s5440_s3, 4  ;;  %s5420_s23 = smov 8   ;;  %s339_s1 = int_to_ptr.hbm [resolvable:$true] %s338_s1 }
  0x29   : > { %3854 = dma.hbm_to_vmem [thread:$0]  (!%p4571_p0), %s339_s1, 1024, %s341_s16, [#allocation9], %s4422_s29, %s4422_s29, %s4423_s21  }
  0x2a   : > { %3860 = dma.hbm_to_vmem [thread:$0]  (!%p4571_p0), %s367_s11, 4096, %s369_s15, [#allocation12], %s5419_s22, %s5419_s22, %s5420_s23  }
  0x2b   : > { %s394_s25 = sshll.u32 %s5405_s7, 4  ;;  %s4427_s13 = smov [#allocation14]   ;;  %s395_s25 = int_to_ptr.hbm [resolvable:$true] %s394_s25 }
  0x2c   : > { %s396_s14 = sshll.u32 %s4427_s13, 4  ;;  %s422_s26 = sshll.u32 %s5407_s9, 4  ;;  %s397_s14 = int_to_ptr.vmem [resolvable:$true] %s396_s14  ;;  %s423_s26 = int_to_ptr.hbm [resolvable:$true] %s422_s26 }
  0x2d   : > { %3866 = dma.hbm_to_vmem [thread:$0]  (!%p4571_p0), %s395_s25, 2048, %s397_s14, [#allocation15], %s4422_s29, %s4422_s29, %s4423_s21  }
  0x2e   : > { %s4428_s11 = smov [#allocation17]   ;;  %s5441_s2 = sld [smem:[#allocation35_spill]] }
  0x2f   : > { %s424_s15 = sshll.u32 %s4428_s11, 4  ;;  %s352_s16 = sshll.u32 %s5402_s4, 4  ;;  %s425_s15 = int_to_ptr.vmem [resolvable:$true] %s424_s15  ;;  %s353_s16 = int_to_ptr.hbm [resolvable:$true] %s352_s16 }
  0x30   : > { %3872 = dma.hbm_to_vmem [thread:$0]  (!%p4571_p0), %s423_s26, 1024, %s425_s15, [#allocation18], %s4422_s29, %s4422_s29, %s4423_s21  }
  0x31   : > { %s4429_s25 = smov [#allocation7]   ;;  %s4430_s22 = smov [#allocation10]  }
  0x32   : > { %s326_s14 = sshll.u32 %s4429_s25, 4  ;;  %s354_s11 = sshll.u32 %s4430_s22, 4  ;;  %s327_s14 = int_to_ptr.vmem [resolvable:$true] %s326_s14  ;;  %s355_s11 = int_to_ptr.vmem [resolvable:$true] %s354_s11 }
  0x33   : > { %s380_s26 = sshll.u32 %s5404_s6, 4  ;;  %s408_s1 = sshll.u32 %s5406_s8, 4  ;;  %s381_s26 = int_to_ptr.hbm [resolvable:$true] %s380_s26  ;;  %s409_s1 = int_to_ptr.hbm [resolvable:$true] %s408_s1 }
  0x34   : > { %s324_s30 = sshll.u32 %s5441_s2, 4  ;;  %s5443_s23 = smov 128   ;;  %s325_s30 = int_to_ptr.hbm [resolvable:$true] %s324_s30 }
  0x35   : > { %3851 = dma.hbm_to_vmem [thread:$0]  (!%p4571_p0), %s325_s30, 2048, %s327_s14, [#allocation6], %s4422_s29, %s4422_s29, %s4423_s21  }
  0x36   : > { %3857 = dma.hbm_to_vmem [thread:$0]  (!%p4571_p0), %s353_s16, 1024, %s355_s11, [#allocation9], %s4422_s29, %s4422_s29, %s4423_s21  }
  0x37   : > { %s4431_s30 = smov [#allocation13]   ;;  %s5442_s14 = smov 8  }
  0x38   : > { %s382_s25 = sshll.u32 %s4431_s30, 4  ;;  %s4432_s22 = smov [#allocation16]   ;;  %s383_s25 = int_to_ptr.vmem [resolvable:$true] %s382_s25 }
  0x39   : > { %3863 = dma.hbm_to_vmem [thread:$0]  (!%p4571_p0), %s381_s26, 2048, %s383_s25, [#allocation12], %s5443_s23, %s5443_s23, %s5442_s14  }
  0x3a   : > { %s410_s17 = sshll.u32 %s4432_s22, 4  ;;  %s437_s16 = sshll.u32 %s5408_s10, 4  ;;  %s411_s17 = int_to_ptr.vmem [resolvable:$true] %s410_s17  ;;  %s438_s16 = int_to_ptr.hbm [resolvable:$true] %s437_s16 }
  0x3b   : > { %3869 = dma.hbm_to_vmem [thread:$0]  (!%p4571_p0), %s409_s1, 1024, %s411_s17, [#allocation15], %s4422_s29, %s4422_s29, %s4423_s21  }
  0x3c   : > { %s4433_s11 = smov [#allocation19]   ;;  %p5421_p2 = scmp.ge.s32.totalorder %s4416_s20, 2 }
  0x3d   : > { %s439_s15 = sshll.u32 %s4433_s11, 4  ;;  %s440_s15 = int_to_ptr.vmem [resolvable:$true] %s439_s15 }
  0x3e   : > { %3875 = dma.hbm_to_vmem [thread:$0]  (!%p4571_p0), %s438_s16, 512, %s440_s15, [#allocation18]  }
  0x3f   : > { %446 = sbr.rel (%p5421_p2) target bundleno = 106 (0x6a), region = 56 }
  0x44   : > { %449 = sbr.rel (!%p4539_p5) target bundleno = 106 (0x6a), region = 60  ;;  %s450_s2 = sand.u32 (%p4539_p5), 1, %s4412_s19  }
  0x45   : > { %s455_s3 = smul.u32 (%p4539_p5), 13, %s4416_s20  ;;  %s4656_s1 = scalar_lea.sflag (%p4539_p5), [#allocation3], %s450_s2 }
  0x46   : > { %s3801_s26 = smul.u32 (%p4539_p5), 104, %s450_s2 }
  0x47   : > { %s456_s21 = ssub.s32 (%p4539_p5), 25, %s455_s3 }
  0x48   : > { %p457_p3 = scmp.lt.s32.totalorder (%p4539_p5), %s456_s21, 13  ;;  %s454_s30 = scalar_lea.vmem (%p4539_p5), [#allocation2], %s3801_s26 }
  0x4a   : > { %s5470_s21 = smov (!%p457_p3, %s456_s21), 13 }
  0x4b   : > { %s3054_s29 = sshll.u32 %s5470_s21, 3 }
  0x4c   : > { %s460_s24 = ssub.s32 104, %s3054_s29 }
  0x4d   : > { %s461_s13 = sshll.u32 %s460_s24, 4 }
  0x4e   : > { %462 = vsyncadd %s4656_s1, %s461_s13  ;;  %p4659_p5 = scmp.ne.s32.totalorder %s3054_s29, 0  ;;  %s3649_s25 = smul.u32 104, %s4416_s20 }
  0x4f   : > { %s4664_s14 = sshll.u32 %s454_s30, 4  ;;  %s3058_s23 = sshll.u32 %s5470_s21, 7  ;;  %s470_s14 = int_to_ptr.vmem [resolvable:$true] %s4664_s14 }
  0x50   : > { %s465_s16 = scalar_lea.hbm %s5398_s0, %s3649_s25  ;;  %s4282_s2 = sshrl.u32 %s3058_s23, 4 }
  0x51   : > { %s467_s11 = sshll.u32 %s465_s16, 4  ;;  %s4291_s24 = scalar_lea.hbm %s5398_s0, 200  ;;  %s4671_s11 = int_to_ptr.hbm [resolvable:$true] %s467_s11 }
  0x52   : > { %s4280_s15 = sshra.s32 %s4671_s11, 4  ;;  %s4281_s15 = int_to_ptr.hbm [resolvable:$true] %s4280_s15 }
  0x53   : > { %s4287_s3 = scalar_lea.hbm %s4281_s15, %s4282_s2  ;;  %p4292_p10 = scmp.lt.s32.totalorder %s4281_s15, %s5398_s0 }
  0x54   : > { %p4288_p7 = scmp.ne.s32.totalorder %s4281_s15, %s4287_s3  ;;  %p4293_p1 = scmp.lt.s32.totalorder %s4291_s24, %s4287_s3 }
  0x56   : > { %p4289_p8 = pnand %p4288_p7, %p4659_p5  ;;  %p4294_p0 = por %p4293_p1, %p4292_p10 }
  0x58   : > { %p4290_p9 = pneg %p4289_p8 }
  0x5a   : > { %p4295_p3 = pnand %p4294_p0, %p4290_p9 }
  0x5c   : > { %4298 = shalt.err (!%p4295_p3)
}
  0x5d   : > { %s4299_s25 = sshra.s32 %s470_s14, 4  ;;  %s4434_s17 = smov [#allocation2]   ;;  %s4300_s25 = int_to_ptr.vmem [resolvable:$true] %s4299_s25 }
  0x5e   : > { %s4306_s22 = scalar_lea.vmem %s4300_s25, %s4282_s2  ;;  %s4310_s16 = scalar_lea.vmem %s4434_s17, 208 }
  0x5f   : > { %p4307_p7 = scmp.ne.s32.totalorder %s4300_s25, %s4306_s22  ;;  %p4312_p4 = scmp.lt.s32.totalorder %s4310_s16, %s4306_s22 }
  0x61   : > { %p4308_p8 = pnand %p4307_p7, %p4659_p5 }
  0x63   : > { %p4309_p2 = pneg %p4308_p8 }
  0x65   : > { %p4314_p12 = pnand %p4312_p4, %p4309_p2 }
  0x67   : > { %4317 = shalt.err (!%p4314_p12)
}
  0x68   : > { %s4435_s15 = smov 128   ;;  %s4436_s3 = smov 8  }
  0x69   : > { %475 = dma.hbm_to_vmem [thread:$0]  (%p4659_p5), %s4671_s11, %s3058_s23, %s470_s14, %s4656_s1, %s4435_s15, %s4435_s15, %s4436_s3  }
  0x6a PF: > { %481 = sbr.rel (%p4560_p13) target bundleno = 1555 (0x613), region = 64  ;;  %s4699_s2 = sand.u32 (!%p4560_p13), 1, %s4408_s18  }
  0x6b   : > { %s3802_s26 = smul.u32 (!%p4560_p13), 104, %s4699_s2  ;;  %s484_s29 = scalar_lea.sflag (!%p4560_p13), [#allocation3], %s4699_s2 }
  0x6d   : > { %s4705_s24 = scalar_lea.vmem (!%p4560_p13), [#allocation2], %s3802_s26 }
  0x6f   : > { %4375 = dma.done.wait (%p4545_p6), %s484_s29, 1664  }
  0x70   : > { %4377 = vsyncadd (%p4545_p6), %s484_s29, 4294965632  ;;  %s5445_s21 = sld [smem:[#allocation29_spill]] }
  0x76   : > { %p5446_p4 = scmp.eq.s32.totalorder %s5445_s21, 0 }
  0x78   : > { %4379 = dma.done.wait (%p5446_p4), [#allocation6], 5376   ;;  %p5447_p12 = pmov %p5446_p4 }
  0x79   : > { %p5448_p13 = pmov %p5446_p4 }
  0x7a   : > { %4381 = vsyncadd (%p5447_p12), [#allocation6], 4294961920 }
  0x7b   : > { %4383 = dma.done.wait (%p5448_p13), [#allocation9], 2048   ;;  %p5449_p2 = pmov %p5446_p4 }
  0x7d   : > { %4385 = vsyncadd (%p5449_p2), [#allocation9], 4294965248  ;;  %p5450_p5 = pmov %p5449_p2 }
  0x7e   : > { %p5451_p9 = pmov %p5449_p2 }
  0x7f   : > { %4387 = dma.done.wait (%p5450_p5), [#allocation12], 6144  }
  0x80   : > { %4389 = vsyncadd (%p5451_p9), [#allocation12], 4294961152  ;;  %p5452_p6 = pmov %p5449_p2 }
  0x81   : > { %p5453_p10 = pmov %p5449_p2 }
  0x82   : > { %4391 = dma.done.wait (%p5452_p6), [#allocation15], 3072  }
  0x83   : > { %4393 = vsyncadd (%p5453_p10), [#allocation15], 4294964224  ;;  %p5454_p1 = pmov %p5449_p2 }
  0x85   : > { %4395 = dma.done.wait (%p5454_p1), [#allocation18], 1536   ;;  %p5455_p0 = pmov %p5454_p1 }
  0x86   : > { %v632_v0 = vld [vmem:[#allocation5 + $0xc0] sm:$0x33]  ;;  %vm796_vm0 = vcmask 1041408   ;;  %v3672_v6 = vld [vmem:[#allocation5 + $0xac] sm:$0xf0]  ;;  %vm774_vm1 = vcmask 818176  }
  0x87   : > { %4397 = vsyncadd (%p5455_p0), [#allocation18], 4294965760  ;;  %v718_v1 = vunpack.c.l.b16 %v632_v0  ;;  %v719_v2 = vunpack.c.h.b16 %v632_v0  ;;  %v3152_v3 = vld [vmem:[#allocation5 + $0xa0] sm:$0xf]  ;;  %v3670_v7 = vld [vmem:[#allocation5 + $0xa4] sm:$0xf] }
  0x88   : > { %v3154_v8 = vld [vmem:[#allocation5 + $0xb0] sm:$0xf0]  ;;  %v3153_v11 = vor.u32 %v3672_v6, %v3152_v3  ;;  %v3136_v13 = vld [vmem:[#allocation5 + $0x80] sm:$0xf]  ;;  %v3668_v14 = vld [vmem:[#allocation5 + $0x8c] sm:$0xf0] }
  0x89   : > { %v746_v4 = vpack.c.b16 %v718_v1, %v718_v1  ;;  %v747_v5 = vpack.c.b16 %v719_v2, %v719_v2  ;;  %v3157_v12 = vor.u32 %v3670_v7, %v3154_v8  ;;  %v3666_v15 = vld [vmem:[#allocation5 + $0x84] sm:$0xf]  ;;  %v3138_v16 = vld [vmem:[#allocation5 + $0x90] sm:$0xf0]  ;;  %v3137_v17 = vor.u32 %v3668_v14, %v3136_v13  ;;  %v3120_v19 = vld [vmem:[#allocation5 + $0x60] sm:$0xf] }
  0x8a   : > { %v3141_v18 = vor.u32 %v3666_v15, %v3138_v16  ;;  %v3664_v20 = vld [vmem:[#allocation5 + $0x6c] sm:$0xf0]  ;;  %v3662_v21 = vld [vmem:[#allocation5 + $0x64] sm:$0xf]  ;;  %v3122_v22 = vld [vmem:[#allocation5 + $0x70] sm:$0xf0] }
  0x8b   : > { %v798_v9 = vsel %vm796_vm0, %v746_v4, 0  ;;  %v801_v10 = vsel %vm796_vm0, %v747_v5, 0  ;;  %v3121_v23 = vor.u32 %v3664_v20, %v3120_v19  ;;  %v3125_v24 = vor.u32 %v3662_v21, %v3122_v22  ;;  %v3104_v25 = vld [vmem:[#allocation5 + $0x40] sm:$0xf]  ;;  %v3660_v26 = vld [vmem:[#allocation5 + $0x4c] sm:$0xf0] }
  0x8c   : > { %810 = vmatpush.bf16.msra.mxu0 %v798_v9  ;;  %853 = vmatpush.bf16.msra.mxu1 %v801_v10  ;;  %v3658_v27 = vld [vmem:[#allocation5 + $0x44] sm:$0xf]  ;;  %v3106_v28 = vld [vmem:[#allocation5 + $0x50] sm:$0xf0]  ;;  %v3105_v29 = vor.u32 %v3660_v26, %v3104_v25  ;;  %v3088_v31 = vld [vmem:[#allocation5 + $0x20] sm:$0xf] }
  0x8d   : > { %3787 = vmatpush.bf16.msra.mxu2 %v798_v9  ;;  %3794 = vmatpush.bf16.msra.mxu3 %v801_v10  ;;  %v3109_v30 = vor.u32 %v3658_v27, %v3106_v28  ;;  %v3656_v32 = vld [vmem:[#allocation5 + $0x2c] sm:$0xf0]  ;;  %v3654_v33 = vld [vmem:[#allocation5 + $0x24] sm:$0xf]  ;;  %v3090_v34 = vld [vmem:[#allocation5 + $0x30] sm:$0xf0] }
  0x8e   : > { %v3089_v35 = vor.u32 %v3656_v32, %v3088_v31  ;;  %v3093_v36 = vor.u32 %v3654_v33, %v3090_v34  ;;  %v3072_v37 = vld [vmem:[#allocation5] sm:$0xf]  ;;  %v3652_v38 = vld [vmem:[#allocation5 + $0xc] sm:$0xf0]  ;;  %v3650_v39 = vld [vmem:[#allocation5 + $0x4] sm:$0xf] }
  0x8f   : > { %v3074_v40 = vld [vmem:[#allocation5 + $0x10] sm:$0xf0]  ;;  %v3073_v41 = vor.u32 %v3652_v38, %v3072_v37  ;;  %v589_v44 = vld [vmem:[%s4705_s24 + $0x8] sm:$0xff]  ;;  %v590_v46 = vld [vmem:[%s4705_s24 + $0x10] sm:$0xff]  ;;  %s5308_s28 = scalar_lea.vmem [#allocation20], %s3802_s26  ;;  %s2851_s12 = scalar_lea.sflag [#allocation4], %s4699_s2 }
  0x90   : > { %811 = vmatpush.bf16.msra.mxu0 %v3153_v11  ;;  %854 = vmatpush.bf16.msra.mxu1 %v3157_v12  ;;  %v3077_v42 = vor.u32 %v3650_v39, %v3074_v40  ;;  %v588_v43 = vld [vmem:[%s4705_s24] sm:$0xff]  ;;  %v591_v47 = vld [vmem:[%s4705_s24 + $0x18] sm:$0xff]  ;;  %v597_v50 = vld [vmem:[%s4705_s24 + $0x48] sm:$0xff]  ;;  %s5457_s27 = sld [smem:[#allocation29_spill]] (%p4552_p11) }
  0x91   : > { %3788 = vmatpush.bf16.msra.mxu2 %v3153_v11  ;;  %3795 = vmatpush.bf16.msra.mxu3 %v3157_v12  ;;  %v4735_v45 = vpack.c.bf16 %v589_v44, %v588_v43  ;;  %v4743_v48 = vpack.c.bf16 %v591_v47, %v590_v46  ;;  %v596_v49 = vld [vmem:[%s4705_s24 + $0x40] sm:$0xff]  ;;  %v3681_v52 = vld [vmem:[#allocation7 + $0x38] sm:$0xff]  ;;  %v3680_v54 = vld [vmem:[#allocation7 + $0x30] sm:$0xff] }
  0x92   : > { %v4747_v51 = vpack.c.bf16 %v597_v50, %v596_v49  ;;  %v3689_v53 = vld [vmem:[#allocation7 + $0x78] sm:$0xff]  ;;  %v3688_v55 = vld [vmem:[#allocation7 + $0x70] sm:$0xff]  ;;  %v3679_v57 = vld [vmem:[#allocation7 + $0x28] sm:$0xff] }
  0x93   : > { %v4757_v56 = vld [vmem:[#allocation5 + $0xc8] sm:$0x33]  ;;  %v3687_v59 = vld [vmem:[#allocation7 + $0x68] sm:$0xff]  ;;  %v3678_v1 = vld [vmem:[#allocation7 + $0x20] sm:$0xff] }
  0x94   : > { %812 = vmatpush.bf16.msra.mxu0 %v3137_v17  ;;  %855 = vmatpush.bf16.msra.mxu1 %v3141_v18  ;;  %v720_v58 = vunpack.c.l.b16 %v4757_v56  ;;  %v592_v61 = vld [vmem:[%s4705_s24 + $0x20] sm:$0xff]  ;;  %v593_v62 = vld [vmem:[%s4705_s24 + $0x28] sm:$0xff]  ;;  %v598_v63 = vld [vmem:[%s4705_s24 + $0x50] sm:$0xff] }
  0x95   : > { %3789 = vmatpush.bf16.msra.mxu2 %v3137_v17  ;;  %3796 = vmatpush.bf16.msra.mxu3 %v3141_v18  ;;  %v599_v0 = vld [vmem:[%s4705_s24 + $0x58] sm:$0xff]  ;;  %v4765_v4 = vpack.c.bf16 %v593_v62, %v592_v61  ;;  %v3676_v8 = vld [vmem:[#allocation7 + $0x10] sm:$0xff]  ;;  %v600_v12 = vld [vmem:[%s4705_s24 + $0x60] sm:$0xff] }
  0x96   : > { %v748_v60 = vpack.c.b16 %v720_v58, %v720_v58  ;;  %v3686_v3 = vld [vmem:[#allocation7 + $0x60] sm:$0xff]  ;;  %v4767_v5 = vpack.c.bf16 %v599_v0, %v598_v63  ;;  %v3677_v6 = vld [vmem:[#allocation7 + $0x18] sm:$0xff]  ;;  %v3684_v9 = vld [vmem:[#allocation7 + $0x50] sm:$0xff]  ;;  %v4782_v14 = vpack.c.bf16 %v600_v12, %v600_v12  ;;  %s2858_s14 = smul.u32 (%p4552_p11), 13, %s5457_s27 }
  0x97   : > { %v3685_v7 = vld [vmem:[#allocation7 + $0x58] sm:$0xff]  ;;  %v3675_v15 = vld [vmem:[#allocation7 + $0x8] sm:$0xff]  ;;  %v3674_v20 = vld [vmem:[#allocation7] sm:$0xff] }
  0x98   : > { %813 = vmatpush.bf16.msra.mxu0 %v3121_v23  ;;  %856 = vmatpush.bf16.msra.mxu1 %v3125_v24  ;;  %v804_v2 = vsel %vm796_vm0, %v748_v60, 0  ;;  %v594_v10 = vld [vmem:[%s4705_s24 + $0x30] sm:$0xff]  ;;  %v595_v11 = vld [vmem:[%s4705_s24 + $0x38] sm:$0xff]  ;;  %v3683_v16 = vld [vmem:[#allocation7 + $0x48] sm:$0xff]  ;;  %s2859_s23 = ssub.s32 (%p4552_p11), 25, %s2858_s14 }
  0x99   : > { %3790 = vmatpush.bf16.msra.mxu2 %v3121_v23  ;;  %3797 = vmatpush.bf16.msra.mxu3 %v3125_v24  ;;  %v4780_v13 = vpack.c.bf16 %v595_v11, %v594_v10  ;;  %v3160_v17 = vld [vmem:[#allocation5 + $0xa8] sm:$0xf]  ;;  %v3673_v18 = vld [vmem:[#allocation5 + $0xb4] sm:$0xf0]  ;;  %v3682_v21 = vld [vmem:[#allocation7 + $0x40] sm:$0xff]  ;;  %p2860_p3 = scmp.lt.s32.totalorder (%p4552_p11), %s2859_s23, 13 }
  0x9a   : > { %v3161_v19 = vor.u32 %v3673_v18, %v3160_v17  ;;  %v3144_v22 = vld [vmem:[#allocation5 + $0x88] sm:$0xf]  ;;  %v3669_v23 = vld [vmem:[#allocation5 + $0x94] sm:$0xf0]  ;;  %v3696_v17 = vld [vmem:[#allocation8 + $0x30] sm:$0xff] }
  0x9b   : > { %v3145_v24 = vor.u32 %v3669_v23, %v3144_v22  ;;  %v3128_v25 = vld [vmem:[#allocation5 + $0x68] sm:$0xf]  ;;  %v3665_v26 = vld [vmem:[#allocation5 + $0x74] sm:$0xf0] }
  0x9c   : > { %814 = vmatpush.bf16.msra.mxu0 %v3105_v29  ;;  %857 = vmatpush.bf16.msra.mxu1 %v3109_v30  ;;  %v3129_v27 = vor.u32 %v3665_v26, %v3128_v25  ;;  %v3112_v28 = vld [vmem:[#allocation5 + $0x48] sm:$0xf]  ;;  %v3657_v32 = vld [vmem:[#allocation5 + $0x34] sm:$0xf0] }
  0x9d   : > { %3791 = vmatpush.bf16.msra.mxu2 %v3105_v29  ;;  %3798 = vmatpush.bf16.msra.mxu3 %v3109_v30  ;;  %v3661_v29 = vld [vmem:[#allocation5 + $0x54] sm:$0xf0]  ;;  %v3096_v31 = vld [vmem:[#allocation5 + $0x28] sm:$0xf] }
  0x9e   : > { %v3113_v30 = vor.u32 %v3661_v29, %v3112_v28  ;;  %v4792_v33 = vld [vmem:[#allocation19] ss:$8 sm:$0xf]  ;;  %v3097_v34 = vor.u32 %v3657_v32, %v3096_v31 }
  0x9f   : > { %v4795_v37 = vperm.slane %v4792_v33, 0  ;;  %v4798_v38 = vperm.slane %v4792_v33, 1  ;;  %v3080_v39 = vld [vmem:[#allocation5 + $0x8] sm:$0xf]  ;;  %v3653_v40 = vld [vmem:[#allocation5 + $0x14] sm:$0xf0] }
  0xa0   : > { %815 = vmatpush.bf16.msra.mxu0 %v3089_v35  ;;  %858 = vmatpush.bf16.msra.mxu1 %v3093_v36  ;;  %v3695_v26 = vld [vmem:[#allocation8 + $0x28] sm:$0xff] }
  0xa1   : > { %3792 = vmatpush.bf16.msra.mxu2 %v3089_v35  ;;  %3799 = vmatpush.bf16.msra.mxu3 %v3093_v36 }
  0xa4   : > { %816 = vmatpush.bf16.msra.mxu0 %v3073_v41  ;;  %859 = vmatpush.bf16.msra.mxu1 %v3077_v42 }
  0xa5   : > { %3793 = vmatpush.bf16.msra.mxu2 %v3073_v41  ;;  %3800 = vmatpush.bf16.msra.mxu3 %v3077_v42  ;;  %v3081_v41 = vor.u32 %v3653_v40, %v3080_v39 }
  0xa7   : > { %3166 = vmatmul.msk.bf16.vlgmr.msra.gmra.mxu0 %vm774_vm1, %v4735_v45  ;;  %3173 = vmatmul.msk.bf16.vlgmr.msra.gmra.mxu1 %vm774_vm1, %v4735_v45 }
  0xa8   : > { %3170 = vmatmul.msk.bf16.vlgmr.msra.gmra.mxu2 %vm774_vm1, %v4747_v51  ;;  %3177 = vmatmul.msk.bf16.vlgmr.msra.gmra.mxu3 %vm774_vm1, %v4747_v51 }
  0xa9   : > { %1202 = vmatpush.bf16.msrb.mxu0 %v3681_v52  ;;  %1245 = vmatpush.bf16.msrb.mxu1 %v3689_v53 }
  0xaa   : > { %896 = vmatpush.bf16.msrb.mxu2 %v804_v2 }
  0xad   : > { %1203 = vmatpush.bf16.msrb.mxu0 %v3680_v54  ;;  %1246 = vmatpush.bf16.msrb.mxu1 %v3688_v55  ;;  %v3697_v55 = vld [vmem:[#allocation8 + $0x38] sm:$0xff] }
  0xae   : > { %897 = vmatpush.bf16.msrb.mxu2 %v3161_v19 }
  0xb1   : > { %1204 = vmatpush.bf16.msrb.mxu0 %v3679_v57  ;;  %1247 = vmatpush.bf16.msrb.mxu1 %v3687_v59 }
  0xb2   : > { %898 = vmatpush.bf16.msrb.mxu2 %v3145_v24 }
  0xb5   : > { %1205 = vmatpush.bf16.msrb.mxu0 %v3678_v1  ;;  %1248 = vmatpush.bf16.msrb.mxu1 %v3686_v3 }
  0xb6   : > { %899 = vmatpush.bf16.msrb.mxu2 %v3129_v27 }
  0xb7   : > { %3167 = vmatmul.msk.bf16.gmra.mxu0 %vm774_vm1, %v4743_v48  ;;  %3174 = vmatmul.msk.bf16.gmra.mxu1 %vm774_vm1, %v4743_v48 }
  0xb8   : > { %3171 = vmatmul.msk.bf16.gmra.mxu2 %vm774_vm1, %v4767_v5  ;;  %3178 = vmatmul.msk.bf16.gmra.mxu3 %vm774_vm1, %v4767_v5 }
  0xb9   : > { %1206 = vmatpush.bf16.msrb.mxu0 %v3677_v6  ;;  %1249 = vmatpush.bf16.msrb.mxu1 %v3685_v7 }
  0xba   : > { %900 = vmatpush.bf16.msrb.mxu2 %v3113_v30 }
  0xbd   : > { %1207 = vmatpush.bf16.msrb.mxu0 %v3676_v8  ;;  %1250 = vmatpush.bf16.msrb.mxu1 %v3684_v9 }
  0xbe   : > { %901 = vmatpush.bf16.msrb.mxu2 %v3097_v34 }
  0xc1   : > { %1208 = vmatpush.bf16.msrb.mxu0 %v3675_v15  ;;  %1251 = vmatpush.bf16.msrb.mxu1 %v3683_v16 }
  0xc2   : > { %902 = vmatpush.bf16.msrb.mxu2 %v3081_v41 }
  0xc5   : > { %1209 = vmatpush.bf16.msrb.mxu0 %v3674_v20  ;;  %1252 = vmatpush.bf16.msrb.mxu1 %v3682_v21 }
  0xc6   : > { %1399 = vmatpush.bf16.msra.mxu2 %v3697_v55  ;;  %v3694_v55 = vld [vmem:[#allocation8 + $0x20] sm:$0xff] }
  0xc7   : > { %3168 = vmatmul.msk.bf16.gmra.mxu0 %vm774_vm1, %v4765_v4  ;;  %3175 = vmatmul.msk.bf16.gmra.mxu1 %vm774_vm1, %v4765_v4 }
  0xc8   : > { %3172 = vmatmul.msk.bf16.gmra.mxu2 %vm774_vm1, %v4782_v14  ;;  %3179 = vmatmul.msk.bf16.gmra.mxu3 %vm774_vm1, %v4782_v14 }
  0xca   : > { %1400 = vmatpush.bf16.msra.mxu2 %v3696_v17  ;;  %v3693_v17 = vld [vmem:[#allocation8 + $0x18] sm:$0xff] }
  0xce   : > { %1401 = vmatpush.bf16.msra.mxu2 %v3695_v26 }
  0xd2   : > { %1402 = vmatpush.bf16.msra.mxu2 %v3694_v55 }
  0xd6   : > { %1403 = vmatpush.bf16.msra.mxu2 %v3693_v17 }
  0xd7   : > { %3169 = vmatmul.msk.bf16.gmra.mxu0 %vm774_vm1, %v4780_v13  ;;  %3176 = vmatmul.msk.bf16.gmra.mxu1 %vm774_vm1, %v4780_v13 }
  0xd8   : > { %3180 = vmatmul.msk.bf16.vlgmr.msrb.gmra.mxu2 %vm774_vm1, %v4735_v45 }
  0xe8   : > { %3181 = vmatmul.msk.bf16.gmra.mxu2 %vm774_vm1, %v4743_v48 }
  0xf8   : > { %3182 = vmatmul.msk.bf16.gmra.mxu2 %vm774_vm1, %v4765_v4 }
 0x108   : > { %3183 = vmatmul.msk.bf16.gmra.mxu2 %vm774_vm1, %v4780_v13 }
 0x118   : > { %3184 = vmatmul.msk.bf16.gmra.mxu2 %vm774_vm1, %v4747_v51 }
 0x124   : > { %v818_v35 = vpop.f32.mrf.mxu0  ;;  %v861_v36 = vpop.f32.mrf.mxu1 }
 0x125   : > { %v819_v42 = vadd.f32 %v818_v35, %v4795_v37  ;;  %v862_v43 = vadd.f32 %v861_v36, %v4798_v38 }
 0x127   : > { %v1007_v47 = vmul.f32 0.22916667, %v819_v42  ;;  %v1008_v49 = vmul.f32 0.22916667, %v862_v43  ;;  %vm981_vm2 = vcmp.ge.f32.partialorder %v819_v42, 0.0  ;;  %vm982_vm3 = vcmp.ge.f32.partialorder %v862_v43, 0.0 }
 0x128   : > { %3185 = vmatmul.msk.bf16.gmra.mxu2 %vm774_vm1, %v4767_v5 }
 0x129   : > { %v1033_v57 = vsel %vm981_vm2, %v819_v42, %v1007_v47  ;;  %v1034_v59 = vsel %vm982_vm3, %v862_v43, %v1008_v49 }
 0x12b   : > { %v4812_v11 = vpop.f32.mrf.mxu2  ;;  %v4814_v12 = vpop.f32.mrf.mxu3 }
 0x12c   : > { %v820_v44 = vpop.f32.mrf.mxu0  ;;  %v863_v46 = vpop.f32.mrf.mxu1 }
 0x12d   : > { %v821_v50 = vadd.f32 %v820_v44, %v4795_v37  ;;  %v864_v52 = vadd.f32 %v863_v46, %v4798_v38 }
 0x12f   : > { %vm983_vm4 = vcmp.ge.f32.partialorder %v821_v50, 0.0  ;;  %v1009_v53 = vmul.f32 0.22916667, %v821_v50  ;;  %vm984_vm5 = vcmp.ge.f32.partialorder %v864_v52, 0.0  ;;  %v1010_v54 = vmul.f32 0.22916667, %v864_v52 }
 0x131   : > { %v1035_v58 = vsel %vm983_vm4, %v821_v50, %v1009_v53  ;;  %v1036_v60 = vsel %vm984_vm5, %v864_v52, %v1010_v54 }
 0x132   : > { %v1059_v61 = vpack.c.bf16 %v1035_v58, %v1033_v57  ;;  %v1060_v62 = vpack.c.bf16 %v1036_v60, %v1034_v59 }
 0x133   : > { %v4816_v27 = vpop.f32.mrf.mxu2  ;;  %v4818_v28 = vpop.f32.mrf.mxu3 }
 0x134   : > { %v823_v63 = vpop.f32.mrf.mxu0  ;;  %v866_v0 = vpop.f32.mrf.mxu1  ;;  %1210 = vmatmul.bf16.vlgmr.msrb.gmra.mxu0 %v1059_v61  ;;  %1253 = vmatmul.bf16.vlgmr.msrb.gmra.mxu1 %v1060_v62 }
 0x135   : > { %v824_v1 = vadd.f32 %v823_v63, %v4795_v37  ;;  %v867_v2 = vadd.f32 %v866_v0, %v4798_v38 }
 0x137   : > { %v1011_v7 = vmul.f32 0.22916667, %v824_v1  ;;  %v1012_v8 = vmul.f32 0.22916667, %v867_v2  ;;  %vm985_vm6 = vcmp.ge.f32.partialorder %v824_v1, 0.0  ;;  %vm986_vm7 = vcmp.ge.f32.partialorder %v867_v2, 0.0 }
 0x138   : > { %3186 = vmatmul.msk.bf16.gmra.mxu2 %vm774_vm1, %v4782_v14 }
 0x139   : > { %v1037_v18 = vsel %vm985_vm6, %v824_v1, %v1011_v7  ;;  %v1038_v20 = vsel %vm986_vm7, %v867_v2, %v1012_v8 }
 0x13b   : > { %v4826_v47 = vpop.f32.mrf.mxu2  ;;  %v4828_v49 = vpop.f32.mrf.mxu3 }
 0x13c   : > { %v825_v3 = vpop.f32.mrf.mxu0  ;;  %v868_v6 = vpop.f32.mrf.mxu1 }
 0x13d   : > { %v826_v9 = vadd.f32 %v825_v3, %v4795_v37  ;;  %v869_v10 = vadd.f32 %v868_v6, %v4798_v38 }
 0x13f   : > { %v1013_v15 = vmul.f32 0.22916667, %v826_v9  ;;  %v1014_v16 = vmul.f32 0.22916667, %v869_v10  ;;  %vm987_vm8 = vcmp.ge.f32.partialorder %v826_v9, 0.0  ;;  %vm988_vm9 = vcmp.ge.f32.partialorder %v869_v10, 0.0 }
 0x141   : > { %v1039_v19 = vsel %vm987_vm8, %v826_v9, %v1013_v15  ;;  %v1040_v21 = vsel %vm988_vm9, %v869_v10, %v1014_v16 }
 0x142   : > { %v1061_v22 = vpack.c.bf16 %v1039_v19, %v1037_v18  ;;  %v1062_v23 = vpack.c.bf16 %v1040_v21, %v1038_v20  ;;  %v839_v20 = vadd.f32 %v4812_v11, %v4795_v37  ;;  %v3692_v21 = vld [vmem:[#allocation8 + $0x10] sm:$0xff] }
 0x143   : > { %v845_v59 = vpop.f32.mrf.mxu2  ;;  %v888_v60 = vpop.f32.mrf.mxu3  ;;  %1404 = vmatpush.bf16.msra.mxu2 %v3692_v21 }
 0x144   : > { %v828_v24 = vpop.f32.mrf.mxu0  ;;  %v871_v25 = vpop.f32.mrf.mxu1  ;;  %1215 = vmatmul.bf16.gmra.mxu0 %v1061_v22  ;;  %1258 = vmatmul.bf16.gmra.mxu1 %v1062_v23  ;;  %v882_v22 = vadd.f32 %v4814_v12, %v4798_v38  ;;  %v841_v23 = vadd.f32 %v4816_v27, %v4795_v37  ;;  %vm997_vm4 = vcmp.ge.f32.partialorder %v839_v20, 0.0 }
 0x145   : > { %v829_v29 = vadd.f32 %v828_v24, %v4795_v37  ;;  %v872_v30 = vadd.f32 %v871_v25, %v4798_v38  ;;  %v884_v24 = vadd.f32 %v4818_v28, %v4798_v38  ;;  %v1023_v25 = vmul.f32 0.22916667, %v839_v20 }
 0x146   : > { %v1024_v26 = vmul.f32 0.22916667, %v882_v22  ;;  %vm999_vm5 = vcmp.ge.f32.partialorder %v841_v23, 0.0  ;;  %vm998_vm6 = vcmp.ge.f32.partialorder %v882_v22, 0.0 }
 0x147   : > { %v1015_v34 = vmul.f32 0.22916667, %v829_v29  ;;  %v1016_v35 = vmul.f32 0.22916667, %v872_v30  ;;  %vm989_vm10 = vcmp.ge.f32.partialorder %v829_v29, 0.0  ;;  %vm990_vm11 = vcmp.ge.f32.partialorder %v872_v30, 0.0 }
 0x148   : > { %vm1000_vm7 = vcmp.ge.f32.partialorder %v884_v24, 0.0  ;;  %v1050_v27 = vsel %vm998_vm6, %v882_v22, %v1024_v26  ;;  %v3098_v26 = vld [vmem:[#allocation5 + $0x38] sm:$0xf0] }
 0x149   : > { %v1041_v42 = vsel %vm989_vm10, %v829_v29, %v1015_v34  ;;  %v1042_v44 = vsel %vm990_vm11, %v872_v30, %v1016_v35  ;;  %v1025_v29 = vmul.f32 0.22916667, %v841_v23  ;;  %v1026_v30 = vmul.f32 0.22916667, %v884_v24 }
 0x14b   : > { %v848_v18 = vpop.f32.mrf.mxu2  ;;  %v891_v19 = vpop.f32.mrf.mxu3  ;;  %v1052_v34 = vsel %vm1000_vm7, %v884_v24, %v1026_v30 }
 0x14c   : > { %v830_v31 = vpop.f32.mrf.mxu0  ;;  %v873_v32 = vpop.f32.mrf.mxu1  ;;  %v1068_v28 = vpack.c.bf16 %v1052_v34, %v1050_v27 }
 0x14d   : > { %v831_v36 = vadd.f32 %v830_v31, %v4795_v37  ;;  %v874_v39 = vadd.f32 %v873_v32, %v4798_v38  ;;  %v1049_v31 = vsel %vm997_vm4, %v839_v20, %v1023_v25  ;;  %v1051_v32 = vsel %vm999_vm5, %v841_v23, %v1025_v29  ;;  %v4862_v20 = vld [vmem:[#allocation19 + $0x1] ss:$0 sm:$0xff]  ;;  %v3655_v25 = vld [vmem:[#allocation5 + $0x2c] sm:$0xf] }
 0x14e   : > { %v1067_v35 = vpack.c.bf16 %v1051_v32, %v1049_v31  ;;  %v3101_v29 = vor.u32 %v3655_v25, %v3098_v26  ;;  %v3082_v31 = vld [vmem:[#allocation5 + $0x18] sm:$0xf0] }
 0x14f   : > { %v1017_v40 = vmul.f32 0.22916667, %v831_v36  ;;  %v1018_v41 = vmul.f32 0.22916667, %v874_v39  ;;  %vm991_vm12 = vcmp.ge.f32.partialorder %v831_v36, 0.0  ;;  %vm992_vm13 = vcmp.ge.f32.partialorder %v874_v39, 0.0 }
 0x151   : > { %v1043_v43 = vsel %vm991_vm12, %v831_v36, %v1017_v40  ;;  %v1044_v46 = vsel %vm992_vm13, %v874_v39, %v1018_v41  ;;  %v3691_v36 = vld [vmem:[#allocation8 + $0x8] sm:$0xff]  ;;  %v844_v39 = vadd.f32 %v4826_v47, %v4795_v37  ;;  %v887_v40 = vadd.f32 %v4828_v49, %v4798_v38 }
 0x152   : > { %v1063_v50 = vpack.c.bf16 %v1043_v43, %v1041_v42  ;;  %v1064_v52 = vpack.c.bf16 %v1044_v46, %v1042_v44  ;;  %1405 = vmatpush.bf16.msra.mxu2 %v3691_v36  ;;  %v846_v41 = vadd.f32 %v845_v59, %v4795_v37  ;;  %v889_v42 = vadd.f32 %v888_v60, %v4798_v38 }
 0x153   : > { %v850_v11 = vpop.f32.mrf.mxu2  ;;  %v893_v12 = vpop.f32.mrf.mxu3  ;;  %v1027_v43 = vmul.f32 0.22916667, %v844_v39  ;;  %v1028_v44 = vmul.f32 0.22916667, %v887_v40  ;;  %vm1001_vm8 = vcmp.ge.f32.partialorder %v844_v39, 0.0  ;;  %vm1002_vm10 = vcmp.ge.f32.partialorder %v887_v40, 0.0 }
 0x154   : > { %v833_v53 = vpop.f32.mrf.mxu0  ;;  %v876_v54 = vpop.f32.mrf.mxu1  ;;  %1220 = vmatmul.bf16.gmra.mxu0 %v1063_v50  ;;  %1263 = vmatmul.bf16.gmra.mxu1 %v1064_v52  ;;  %v1029_v46 = vmul.f32 0.22916667, %v846_v41  ;;  %v1030_v50 = vmul.f32 0.22916667, %v889_v42  ;;  %vm1003_vm9 = vcmp.ge.f32.partialorder %v846_v41, 0.0  ;;  %vm1004_vm11 = vcmp.ge.f32.partialorder %v889_v42, 0.0 }
 0x155   : > { %v834_v57 = vadd.f32 %v833_v53, %v4795_v37  ;;  %v877_v58 = vadd.f32 %v876_v54, %v4798_v38  ;;  %v1053_v47 = vsel %vm1001_vm8, %v844_v39, %v1027_v43  ;;  %v1054_v53 = vsel %vm1002_vm10, %v887_v40, %v1028_v44  ;;  %v3651_v12 = vld [vmem:[#allocation5 + $0xc] sm:$0xf] }
 0x156   : > { %v1055_v52 = vsel %vm1003_vm9, %v846_v41, %v1029_v46  ;;  %v1056_v54 = vsel %vm1004_vm11, %v889_v42, %v1030_v50  ;;  %v3085_v34 = vor.u32 %v3651_v12, %v3082_v31 }
 0x157   : > { %v1019_v63 = vmul.f32 0.22916667, %v834_v57  ;;  %v1020_v0 = vmul.f32 0.22916667, %v877_v58  ;;  %vm993_vm14 = vcmp.ge.f32.partialorder %v834_v57, 0.0  ;;  %vm994_vm15 = vcmp.ge.f32.partialorder %v877_v58, 0.0 }
 0x158   : > { %v1069_v49 = vpack.c.bf16 %v1055_v52, %v1053_v47  ;;  %v1070_v55 = vpack.c.bf16 %v1056_v54, %v1054_v53  ;;  %v3705_v52 = vld [vmem:[#allocation10 + $0x38] sm:$0xff] }
 0x159   : > { %v1045_v7 = vsel %vm993_vm14, %v834_v57, %v1019_v63  ;;  %v1046_v9 = vsel %vm994_vm15, %v877_v58, %v1020_v0  ;;  %v849_v57 = vadd.f32 %v848_v18, %v4795_v37  ;;  %v892_v58 = vadd.f32 %v891_v19, %v4798_v38  ;;  %v3114_v19 = vld [vmem:[#allocation5 + $0x58] sm:$0xf0] }
 0x15b   : > { %v1031_v59 = vmul.f32 0.22916667, %v849_v57  ;;  %v1032_v60 = vmul.f32 0.22916667, %v892_v58  ;;  %vm1005_vm12 = vcmp.ge.f32.partialorder %v849_v57, 0.0  ;;  %vm1006_vm13 = vcmp.ge.f32.partialorder %v892_v58, 0.0  ;;  %v4860_v18 = vpop.f32.mrf.mxu2 }
 0x15c   : > { %v835_v61 = vpop.f32.mrf.mxu0  ;;  %v878_v62 = vpop.f32.mrf.mxu1 }
 0x15d   : > { %v836_v1 = vadd.f32 %v835_v61, %v4795_v37  ;;  %v879_v2 = vadd.f32 %v878_v62, %v4798_v38  ;;  %v1057_v61 = vsel %vm1005_vm12, %v849_v57, %v1031_v59  ;;  %v1058_v62 = vsel %vm1006_vm13, %v892_v58, %v1032_v60 }
 0x15e   : > { %v1071_v63 = vpack.c.bf16 %v1057_v61, %v1057_v61  ;;  %v1072_v0 = vpack.c.bf16 %v1058_v62, %v1058_v62 }
 0x15f   : > { %v1021_v3 = vmul.f32 0.22916667, %v836_v1  ;;  %v1022_v6 = vmul.f32 0.22916667, %v879_v2  ;;  %vm995_vm2 = vcmp.ge.f32.partialorder %v836_v1, 0.0  ;;  %vm996_vm3 = vcmp.ge.f32.partialorder %v879_v2, 0.0 }
 0x161   : > { %v1047_v8 = vsel %vm995_vm2, %v836_v1, %v1021_v3  ;;  %v1048_v10 = vsel %vm996_vm3, %v879_v2, %v1022_v6  ;;  %v3690_v1 = vld [vmem:[#allocation8] sm:$0xff]  ;;  %v721_v2 = vunpack.c.h.b16 %v4757_v56  ;;  %v3671_v3 = vld [vmem:[#allocation5 + $0xac] sm:$0xf]  ;;  %v3162_v6 = vld [vmem:[#allocation5 + $0xb8] sm:$0xf0] }
 0x162   : > { %v1065_v15 = vpack.c.bf16 %v1047_v8, %v1045_v7  ;;  %v1066_v16 = vpack.c.bf16 %v1048_v10, %v1046_v9  ;;  %1406 = vmatpush.bf16.msra.mxu2 %v3690_v1  ;;  %v3165_v7 = vor.u32 %v3671_v3, %v3162_v6  ;;  %v3667_v8 = vld [vmem:[#allocation5 + $0x8c] sm:$0xf]  ;;  %v3146_v9 = vld [vmem:[#allocation5 + $0x98] sm:$0xf0] }
 0x163   : > { %v749_v37 = vpack.c.b16 %v721_v2, %v721_v2  ;;  %v3149_v10 = vor.u32 %v3667_v8, %v3146_v9  ;;  %v3659_v56 = vld [vmem:[#allocation5 + $0x4c] sm:$0xf]  ;;  %v4865_v30 = vpop.f32.mrf.mxu2  ;;  %v3704_v2 = vld [vmem:[#allocation10 + $0x30] sm:$0xff] }
 0x164   : > { %1225 = vmatmul.bf16.gmra.mxu0 %v1065_v15  ;;  %1268 = vmatmul.bf16.gmra.mxu1 %v1066_v16  ;;  %v3663_v15 = vld [vmem:[#allocation5 + $0x6c] sm:$0xf]  ;;  %v3130_v16 = vld [vmem:[#allocation5 + $0x78] sm:$0xf0]  ;;  %v3117_v23 = vor.u32 %v3659_v56, %v3114_v19 }
 0x165   : > { %v807_v38 = vsel %vm796_vm0, %v749_v37, 0  ;;  %v3133_v17 = vor.u32 %v3663_v15, %v3130_v16 }
 0x166   : > { %939 = vmatpush.bf16.msrb.mxu3 %v807_v38 }
 0x16a   : > { %940 = vmatpush.bf16.msrb.mxu3 %v3165_v7 }
 0x16b   : > { %v4868_v40 = vpop.f32.mrf.mxu2 }
 0x16e   : > { %941 = vmatpush.bf16.msrb.mxu3 %v3149_v10 }
 0x172   : > { %942 = vmatpush.bf16.msrb.mxu3 %v3133_v17 }
 0x173   : > { %v4873_v47 = vpop.f32.mrf.mxu2 }
 0x174   : > { %1230 = vmatmul.bf16.gmra.mxu0 %v1067_v35  ;;  %1273 = vmatmul.bf16.gmra.mxu1 %v1068_v28 }
 0x176   : > { %943 = vmatpush.bf16.msrb.mxu3 %v3117_v23 }
 0x17a   : > { %944 = vmatpush.bf16.msrb.mxu3 %v3101_v29 }
 0x17b   : > { %v4876_v59 = vpop.f32.mrf.mxu2 }
 0x17e   : > { %945 = vmatpush.bf16.msrb.mxu3 %v3085_v34 }
 0x181   : > { %3187 = vmatmul.msk.bf16.vlgmr.msrb.gmra.mxu3 %vm774_vm1, %v4735_v45 }
 0x182   : > { %1553 = vmatpush.bf16.msra.mxu3 %v3705_v52 }
 0x183   : > { %v4881_v37 = vpop.f32.mrf.mxu2 }
 0x184   : > { %1235 = vmatmul.bf16.gmra.mxu0 %v1069_v49  ;;  %1278 = vmatmul.bf16.gmra.mxu1 %v1070_v55 }
 0x186   : > { %1554 = vmatpush.bf16.msra.mxu3 %v3704_v2 }
 0x18b   : > { %v4884_v10 = vpop.f32.mrf.mxu2 }
 0x191   : > { %3188 = vmatmul.msk.bf16.gmra.mxu3 %vm774_vm1, %v4743_v48 }
 0x193   : > { %v4889_v23 = vpop.f32.mrf.mxu2 }
 0x194   : > { %1240 = vmatmul.bf16.gmra.mxu0 %v1071_v63  ;;  %1283 = vmatmul.bf16.gmra.mxu1 %v1072_v0 }
 0x19b   : > { %v4892_v31 = vpop.f32.mrf.mxu2 }
 0x1a1   : > { %3189 = vmatmul.msk.bf16.gmra.mxu3 %vm774_vm1, %v4765_v4 }
 0x1a3   : > { %v4897_v52 = vpop.f32.mrf.mxu2 }
 0x1ab   : > { %v4900_v2 = vpop.f32.mrf.mxu2 }
 0x1b1   : > { %v1211_v21 = vpop.f32.mrf.mxu0  ;;  %v1254_v22 = vpop.f32.mrf.mxu1  ;;  %3190 = vmatmul.msk.bf16.gmra.mxu3 %vm774_vm1, %v4780_v13  ;;  %v3428_v13 = vld [vmem:[#allocation11 + $0x50] sm:$0xf] }
 0x1b2   : > { %v1212_v24 = vadd.f32 %v1211_v21, %v4862_v20 }
 0x1b4   : > { %v1255_v11 = vadd.f32 %v1254_v22, %v1212_v24  ;;  %v3703_v22 = vld [vmem:[#allocation10 + $0x28] sm:$0xff] }
 0x1b5   : > { %1555 = vmatpush.bf16.msra.mxu3 %v3703_v22  ;;  %v3396_v22 = vld [vmem:[#allocation11 + $0x10] sm:$0xf] }
 0x1b6   : > { %v1301_v28 = vmul.f32 0.22916667, %v1255_v11  ;;  %vm1288_vm0 = vcmp.ge.f32.partialorder %v1255_v11, 0.0 }
 0x1b8   : > { %v1314_v41 = vsel %vm1288_vm0, %v1255_v11, %v1301_v28 }
 0x1b9   : > { %v1213_v32 = vpop.f32.mrf.mxu0  ;;  %v1256_v27 = vpop.f32.mrf.mxu1 }
 0x1ba   : > { %v1214_v35 = vadd.f32 %v1213_v32, %v4862_v20  ;;  %v3702_v32 = vld [vmem:[#allocation10 + $0x20] sm:$0xff] }
 0x1bb   : > { %1556 = vmatpush.bf16.msra.mxu3 %v3702_v32 }
 0x1bc   : > { %v1257_v36 = vadd.f32 %v1256_v27, %v1214_v35 }
 0x1be   : > { %vm1289_vm14 = vcmp.ge.f32.partialorder %v1257_v36, 0.0  ;;  %v1302_v39 = vmul.f32 0.22916667, %v1257_v36 }
 0x1c0   : > { %v1315_v42 = vsel %vm1289_vm14, %v1257_v36, %v1302_v39  ;;  %v3444_v39 = vld [vmem:[#allocation11 + $0x70] sm:$0xf] }
 0x1c1   : > { %v1327_v43 = vpack.c.bf16 %v1315_v42, %v1314_v41  ;;  %v1216_v44 = vpop.f32.mrf.mxu0  ;;  %v1259_v46 = vpop.f32.mrf.mxu1  ;;  %v3721_v41 = vld [vmem:[#allocation11 + $0x74] sm:$0xf0]  ;;  %3191 = vmatmul.msk.bf16.gmra.mxu3 %vm774_vm1, %v4747_v51 }
 0x1c2   : > { %v1217_v50 = vadd.f32 %v1216_v44, %v4862_v20  ;;  %v3445_v42 = vor.u32 %v3721_v41, %v3444_v39  ;;  %v3719_v44 = vld [vmem:[#allocation11 + $0x64] sm:$0xf0]  ;;  %v3709_v51 = vld [vmem:[#allocation11 + $0x14] sm:$0xf0] }
 0x1c3   : > { %1407 = vmatmul.bf16.vlgmr.msra.gmra.mxu2 %v1327_v43  ;;  %v3436_v43 = vld [vmem:[#allocation11 + $0x60] sm:$0xf] }
 0x1c4   : > { %v1260_v53 = vadd.f32 %v1259_v46, %v1217_v50  ;;  %2004 = vmatpush.bf16.msrb.mxu2 %v3445_v42  ;;  %v3437_v50 = vor.u32 %v3719_v44, %v3436_v43 }
 0x1c6   : > { %v1303_v57 = vmul.f32 0.22916667, %v1260_v53  ;;  %vm1290_vm15 = vcmp.ge.f32.partialorder %v1260_v53, 0.0 }
 0x1c8   : > { %v1316_v60 = vsel %vm1290_vm15, %v1260_v53, %v1303_v57  ;;  %v3701_v53 = vld [vmem:[#allocation10 + $0x18] sm:$0xff]  ;;  %2005 = vmatpush.bf16.msrb.mxu2 %v3437_v50  ;;  %v3699_v50 = vld [vmem:[#allocation10 + $0x8] sm:$0xff] }
 0x1c9   : > { %v1218_v54 = vpop.f32.mrf.mxu0  ;;  %v1261_v49 = vpop.f32.mrf.mxu1  ;;  %1557 = vmatpush.bf16.msra.mxu3 %v3701_v53 }
 0x1ca   : > { %v1219_v55 = vadd.f32 %v1218_v54, %v4862_v20  ;;  %v3717_v54 = vld [vmem:[#allocation11 + $0x54] sm:$0xf0] }
 0x1cc   : > { %v1262_v58 = vadd.f32 %v1261_v49, %v1219_v55  ;;  %v3429_v55 = vor.u32 %v3717_v54, %v3428_v13 }
 0x1ce   : > { %v1304_v45 = vmul.f32 0.22916667, %v1262_v58  ;;  %vm1291_vm2 = vcmp.ge.f32.partialorder %v1262_v58, 0.0  ;;  %2006 = vmatpush.bf16.msrb.mxu2 %v3429_v55 }
 0x1d0   : > { %v1317_v61 = vsel %vm1291_vm2, %v1262_v58, %v1304_v45  ;;  %v3420_v45 = vld [vmem:[#allocation11 + $0x40] sm:$0xf] }
 0x1d1   : > { %v1221_v62 = vpop.f32.mrf.mxu0  ;;  %v1264_v63 = vpop.f32.mrf.mxu1  ;;  %v1328_v0 = vpack.c.bf16 %v1317_v61, %v1316_v60  ;;  %v3715_v60 = vld [vmem:[#allocation11 + $0x44] sm:$0xf0]  ;;  %3192 = vmatmul.msk.bf16.gmra.mxu3 %vm774_vm1, %v4767_v5 }
 0x1d2   : > { %v1222_v1 = vadd.f32 %v1221_v62, %v4862_v20 }
 0x1d3   : > { %1412 = vmatmul.bf16.gmra.mxu2 %v1328_v0  ;;  %v3421_v0 = vor.u32 %v3715_v60, %v3420_v45  ;;  %v3698_v45 = vld [vmem:[#allocation10] sm:$0xff] }
 0x1d4   : > { %v1265_v38 = vadd.f32 %v1264_v63, %v1222_v1 }
 0x1d5   : > { %2007 = vmatpush.bf16.msrb.mxu2 %v3421_v0  ;;  %v4934_v0 = vld [vmem:[#allocation19 + $0x2] ss:$0 sm:$0xff] }
 0x1d6   : > { %v1305_v8 = vmul.f32 0.22916667, %v1265_v38  ;;  %vm1292_vm3 = vcmp.ge.f32.partialorder %v1265_v38, 0.0 }
 0x1d8   : > { %v1318_v15 = vsel %vm1292_vm3, %v1265_v38, %v1305_v8 }
 0x1d9   : > { %v1223_v3 = vpop.f32.mrf.mxu0  ;;  %v1266_v6 = vpop.f32.mrf.mxu1 }
 0x1da   : > { %v1224_v7 = vadd.f32 %v1223_v3, %v4862_v20 }
 0x1dc   : > { %v1267_v9 = vadd.f32 %v1266_v6, %v1224_v7 }
 0x1de   : > { %vm1293_vm4 = vcmp.ge.f32.partialorder %v1267_v9, 0.0  ;;  %v1306_v48 = vmul.f32 0.22916667, %v1267_v9 }
 0x1e0   : > { %v1319_v16 = vsel %vm1293_vm4, %v1267_v9, %v1306_v48  ;;  %v3412_v9 = vld [vmem:[#allocation11 + $0x30] sm:$0xf]  ;;  %v3713_v48 = vld [vmem:[#allocation11 + $0x34] sm:$0xf0] }
 0x1e1   : > { %v1226_v17 = vpop.f32.mrf.mxu0  ;;  %v1269_v56 = vpop.f32.mrf.mxu1  ;;  %v1329_v19 = vpack.c.bf16 %v1319_v16, %v1318_v15  ;;  %v3413_v15 = vor.u32 %v3713_v48, %v3412_v9  ;;  %v3404_v16 = vld [vmem:[#allocation11 + $0x20] sm:$0xf]  ;;  %3193 = vmatmul.msk.bf16.gmra.mxu3 %vm774_vm1, %v4782_v14 }
 0x1e2   : > { %v1227_v21 = vadd.f32 %v1226_v17, %v4862_v20  ;;  %v3711_v17 = vld [vmem:[#allocation11 + $0x24] sm:$0xf0] }
 0x1e3   : > { %1417 = vmatmul.bf16.gmra.mxu2 %v1329_v19 }
 0x1e4   : > { %v1270_v24 = vadd.f32 %v1269_v56, %v1227_v21  ;;  %v3700_v56 = vld [vmem:[#allocation10 + $0x10] sm:$0xff]  ;;  %2008 = vmatpush.bf16.msrb.mxu2 %v3413_v15  ;;  %v3405_v21 = vor.u32 %v3711_v17, %v3404_v16 }
 0x1e5   : > { %1558 = vmatpush.bf16.msra.mxu3 %v3700_v56  ;;  %v3753_v56 = vld [vmem:[#allocation13 + $0x74] sm:$0xf0] }
 0x1e6   : > { %v1307_v11 = vmul.f32 0.22916667, %v1270_v24  ;;  %vm1294_vm5 = vcmp.ge.f32.partialorder %v1270_v24, 0.0 }
 0x1e8   : > { %v1320_v27 = vsel %vm1294_vm5, %v1270_v24, %v1307_v11  ;;  %v4905_v24 = vpop.f32.mrf.mxu2  ;;  %2009 = vmatpush.bf16.msrb.mxu2 %v3405_v21 }
 0x1e9   : > { %v1228_v25 = vpop.f32.mrf.mxu0  ;;  %v1271_v26 = vpop.f32.mrf.mxu1  ;;  %1559 = vmatpush.bf16.msra.mxu3 %v3699_v50 }
 0x1ea   : > { %v1229_v29 = vadd.f32 %v1228_v25, %v4862_v20 }
 0x1ec   : > { %v1272_v12 = vadd.f32 %v1271_v26, %v1229_v29  ;;  %v3397_v26 = vor.u32 %v3709_v51, %v3396_v22 }
 0x1ed   : > { %1560 = vmatpush.bf16.msra.mxu3 %v3698_v45 }
 0x1ee   : > { %vm1295_vm6 = vcmp.ge.f32.partialorder %v1272_v12, 0.0  ;;  %v1308_v4 = vmul.f32 0.22916667, %v1272_v12  ;;  %2010 = vmatpush.bf16.msrb.mxu2 %v3397_v26 }
 0x1f0   : > { %v1321_v34 = vsel %vm1295_vm6, %v1272_v12, %v1308_v4  ;;  %v3388_v12 = vld [vmem:[#allocation11] sm:$0xf]  ;;  %v3707_v4 = vld [vmem:[#allocation11 + $0x4] sm:$0xf0] }
 0x1f1   : > { %v1231_v35 = vpop.f32.mrf.mxu0  ;;  %v1274_v28 = vpop.f32.mrf.mxu1  ;;  %v1330_v36 = vpack.c.bf16 %v1321_v34, %v1320_v27 }
 0x1f2   : > { %v1232_v46 = vadd.f32 %v1231_v35, %v4862_v20  ;;  %v3389_v35 = vor.u32 %v3707_v4, %v3388_v12  ;;  %v3752_v4 = vld [vmem:[#allocation13 + $0x74] sm:$0xf] }
 0x1f3   : > { %1422 = vmatmul.bf16.gmra.mxu2 %v1330_v36  ;;  %v4908_v36 = vpop.f32.mrf.mxu2 }
 0x1f4   : > { %v1275_v49 = vadd.f32 %v1274_v28, %v1232_v46  ;;  %2011 = vmatpush.bf16.msrb.mxu2 %v3389_v35 }
 0x1f6   : > { %v1309_v62 = vmul.f32 0.22916667, %v1275_v49  ;;  %vm1296_vm7 = vcmp.ge.f32.partialorder %v1275_v49, 0.0 }
 0x1f8   : > { %v1322_v38 = vsel %vm1296_vm7, %v1275_v49, %v1309_v62 }
 0x1f9   : > { %v1233_v57 = vpop.f32.mrf.mxu0  ;;  %v1276_v58 = vpop.f32.mrf.mxu1 }
 0x1fa   : > { %v1234_v61 = vadd.f32 %v1233_v57, %v4862_v20 }
 0x1fb   : > { %v936_v53 = vpop.f32.mrf.mxu2 }
 0x1fc   : > { %v1277_v63 = vadd.f32 %v1276_v58, %v1234_v61  ;;  %v4916_v58 = vperm.slane %v4792_v33, 2 }
 0x1fe   : > { %vm1297_vm8 = vcmp.ge.f32.partialorder %v1277_v63, 0.0  ;;  %v1310_v1 = vmul.f32 0.22916667, %v1277_v63  ;;  %v907_v60 = vadd.f32 %v4865_v30, %v4916_v58  ;;  %v910_v14 = vadd.f32 %v4868_v40, %v4916_v58 }
 0x1ff   : > { %v912_v62 = vadd.f32 %v4873_v47, %v4916_v58  ;;  %v917_v40 = vadd.f32 %v4881_v37, %v4916_v58  ;;  %v3380_v37 = vld [vmem:[#allocation13 + $0x70] sm:$0xf]  ;;  %v920_v22 = vadd.f32 %v4884_v10, %v4916_v58  ;;  %v922_v51 = vadd.f32 %v4889_v23, %v4916_v58 }
 0x200   : > { %v1323_v3 = vsel %vm1297_vm8, %v1277_v63, %v1310_v1  ;;  %v3381_v21 = vor.u32 %v3753_v56, %v3380_v37  ;;  %v925_v53 = vadd.f32 %v4892_v31, %v4916_v58 }
 0x201   : > { %v1236_v6 = vpop.f32.mrf.mxu0  ;;  %v1279_v7 = vpop.f32.mrf.mxu1  ;;  %v1331_v8 = vpack.c.bf16 %v1323_v3, %v1322_v38  ;;  %v4929_v33 = vpack.c.bf16 %v912_v62, %v910_v14  ;;  %v915_v38 = vadd.f32 %v4876_v59, %v4916_v58 }
 0x202   : > { %v1237_v19 = vadd.f32 %v1236_v6, %v4862_v20  ;;  %1758 = vmatpush.bf16.msra.mxu0 %v3381_v21 }
 0x203   : > { %1427 = vmatmul.bf16.gmra.mxu2 %v1331_v8 }
 0x204   : > { %v1280_v25 = vadd.f32 %v1279_v7, %v1237_v19  ;;  %v4931_v63 = vpop.f32.mrf.mxu3  ;;  %v4944_v7 = vpack.c.bf16 %v917_v40, %v915_v38  ;;  %v3748_v38 = vld [vmem:[#allocation13 + $0x54] sm:$0xf]  ;;  %v3366_v40 = vld [vmem:[#allocation13 + $0x58] sm:$0xf0] }
 0x206   : > { %v1311_v27 = vmul.f32 0.22916667, %v1280_v25  ;;  %vm1298_vm9 = vcmp.ge.f32.partialorder %v1280_v25, 0.0 }
 0x208   : > { %v1324_v39 = vsel %vm1298_vm9, %v1280_v25, %v1311_v27  ;;  %v3382_v27 = vld [vmem:[#allocation13 + $0x78] sm:$0xf0] }
 0x209   : > { %v1238_v29 = vpop.f32.mrf.mxu0  ;;  %v1281_v11 = vpop.f32.mrf.mxu1  ;;  %v3385_v35 = vor.u32 %v3752_v4, %v3382_v27  ;;  %v3356_v4 = vld [vmem:[#allocation13 + $0x40] sm:$0xf] }
 0x20a   : > { %v1239_v32 = vadd.f32 %v1238_v29, %v4862_v20 }
 0x20b   : > { %1801 = vmatpush.bf16.msra.mxu1 %v3385_v35  ;;  %v3746_v35 = vld [vmem:[#allocation13 + $0x44] sm:$0xf] }
 0x20c   : > { %v1282_v34 = vadd.f32 %v1281_v11, %v1239_v32  ;;  %v4936_v30 = vpop.f32.mrf.mxu3  ;;  %v4957_v11 = vpack.c.bf16 %v922_v51, %v920_v22  ;;  %v3508_v51 = vld [vmem:[#allocation11 + $0xf0] sm:$0xf] }
 0x20e   : > { %vm1299_vm10 = vcmp.ge.f32.partialorder %v1282_v34, 0.0  ;;  %v1312_v28 = vmul.f32 0.22916667, %v1282_v34 }
 0x210   : > { %v1325_v41 = vsel %vm1299_vm10, %v1282_v34, %v1312_v28 }
 0x211   : > { %v1332_v42 = vpack.c.bf16 %v1325_v41, %v1324_v39  ;;  %v1241_v43 = vpop.f32.mrf.mxu0  ;;  %v1284_v44 = vpop.f32.mrf.mxu1  ;;  %v3372_v41 = vld [vmem:[#allocation13 + $0x60] sm:$0xf] }
 0x212   : > { %v1242_v46 = vadd.f32 %v1241_v43, %v4862_v20  ;;  %v905_v20 = vadd.f32 %v4860_v18, %v4916_v58  ;;  %v3750_v43 = vld [vmem:[#allocation13 + $0x64] sm:$0xf] }
 0x213   : > { %1432 = vmatmul.bf16.gmra.mxu2 %v1332_v42  ;;  %v3751_v42 = vld [vmem:[#allocation13 + $0x64] sm:$0xf0] }
 0x214   : > { %v1285_v13 = vadd.f32 %v1284_v44, %v1242_v46  ;;  %v4922_v61 = vpack.c.bf16 %v907_v60, %v905_v20  ;;  %v4946_v9 = vpop.f32.mrf.mxu3  ;;  %v3374_v44 = vld [vmem:[#allocation13 + $0x68] sm:$0xf0]  ;;  %v3373_v50 = vor.u32 %v3751_v42, %v3372_v41 }
 0x216   : > { %v1313_v54 = vmul.f32 0.22916667, %v1285_v13  ;;  %vm1300_vm11 = vcmp.ge.f32.partialorder %v1285_v13, 0.0  ;;  %1759 = vmatpush.bf16.msra.mxu0 %v3373_v50 }
 0x218   : > { %v1326_v57 = vsel %vm1300_vm11, %v1285_v13, %v1313_v54  ;;  %v3377_v13 = vor.u32 %v3750_v43, %v3374_v44  ;;  %v927_v54 = vadd.f32 %v4897_v52, %v4916_v58  ;;  %v3492_v43 = vld [vmem:[#allocation11 + $0xd0] sm:$0xf]  ;;  %v3733_v44 = vld [vmem:[#allocation11 + $0xd4] sm:$0xf0] }
 0x219   : > { %v1243_v49 = vpop.f32.mrf.mxu0  ;;  %v1286_v55 = vpop.f32.mrf.mxu1  ;;  %v1333_v5 = vpack.c.bf16 %v1326_v57, %v1326_v57  ;;  %v3493_v50 = vor.u32 %v3733_v44, %v3492_v43 }
 0x21a   : > { %1802 = vmatpush.bf16.msra.mxu1 %v3377_v13 }
 0x21c   : > { %v4949_v17 = vpop.f32.mrf.mxu3 }
 0x223   : > { %1437 = vmatmul.bf16.gmra.mxu2 %v1333_v5  ;;  %v4970_v5 = vpack.c.bf16 %v927_v54, %v925_v53  ;;  %v3484_v53 = vld [vmem:[#allocation11 + $0xc0] sm:$0xf]  ;;  %v3731_v54 = vld [vmem:[#allocation11 + $0xc4] sm:$0xf0] }
 0x224   : > { %v4959_v32 = vpop.f32.mrf.mxu3 }
 0x22c   : > { %v4962_v39 = vpop.f32.mrf.mxu3 }
 0x233   : > { %2012 = vmatmul.bf16.vlgmr.msrb.gmra.mxu2 %v4922_v61 }
 0x234   : > { %v4972_v20 = vpop.f32.mrf.mxu3 }
 0x23c   : > { %v4975_v52 = vpop.f32.mrf.mxu3 }
 0x243   : > { %2017 = vmatmul.bf16.gmra.mxu2 %v4929_v33 }
 0x246   : > { %v1408_v18 = vpop.f32.mrf.mxu2 }
 0x247   : > { %v1409_v1 = vadd.f32 %v1408_v18, %v4934_v0  ;;  %v3364_v18 = vld [vmem:[#allocation13 + $0x50] sm:$0xf] }
 0x249   : > { %v1455_v3 = vmul.f32 0.22916667, %v1409_v1  ;;  %vm1442_vm1 = vcmp.ge.f32.partialorder %v1409_v1, 0.0 }
 0x24b   : > { %v1468_v48 = vsel %vm1442_vm1, %v1409_v1, %v1455_v3  ;;  %v3749_v1 = vld [vmem:[#allocation13 + $0x54] sm:$0xf0] }
 0x24c   : > { %v3365_v3 = vor.u32 %v3749_v1, %v3364_v18 }
 0x24e   : > { %v1410_v47 = vpop.f32.mrf.mxu2  ;;  %1760 = vmatpush.bf16.msra.mxu0 %v3365_v3 }
 0x24f   : > { %v1411_v6 = vadd.f32 %v1410_v47, %v4934_v0 }
 0x251   : > { %vm1443_vm12 = vcmp.ge.f32.partialorder %v1411_v6, 0.0  ;;  %v1456_v8 = vmul.f32 0.22916667, %v1411_v6 }
 0x253   : > { %v1469_v15 = vsel %vm1443_vm12, %v1411_v6, %v1456_v8  ;;  %2022 = vmatmul.bf16.gmra.mxu2 %v4944_v7  ;;  %v3369_v6 = vor.u32 %v3748_v38, %v3366_v40  ;;  %v930_v8 = vadd.f32 %v4900_v2, %v4916_v58  ;;  %v3476_v38 = vld [vmem:[#allocation11 + $0xb0] sm:$0xf]  ;;  %v3729_v40 = vld [vmem:[#allocation11 + $0xb4] sm:$0xf0] }
 0x254   : > { %v1481_v16 = vpack.c.bf16 %v1469_v15, %v1468_v48  ;;  %v932_v48 = vadd.f32 %v4905_v24, %v4916_v58  ;;  %v3737_v24 = vld [vmem:[#allocation11 + $0xf4] sm:$0xf0] }
 0x255   : > { %1803 = vmatpush.bf16.msra.mxu1 %v3369_v6  ;;  %v3744_v6 = vld [vmem:[#allocation13 + $0x34] sm:$0xf] }
 0x256   : > { %v1413_v59 = vpop.f32.mrf.mxu2  ;;  %1561 = vmatmul.bf16.vlgmr.msra.gmra.mxu3 %v1481_v16  ;;  %v4983_v37 = vpack.c.bf16 %v932_v48, %v930_v8  ;;  %v3350_v8 = vld [vmem:[#allocation13 + $0x38] sm:$0xf0]  ;;  %v3468_v48 = vld [vmem:[#allocation11 + $0xa0] sm:$0xf] }
 0x257   : > { %v1414_v19 = vadd.f32 %v1413_v59, %v4934_v0 }
 0x259   : > { %v1457_v26 = vmul.f32 0.22916667, %v1414_v19  ;;  %vm1444_vm13 = vcmp.ge.f32.partialorder %v1414_v19, 0.0 }
 0x25b   : > { %v1470_v10 = vsel %vm1444_vm13, %v1414_v19, %v1457_v26  ;;  %v4985_v19 = vpop.f32.mrf.mxu3 }
 0x25e   : > { %v1415_v25 = vpop.f32.mrf.mxu2 }
 0x25f   : > { %v1416_v29 = vadd.f32 %v1415_v25, %v4934_v0  ;;  %v3509_v25 = vor.u32 %v3737_v24, %v3508_v51 }
 0x261   : > { %v1458_v12 = vmul.f32 0.22916667, %v1416_v29  ;;  %vm1445_vm0 = vcmp.ge.f32.partialorder %v1416_v29, 0.0  ;;  %2047 = vmatpush.bf16.msrb.mxu3 %v3509_v25 }
 0x263   : > { %2027 = vmatmul.bf16.gmra.mxu2 %v4957_v11  ;;  %v1471_v34 = vsel %vm1445_vm0, %v1416_v29, %v1458_v12  ;;  %v3500_v29 = vld [vmem:[#allocation11 + $0xe0] sm:$0xf]  ;;  %v3735_v12 = vld [vmem:[#allocation11 + $0xe4] sm:$0xf0]  ;;  %v4988_v27 = vpop.f32.mrf.mxu3 }
 0x264   : > { %v1482_v23 = vpack.c.bf16 %v1471_v34, %v1470_v10  ;;  %v3501_v10 = vor.u32 %v3735_v12, %v3500_v29  ;;  %v3747_v34 = vld [vmem:[#allocation13 + $0x44] sm:$0xf0]  ;;  %v3452_v12 = vld [vmem:[#allocation11 + $0x80] sm:$0xf] }
 0x265   : > { %v3357_v41 = vor.u32 %v3747_v34, %v3356_v4  ;;  %v3743_v29 = vld [vmem:[#allocation13 + $0x24] sm:$0xf0] }
 0x266   : > { %v1418_v28 = vpop.f32.mrf.mxu2  ;;  %1566 = vmatmul.bf16.gmra.mxu3 %v1482_v23  ;;  %v3358_v23 = vld [vmem:[#allocation13 + $0x48] sm:$0xf0]  ;;  %v3723_v34 = vld [vmem:[#allocation11 + $0x84] sm:$0xf0] }
 0x267   : > { %v1419_v46 = vadd.f32 %v1418_v28, %v4934_v0  ;;  %v3361_v42 = vor.u32 %v3746_v35, %v3358_v23  ;;  %2048 = vmatpush.bf16.msrb.mxu3 %v3501_v10  ;;  %1761 = vmatpush.bf16.msra.mxu0 %v3357_v41  ;;  %v3742_v35 = vld [vmem:[#allocation13 + $0x24] sm:$0xf]  ;;  %v3342_v23 = vld [vmem:[#allocation13 + $0x28] sm:$0xf0] }
 0x268   : > { %v3345_v41 = vor.u32 %v3742_v35, %v3342_v23  ;;  %v5032_v23 = vld [vmem:[#allocation19 + $0x3] ss:$0 sm:$0xff] }
 0x269   : > { %v1459_v55 = vmul.f32 0.22916667, %v1419_v46  ;;  %vm1446_vm14 = vcmp.ge.f32.partialorder %v1419_v46, 0.0  ;;  %1804 = vmatpush.bf16.msra.mxu1 %v3361_v42 }
 0x26b   : > { %v1472_v60 = vsel %vm1446_vm14, %v1419_v46, %v1459_v55  ;;  %v935_v46 = vadd.f32 %v4908_v36, %v4916_v58  ;;  %2049 = vmatpush.bf16.msrb.mxu3 %v3493_v50  ;;  %v4996_v36 = vpop.f32.mrf.mxu3 }
 0x26e   : > { %v1420_v49 = vpop.f32.mrf.mxu2 }
 0x26f   : > { %v1421_v57 = vadd.f32 %v1420_v49, %v4934_v0  ;;  %v3348_v49 = vld [vmem:[#allocation13 + $0x30] sm:$0xf] }
 0x271   : > { %vm1447_vm15 = vcmp.ge.f32.partialorder %v1421_v57, 0.0  ;;  %v1460_v45 = vmul.f32 0.22916667, %v1421_v57 }
 0x273   : > { %2032 = vmatmul.bf16.gmra.mxu2 %v4970_v5  ;;  %v1473_v31 = vsel %vm1447_vm15, %v1421_v57, %v1460_v45  ;;  %v3485_v45 = vor.u32 %v3731_v54, %v3484_v53 }
 0x274   : > { %v1483_v14 = vpack.c.bf16 %v1473_v31, %v1472_v60  ;;  %v3745_v60 = vld [vmem:[#allocation13 + $0x34] sm:$0xf0] }
 0x275   : > { %v3349_v31 = vor.u32 %v3745_v60, %v3348_v49  ;;  %2050 = vmatpush.bf16.msrb.mxu3 %v3485_v45  ;;  %v3741_v45 = vld [vmem:[#allocation13 + $0x14] sm:$0xf0]  ;;  %v3740_v60 = vld [vmem:[#allocation13 + $0x14] sm:$0xf] }
 0x276   : > { %v1423_v62 = vpop.f32.mrf.mxu2  ;;  %1571 = vmatmul.bf16.gmra.mxu3 %v1483_v14  ;;  %v4994_v14 = vpack.c.bf16 %v935_v46, %v935_v46 }
 0x277   : > { %v1424_v47 = vadd.f32 %v1423_v62, %v4934_v0  ;;  %1762 = vmatpush.bf16.msra.mxu0 %v3349_v31 }
 0x279   : > { %v1461_v16 = vmul.f32 0.22916667, %v1424_v47  ;;  %vm1448_vm2 = vcmp.ge.f32.partialorder %v1424_v47, 0.0 }
 0x27b   : > { %v1474_v21 = vsel %vm1448_vm2, %v1424_v47, %v1461_v16  ;;  %v3477_v47 = vor.u32 %v3729_v40, %v3476_v38  ;;  %v3727_v16 = vld [vmem:[#allocation11 + $0xa4] sm:$0xf0] }
 0x27c   : > { %v3979_v40 = vld [vmem:[#allocation19] ss:$8 sm:$0xf] }
 0x27d   : > { %2051 = vmatpush.bf16.msrb.mxu3 %v3477_v47  ;;  %v5008_v47 = vperm.slane %v3979_v40, 3 }
 0x27e   : > { %v1425_v15 = vpop.f32.mrf.mxu2 }
 0x27f   : > { %v1426_v59 = vadd.f32 %v1425_v15, %v4934_v0  ;;  %v3353_v15 = vor.u32 %v3744_v6, %v3350_v8  ;;  %v3739_v6 = vld [vmem:[#allocation13 + $0x4] sm:$0xf0] }
 0x281   : > { %vm1449_vm3 = vcmp.ge.f32.partialorder %v1426_v59, 0.0  ;;  %v1462_v56 = vmul.f32 0.22916667, %v1426_v59  ;;  %1805 = vmatpush.bf16.msra.mxu1 %v3353_v15  ;;  %v950_v15 = vadd.f32 %v4936_v30, %v5008_v47  ;;  %v953_v30 = vadd.f32 %v4946_v9, %v5008_v47 }
 0x283   : > { %2037 = vmatmul.bf16.gmra.mxu2 %v4983_v37  ;;  %v1475_v2 = vsel %vm1449_vm3, %v1426_v59, %v1462_v56  ;;  %v3469_v59 = vor.u32 %v3727_v16, %v3468_v48  ;;  %v948_v48 = vadd.f32 %v4931_v63, %v5008_v47  ;;  %v3736_v63 = vld [vmem:[#allocation11 + $0xf4] sm:$0xf] }
 0x284   : > { %v1484_v22 = vpack.c.bf16 %v1475_v2, %v1474_v21  ;;  %v5000_v21 = vpop.f32.mrf.mxu3  ;;  %v3460_v2 = vld [vmem:[#allocation11 + $0x90] sm:$0xf] }
 0x285   : > { %2052 = vmatpush.bf16.msrb.mxu3 %v3469_v59  ;;  %1806 = vmatpush.bf16.msra.mxu1 %v3345_v41  ;;  %v5016_v16 = vpack.c.bf16 %v950_v15, %v948_v48  ;;  %v3738_v59 = vld [vmem:[#allocation13 + $0x4] sm:$0xf]  ;;  %v3438_v41 = vld [vmem:[#allocation11 + $0x68] sm:$0xf0]  ;;  %v965_v48 = vadd.f32 %v4975_v52, %v5008_v47 }
 0x286   : > { %v1428_v26 = vpop.f32.mrf.mxu2  ;;  %1576 = vmatmul.bf16.gmra.mxu3 %v1484_v22  ;;  %v3725_v22 = vld [vmem:[#allocation11 + $0x94] sm:$0xf0] }
 0x287   : > { %v1429_v28 = vadd.f32 %v1428_v26, %v4934_v0  ;;  %v3461_v24 = vor.u32 %v3725_v22, %v3460_v2  ;;  %v3340_v26 = vld [vmem:[#allocation13 + $0x20] sm:$0xf] }
 0x288   : > { %v3341_v10 = vor.u32 %v3743_v29, %v3340_v26  ;;  %v3510_v29 = vld [vmem:[#allocation11 + $0xf8] sm:$0xf0] }
 0x289   : > { %v1463_v55 = vmul.f32 0.22916667, %v1429_v28  ;;  %vm1450_vm4 = vcmp.ge.f32.partialorder %v1429_v28, 0.0  ;;  %2053 = vmatpush.bf16.msrb.mxu3 %v3461_v24  ;;  %v3446_v24 = vld [vmem:[#allocation11 + $0x78] sm:$0xf0] }
 0x28a   : > { %1763 = vmatpush.bf16.msra.mxu0 %v3341_v10 }
 0x28b   : > { %v1476_v58 = vsel %vm1450_vm4, %v1429_v28, %v1463_v55  ;;  %v3453_v28 = vor.u32 %v3723_v34, %v3452_v12  ;;  %v3513_v12 = vor.u32 %v3736_v63, %v3510_v29 }
 0x28c   : > { %v5003_v43 = vpop.f32.mrf.mxu3 }
 0x28d   : > { %2054 = vmatpush.bf16.msrb.mxu3 %v3453_v28  ;;  %v3718_v28 = vld [vmem:[#allocation11 + $0x64] sm:$0xf] }
 0x28e   : > { %v1430_v13 = vpop.f32.mrf.mxu2 }
 0x28f   : > { %v1431_v57 = vadd.f32 %v1430_v13, %v4934_v0 }
 0x291   : > { %vm1451_vm5 = vcmp.ge.f32.partialorder %v1431_v57, 0.0  ;;  %v1464_v62 = vmul.f32 0.22916667, %v1431_v57 }
 0x293   : > { %2042 = vmatmul.bf16.gmra.mxu2 %v4994_v14  ;;  %v1477_v18 = vsel %vm1451_vm5, %v1431_v57, %v1464_v62  ;;  %v3332_v57 = vld [vmem:[#allocation13 + $0x10] sm:$0xf] }
 0x294   : > { %v1485_v1 = vpack.c.bf16 %v1477_v18, %v1476_v58  ;;  %v979_v54 = vpop.f32.mrf.mxu3  ;;  %v3333_v62 = vor.u32 %v3741_v45, %v3332_v57  ;;  %v3334_v58 = vld [vmem:[#allocation13 + $0x18] sm:$0xf0] }
 0x295   : > { %v3337_v18 = vor.u32 %v3740_v60, %v3334_v58  ;;  %v3732_v58 = vld [vmem:[#allocation11 + $0xd4] sm:$0xf] }
 0x296   : > { %v1433_v3 = vpop.f32.mrf.mxu2  ;;  %1581 = vmatmul.bf16.gmra.mxu3 %v1485_v1  ;;  %1764 = vmatpush.bf16.msra.mxu0 %v3333_v62  ;;  %v3430_v62 = vld [vmem:[#allocation11 + $0x58] sm:$0xf0] }
 0x297   : > { %v1434_v56 = vadd.f32 %v1433_v3, %v4934_v0  ;;  %1807 = vmatpush.bf16.msra.mxu1 %v3337_v18  ;;  %v3324_v3 = vld [vmem:[#allocation13] sm:$0xf] }
 0x298   : > { %v3325_v8 = vor.u32 %v3739_v6, %v3324_v3 }
 0x299   : > { %v1465_v51 = vmul.f32 0.22916667, %v1434_v56  ;;  %vm1452_vm6 = vcmp.ge.f32.partialorder %v1434_v56, 0.0 }
 0x29a   : > { %1765 = vmatpush.bf16.msra.mxu0 %v3325_v8  ;;  %v963_v8 = vadd.f32 %v4972_v20, %v5008_v47 }
 0x29b   : > { %v1478_v44 = vsel %vm1452_vm6, %v1434_v56, %v1465_v51  ;;  %v3326_v56 = vld [vmem:[#allocation13 + $0x8] sm:$0xf0]  ;;  %v3720_v51 = vld [vmem:[#allocation11 + $0x74] sm:$0xf] }
 0x29c   : > { %v3329_v2 = vor.u32 %v3738_v59, %v3326_v56  ;;  %v3449_v26 = vor.u32 %v3720_v51, %v3446_v24  ;;  %v5061_v56 = vpack.c.bf16 %v965_v48, %v963_v8  ;;  %v3714_v51 = vld [vmem:[#allocation11 + $0x44] sm:$0xf]  ;;  %v3422_v24 = vld [vmem:[#allocation11 + $0x48] sm:$0xf0] }
 0x29e   : > { %v1435_v25 = vpop.f32.mrf.mxu2  ;;  %1808 = vmatpush.bf16.msra.mxu1 %v3329_v2  ;;  %2090 = vmatpush.bf16.msrb.mxu0 %v3449_v26  ;;  %v3425_v26 = vor.u32 %v3714_v51, %v3422_v24  ;;  %v3726_v51 = vld [vmem:[#allocation11 + $0xa4] sm:$0xf] }
 0x29f   : > { %v1436_v4 = vadd.f32 %v1435_v25, %v4934_v0 }
 0x2a1   : > { %vm1453_vm7 = vcmp.ge.f32.partialorder %v1436_v4, 0.0  ;;  %v1466_v42 = vmul.f32 0.22916667, %v1436_v4 }
 0x2a2   : > { %2133 = vmatpush.bf16.msrb.mxu1 %v3513_v12  ;;  %v3730_v12 = vld [vmem:[#allocation11 + $0xc4] sm:$0xf] }
 0x2a3   : > { %v1479_v46 = vsel %vm1453_vm7, %v1436_v4, %v1466_v42  ;;  %v955_v4 = vadd.f32 %v4949_v17, %v5008_v47  ;;  %v3441_v42 = vor.u32 %v3718_v28, %v3438_v41  ;;  %v968_v41 = vadd.f32 %v4985_v19, %v5008_v47 }
 0x2a4   : > { %v1486_v50 = vpack.c.bf16 %v1479_v46, %v1478_v44  ;;  %v3734_v44 = vld [vmem:[#allocation11 + $0xe4] sm:$0xf]  ;;  %v3502_v46 = vld [vmem:[#allocation11 + $0xe8] sm:$0xf0] }
 0x2a5   : > { %v5027_v10 = vpack.c.bf16 %v955_v4, %v953_v30  ;;  %2091 = vmatpush.bf16.msrb.mxu0 %v3441_v42  ;;  %v3486_v30 = vld [vmem:[#allocation11 + $0xc8] sm:$0xf0]  ;;  %v970_v42 = vadd.f32 %v4988_v27, %v5008_v47 }
 0x2a6   : > { %v1438_v13 = vpop.f32.mrf.mxu2  ;;  %1586 = vmatmul.bf16.gmra.mxu3 %v1486_v50  ;;  %v3505_v50 = vor.u32 %v3734_v44, %v3502_v46  ;;  %v3489_v4 = vor.u32 %v3730_v12, %v3486_v30 }
 0x2a7   : > { %v1439_v53 = vadd.f32 %v1438_v13, %v4934_v0  ;;  %v958_v13 = vadd.f32 %v4959_v32, %v5008_v47 }
 0x2a8   : > { %2134 = vmatpush.bf16.msrb.mxu1 %v3505_v50  ;;  %v5080_v50 = vpack.c.bf16 %v970_v42, %v968_v41  ;;  %v978_v41 = vadd.f32 %v5003_v43, %v5008_v47 }
 0x2a9   : > { %v1467_v49 = vmul.f32 0.22916667, %v1439_v53  ;;  %vm1454_vm8 = vcmp.ge.f32.partialorder %v1439_v53, 0.0 }
 0x2ab   : > { %v1480_v31 = vsel %vm1454_vm8, %v1439_v53, %v1467_v49  ;;  %v960_v53 = vadd.f32 %v4962_v39, %v5008_v47  ;;  %v3716_v39 = vld [vmem:[#allocation11 + $0x54] sm:$0xf] }
 0x2ac   : > { %v1487_v1 = vpack.c.bf16 %v1480_v31, %v1480_v31  ;;  %v3433_v18 = vor.u32 %v3716_v39, %v3430_v62 }
 0x2ae   : > { %v1440_v55 = vpop.f32.mrf.mxu2  ;;  %2092 = vmatpush.bf16.msrb.mxu0 %v3433_v18 }
 0x2af   : > { %v5042_v55 = vpack.c.bf16 %v960_v53, %v958_v13  ;;  %v3414_v13 = vld [vmem:[#allocation11 + $0x38] sm:$0xf0] }
 0x2b2   : > { %2093 = vmatpush.bf16.msrb.mxu0 %v3425_v26  ;;  %v3470_v26 = vld [vmem:[#allocation11 + $0xa8] sm:$0xf0] }
 0x2b6   : > { %1591 = vmatmul.bf16.gmra.mxu3 %v1487_v1  ;;  %v5006_v38 = vpop.f32.mrf.mxu2  ;;  %v3494_v1 = vld [vmem:[#allocation11 + $0xd8] sm:$0xf0] }
 0x2b7   : > { %v3497_v3 = vor.u32 %v3732_v58, %v3494_v1  ;;  %v973_v1 = vadd.f32 %v4996_v36, %v5008_v47  ;;  %v3473_v36 = vor.u32 %v3726_v51, %v3470_v26 }
 0x2b9   : > { %2135 = vmatpush.bf16.msrb.mxu1 %v3497_v3  ;;  %v975_v3 = vadd.f32 %v5000_v21, %v5008_v47 }
 0x2bb   : > { %v5099_v48 = vpack.c.bf16 %v975_v3, %v973_v1  ;;  %v3390_v1 = vld [vmem:[#allocation11 + $0x8] sm:$0xf0] }
 0x2bd   : > { %2136 = vmatpush.bf16.msrb.mxu1 %v3489_v4 }
 0x2be   : > { %v5010_v0 = vpop.f32.mrf.mxu2 }
 0x2c6   : > { %v5018_v22 = vpop.f32.mrf.mxu2  ;;  %2055 = vmatmul.bf16.vlgmr.msrb.gmra.mxu3 %v5016_v16 }
 0x2ce   : > { %v5021_v25 = vpop.f32.mrf.mxu2 }
 0x2d6   : > { %v5029_v34 = vpop.f32.mrf.mxu2  ;;  %2060 = vmatmul.bf16.gmra.mxu3 %v5027_v10 }
 0x2d9   : > { %v1562_v35 = vpop.f32.mrf.mxu3 }
 0x2da   : > { %v1563_v17 = vadd.f32 %v1562_v35, %v5032_v23 }
 0x2dc   : > { %3953 = vtanh.f32 %v1563_v17  ;;  %v3712_v17 = vld [vmem:[#allocation11 + $0x34] sm:$0xf] }
 0x2dd   : > { %v3417_v53 = vor.u32 %v3712_v17, %v3414_v13  ;;  %v3724_v17 = vld [vmem:[#allocation11 + $0x94] sm:$0xf] }
 0x2de   : > { %v5034_v9 = vpop.f32.mrf.mxu2 }
 0x2df   : > { %2094 = vmatpush.bf16.msrb.mxu0 %v3417_v53 }
 0x2e1   : > { %v1564_v54 = vpop.f32.mrf.mxu3 }
 0x2e2   : > { %v1565_v49 = vadd.f32 %v1564_v54, %v5032_v23  ;;  %v5047_v45 = vpop.eup %3953 }
 0x2e4   : > { %3955 = vtanh.f32 %v1565_v49  ;;  %v3728_v49 = vld [vmem:[#allocation11 + $0xb4] sm:$0xf] }
 0x2e6   : > { %v5044_v57 = vpop.f32.mrf.mxu2  ;;  %2065 = vmatmul.bf16.gmra.mxu3 %v5042_v55 }
 0x2e9   : > { %v1567_v60 = vpop.f32.mrf.mxu3 }
 0x2ea   : > { %v5049_v31 = vpop.eup %3955  ;;  %v1568_v6 = vadd.f32 %v1567_v60, %v5032_v23  ;;  %v3478_v60 = vld [vmem:[#allocation11 + $0xb8] sm:$0xf0] }
 0x2eb   : > { %v1655_v32 = vpack.c.bf16 %v5049_v31, %v5047_v45  ;;  %v3481_v19 = vor.u32 %v3728_v49, %v3478_v60  ;;  %v3462_v49 = vld [vmem:[#allocation11 + $0x98] sm:$0xf0] }
 0x2ec   : > { %3957 = vtanh.f32 %v1568_v6  ;;  %v3465_v60 = vor.u32 %v3724_v17, %v3462_v49  ;;  %v3757_v49 = vld [vmem:[#allocation14 + $0x18] sm:$0xff] }
 0x2ed   : > { %1766 = vmatmul.bf16.vlgmr.msra.gmra.mxu0 %v1655_v32  ;;  %1809 = vmatmul.bf16.vlgmr.msra.gmra.mxu1 %v1655_v32 }
 0x2ee   : > { %v5053_v40 = vpop.f32.mrf.mxu2  ;;  %2137 = vmatpush.bf16.msrb.mxu1 %v3481_v19  ;;  %v5114_v19 = vpack.c.bf16 %v978_v41, %v978_v41 }
 0x2f1   : > { %v1569_v15 = vpop.f32.mrf.mxu3 }
 0x2f2   : > { %v1570_v59 = vadd.f32 %v1569_v15, %v5032_v23  ;;  %v5066_v63 = vpop.eup %3957  ;;  %v3710_v15 = vld [vmem:[#allocation11 + $0x24] sm:$0xf]  ;;  %2138 = vmatpush.bf16.msrb.mxu1 %v3473_v36 }
 0x2f4   : > { %3959 = vtanh.f32 %v1570_v59  ;;  %v3406_v59 = vld [vmem:[#allocation11 + $0x28] sm:$0xf0] }
 0x2f5   : > { %v3409_v24 = vor.u32 %v3710_v15, %v3406_v59  ;;  %v3722_v15 = vld [vmem:[#allocation11 + $0x84] sm:$0xf]  ;;  %v3454_v59 = vld [vmem:[#allocation11 + $0x88] sm:$0xf0] }
 0x2f6   : > { %v5063_v2 = vpop.f32.mrf.mxu2  ;;  %2070 = vmatmul.bf16.gmra.mxu3 %v5061_v56  ;;  %2139 = vmatpush.bf16.msrb.mxu1 %v3465_v60  ;;  %v3756_v60 = vld [vmem:[#allocation14 + $0x10] sm:$0xff] }
 0x2f7   : > { %2095 = vmatpush.bf16.msrb.mxu0 %v3409_v24  ;;  %v3457_v24 = vor.u32 %v3722_v15, %v3454_v59 }
 0x2f9   : > { %v1572_v20 = vpop.f32.mrf.mxu3 }
 0x2fa   : > { %v5068_v52 = vpop.eup %3959  ;;  %v1573_v28 = vadd.f32 %v1572_v20, %v5032_v23  ;;  %2140 = vmatpush.bf16.msrb.mxu1 %v3457_v24 }
 0x2fb   : > { %v1656_v29 = vpack.c.bf16 %v5068_v52, %v5066_v63 }
 0x2fc   : > { %3961 = vtanh.f32 %v1573_v28 }
 0x2fd   : > { %1771 = vmatmul.bf16.gmra.mxu0 %v1656_v29  ;;  %1814 = vmatmul.bf16.gmra.mxu1 %v1656_v29 }
 0x2fe   : > { %v5072_v35 = vpop.f32.mrf.mxu2 }
 0x301   : > { %v1574_v44 = vpop.f32.mrf.mxu3 }
 0x302   : > { %v1575_v46 = vadd.f32 %v1574_v44, %v5032_v23  ;;  %v5085_v32 = vpop.eup %3961  ;;  %v3708_v44 = vld [vmem:[#allocation11 + $0x14] sm:$0xf] }
 0x304   : > { %3963 = vtanh.f32 %v1575_v46  ;;  %v3398_v46 = vld [vmem:[#allocation11 + $0x18] sm:$0xf0] }
 0x305   : > { %v3401_v53 = vor.u32 %v3708_v44, %v3398_v46  ;;  %v3759_v44 = vld [vmem:[#allocation14 + $0x28] sm:$0xff] }
 0x306   : > { %v5082_v54 = vpop.f32.mrf.mxu2  ;;  %2075 = vmatmul.bf16.gmra.mxu3 %v5080_v50 }
 0x307   : > { %2096 = vmatpush.bf16.msrb.mxu0 %v3401_v53 }
 0x309   : > { %v1577_v27 = vpop.f32.mrf.mxu3 }
 0x30a   : > { %v5087_v39 = vpop.eup %3963  ;;  %v1578_v18 = vadd.f32 %v1577_v27, %v5032_v23 }
 0x30b   : > { %v1657_v62 = vpack.c.bf16 %v5087_v39, %v5085_v32 }
 0x30c   : > { %3965 = vtanh.f32 %v1578_v18  ;;  %v3706_v18 = vld [vmem:[#allocation11 + $0x4] sm:$0xf] }
 0x30d   : > { %1776 = vmatmul.bf16.gmra.mxu0 %v1657_v62  ;;  %1819 = vmatmul.bf16.gmra.mxu1 %v1657_v62  ;;  %v3393_v3 = vor.u32 %v3706_v18, %v3390_v1  ;;  %v3754_v18 = vld [vmem:[#allocation14] sm:$0xff] }
 0x30e   : > { %v5091_v58 = vpop.f32.mrf.mxu2 }
 0x30f   : > { %2097 = vmatpush.bf16.msrb.mxu0 %v3393_v3  ;;  %v3769_v3 = vld [vmem:[#allocation14 + $0x78] sm:$0xff] }
 0x310   : > { %2473 = vmatpush.bf16.msra.mxu3 %v3769_v3 }
 0x311   : > { %v1579_v6 = vpop.f32.mrf.mxu3 }
 0x312   : > { %v1580_v8 = vadd.f32 %v1579_v6, %v5032_v23  ;;  %v5104_v21 = vpop.eup %3965 }
 0x314   : > { %3967 = vtanh.f32 %v1580_v8 }
 0x316   : > { %v5101_v20 = vpop.f32.mrf.mxu2  ;;  %2080 = vmatmul.bf16.gmra.mxu3 %v5099_v48 }
 0x319   : > { %v1582_v29 = vpop.f32.mrf.mxu3 }
 0x31a   : > { %v5106_v12 = vpop.eup %3967  ;;  %v1583_v28 = vadd.f32 %v1582_v29, %v5032_v23 }
 0x31b   : > { %v1658_v30 = vpack.c.bf16 %v5106_v12, %v5104_v21 }
 0x31c   : > { %3969 = vtanh.f32 %v1583_v28 }
 0x31d   : > { %1781 = vmatmul.bf16.gmra.mxu0 %v1658_v30  ;;  %1824 = vmatmul.bf16.gmra.mxu1 %v1658_v30 }
 0x31e   : > { %v2045_v4 = vpop.f32.mrf.mxu2 }
 0x31f   : > { %v3761_v4 = vld [vmem:[#allocation14 + $0x38] sm:$0xff] }
 0x320   : > { %2430 = vmatpush.bf16.msra.mxu2 %v3761_v4 }
 0x321   : > { %v1584_v42 = vpop.f32.mrf.mxu3 }
 0x322   : > { %v1585_v13 = vadd.f32 %v1584_v42, %v5032_v23  ;;  %v5117_v27 = vpop.eup %3969  ;;  %v3760_v42 = vld [vmem:[#allocation14 + $0x30] sm:$0xff] }
 0x324   : > { %3971 = vtanh.f32 %v1585_v13  ;;  %2431 = vmatpush.bf16.msra.mxu2 %v3760_v42  ;;  %v3758_v13 = vld [vmem:[#allocation14 + $0x20] sm:$0xff] }
 0x326   : > { %2085 = vmatmul.bf16.gmra.mxu3 %v5114_v19 }
 0x328   : > { %2432 = vmatpush.bf16.msra.mxu2 %v3759_v44 }
 0x329   : > { %v1587_v43 = vpop.f32.mrf.mxu3 }
 0x32a   : > { %v5119_v47 = vpop.eup %3971  ;;  %v1588_v6 = vadd.f32 %v1587_v43, %v5032_v23  ;;  %v3755_v43 = vld [vmem:[#allocation14 + $0x8] sm:$0xff] }
 0x32b   : > { %v1659_v62 = vpack.c.bf16 %v5119_v47, %v5117_v27 }
 0x32c   : > { %3973 = vtanh.f32 %v1588_v6  ;;  %2433 = vmatpush.bf16.msra.mxu2 %v3758_v13 }
 0x32d   : > { %1786 = vmatmul.bf16.gmra.mxu0 %v1659_v62  ;;  %1829 = vmatmul.bf16.gmra.mxu1 %v1659_v62 }
 0x330   : > { %2434 = vmatpush.bf16.msra.mxu2 %v3757_v49 }
 0x331   : > { %v1589_v8 = vpop.f32.mrf.mxu3 }
 0x332   : > { %v1590_v51 = vadd.f32 %v1589_v8, %v5032_v23  ;;  %v5125_v26 = vpop.eup %3973 }
 0x334   : > { %3975 = vtanh.f32 %v1590_v51  ;;  %2435 = vmatpush.bf16.msra.mxu2 %v3756_v60  ;;  %v5141_v51 = vld [vmem:[#allocation19 + $0x4] ss:$8 sm:$0x3] }
 0x338   : > { %2436 = vmatpush.bf16.msra.mxu2 %v3755_v43 }
 0x339   : > { %v1592_v36 = vpop.f32.mrf.mxu3 }
 0x33a   : > { %v5127_v29 = vpop.eup %3975  ;;  %v1593_v28 = vadd.f32 %v1592_v36, %v5032_v23  ;;  %v3768_v36 = vld [vmem:[#allocation14 + $0x70] sm:$0xff] }
 0x33b   : > { %v1660_v30 = vpack.c.bf16 %v5127_v29, %v5125_v26  ;;  %2474 = vmatpush.bf16.msra.mxu3 %v3768_v36 }
 0x33c   : > { %3977 = vtanh.f32 %v1593_v28  ;;  %2437 = vmatpush.bf16.msra.mxu2 %v3754_v18  ;;  %v3767_v18 = vld [vmem:[#allocation14 + $0x68] sm:$0xff] }
 0x33d   : > { %1791 = vmatmul.bf16.gmra.mxu0 %v1660_v30  ;;  %1834 = vmatmul.bf16.gmra.mxu1 %v1660_v30 }
 0x33f   : > { %2475 = vmatpush.bf16.msra.mxu3 %v3767_v18  ;;  %v3765_v18 = vld [vmem:[#allocation14 + $0x58] sm:$0xff] }
 0x341   : > { %v1594_v41 = vpop.f32.mrf.mxu3 }
 0x342   : > { %v5132_v46 = vpop.eup %3977 }
 0x343   : > { %v1661_v53 = vpack.c.bf16 %v5132_v46, %v5132_v46 }
 0x349   : > { %v2056_v17 = vpop.f32.mrf.mxu3 }
 0x34d   : > { %1796 = vmatmul.bf16.gmra.mxu0 %v1661_v53  ;;  %1839 = vmatmul.bf16.gmra.mxu1 %v1661_v53 }
 0x351   : > { %v2058_v23 = vpop.f32.mrf.mxu3 }
 0x359   : > { %v2061_v62 = vpop.f32.mrf.mxu3 }
 0x35d   : > { %2098 = vmatmul.bf16.vlgmr.msrb.gmra.mxu0 %v4922_v61  ;;  %2141 = vmatmul.bf16.vlgmr.msrb.gmra.mxu1 %v5016_v16  ;;  %v5146_v61 = vperm.slane %v5141_v51, 0 }
 0x361   : > { %v2063_v1 = vpop.f32.mrf.mxu3 }
 0x369   : > { %v2066_v6 = vpop.f32.mrf.mxu3 }
 0x36a   : > { %v1767_v8 = vpop.f32.mrf.mxu0  ;;  %v5138_v15 = vpop.f32.mrf.mxu1 }
 0x36b   : > { %v2014_v59 = vadd.f32 %v5006_v38, %v1767_v8 }
 0x36d   : > { %2103 = vmatmul.bf16.gmra.mxu0 %v4929_v33  ;;  %2146 = vmatmul.bf16.gmra.mxu1 %v5027_v10  ;;  %v2057_v24 = vadd.f32 %v2056_v17, %v2014_v59 }
 0x36f   : > { %v2183_v28 = vadd.f32 %v5146_v61, %v2057_v24 }
 0x371   : > { %v2068_v16 = vpop.f32.mrf.mxu3  ;;  %v2235_v42 = vmul.f32 0.22916667, %v2183_v28  ;;  %vm2209_vm9 = vcmp.ge.f32.partialorder %v2183_v28, 0.0 }
 0x372   : > { %v1769_v30 = vpop.f32.mrf.mxu0  ;;  %v5148_v4 = vpop.f32.mrf.mxu1 }
 0x373   : > { %v2016_v41 = vadd.f32 %v5010_v0, %v1769_v30  ;;  %v2261_v53 = vsel %vm2209_vm9, %v2183_v28, %v2235_v42  ;;  %v3766_v28 = vld [vmem:[#allocation14 + $0x60] sm:$0xff] }
 0x374   : > { %2476 = vmatpush.bf16.msra.mxu3 %v3766_v28 }
 0x375   : > { %v2059_v38 = vadd.f32 %v2058_v23, %v2016_v41 }
 0x377   : > { %v2185_v33 = vadd.f32 %v5146_v61, %v2059_v38 }
 0x378   : > { %2477 = vmatpush.bf16.msra.mxu3 %v3765_v18 }
 0x379   : > { %vm2211_vm10 = vcmp.ge.f32.partialorder %v2185_v33, 0.0  ;;  %v2237_v10 = vmul.f32 0.22916667, %v2185_v33  ;;  %v2071_v44 = vpop.f32.mrf.mxu3 }
 0x37a   : > { %v1772_v17 = vpop.f32.mrf.mxu0  ;;  %v5153_v13 = vpop.f32.mrf.mxu1 }
 0x37b   : > { %v2263_v49 = vsel %vm2211_vm10, %v2185_v33, %v2237_v10  ;;  %v2019_v60 = vadd.f32 %v5018_v22, %v1772_v17 }
 0x37c   : > { %v2287_v43 = vpack.c.bf16 %v2263_v49, %v2261_v53 }
 0x37d   : > { %2108 = vmatmul.bf16.gmra.mxu0 %v4944_v7  ;;  %2151 = vmatmul.bf16.gmra.mxu1 %v5042_v55  ;;  %v2062_v0 = vadd.f32 %v2061_v62, %v2019_v60 }
 0x37e   : > { %2438 = vmatmul.bf16.vlgmr.msra.gmra.mxu2 %v2287_v43 }
 0x37f   : > { %v2187_v59 = vadd.f32 %v5146_v61, %v2062_v0 }
 0x381   : > { %v2073_v23 = vpop.f32.mrf.mxu3  ;;  %v2239_v30 = vmul.f32 0.22916667, %v2187_v59  ;;  %vm2213_vm11 = vcmp.ge.f32.partialorder %v2187_v59, 0.0 }
 0x382   : > { %v1774_v3 = vpop.f32.mrf.mxu0  ;;  %v5158_v8 = vpop.f32.mrf.mxu1 }
 0x383   : > { %v2021_v24 = vadd.f32 %v5021_v25, %v1774_v3  ;;  %v2265_v42 = vsel %vm2213_vm11, %v2187_v59, %v2239_v30 }
 0x385   : > { %v2064_v36 = vadd.f32 %v2063_v1, %v2021_v24 }
 0x387   : > { %v2189_v22 = vadd.f32 %v5146_v61, %v2064_v36 }
 0x389   : > { %v2076_v7 = vpop.f32.mrf.mxu3  ;;  %vm2215_vm1 = vcmp.ge.f32.partialorder %v2189_v22, 0.0  ;;  %v2241_v55 = vmul.f32 0.22916667, %v2189_v22 }
 0x38a   : > { %v1777_v62 = vpop.f32.mrf.mxu0  ;;  %v5163_v41 = vpop.f32.mrf.mxu1 }
 0x38b   : > { %v2024_v38 = vadd.f32 %v5029_v34, %v1777_v62  ;;  %v2267_v33 = vsel %vm2215_vm1, %v2189_v22, %v2241_v55 }
 0x38c   : > { %v2289_v10 = vpack.c.bf16 %v2267_v33, %v2265_v42  ;;  %v3764_v33 = vld [vmem:[#allocation14 + $0x50] sm:$0xff] }
 0x38d   : > { %2113 = vmatmul.bf16.gmra.mxu0 %v4957_v11  ;;  %2156 = vmatmul.bf16.gmra.mxu1 %v5061_v56  ;;  %v2067_v25 = vadd.f32 %v2066_v6, %v2024_v38 }
 0x38e   : > { %2443 = vmatmul.bf16.gmra.mxu2 %v2289_v10  ;;  %2478 = vmatpush.bf16.msra.mxu3 %v3764_v33 }
 0x38f   : > { %v2191_v49 = vadd.f32 %v5146_v61, %v2067_v25 }
 0x391   : > { %v2078_v1 = vpop.f32.mrf.mxu3  ;;  %v2243_v0 = vmul.f32 0.22916667, %v2191_v49  ;;  %vm2217_vm12 = vcmp.ge.f32.partialorder %v2191_v49, 0.0 }
 0x392   : > { %v1779_v17 = vpop.f32.mrf.mxu0  ;;  %v5168_v53 = vpop.f32.mrf.mxu1 }
 0x393   : > { %v2026_v60 = vadd.f32 %v5034_v9, %v1779_v17  ;;  %v2269_v24 = vsel %vm2217_vm12, %v2191_v49, %v2243_v0 }
 0x395   : > { %v2069_v43 = vadd.f32 %v2068_v16, %v2026_v60 }
 0x397   : > { %v2193_v34 = vadd.f32 %v5146_v61, %v2069_v43 }
 0x399   : > { %v2081_v3 = vpop.f32.mrf.mxu3  ;;  %vm2219_vm13 = vcmp.ge.f32.partialorder %v2193_v34, 0.0  ;;  %v2245_v11 = vmul.f32 0.22916667, %v2193_v34 }
 0x39a   : > { %v1782_v56 = vpop.f32.mrf.mxu0  ;;  %v5173_v6 = vpop.f32.mrf.mxu1 }
 0x39b   : > { %v2029_v59 = vadd.f32 %v5044_v57, %v1782_v56  ;;  %v2271_v36 = vsel %vm2219_vm13, %v2193_v34, %v2245_v11  ;;  %v3763_v34 = vld [vmem:[#allocation14 + $0x48] sm:$0xff] }
 0x39c   : > { %v2291_v30 = vpack.c.bf16 %v2271_v36, %v2269_v24  ;;  %2479 = vmatpush.bf16.msra.mxu3 %v3763_v34 }
 0x39d   : > { %2118 = vmatmul.bf16.gmra.mxu0 %v4970_v5  ;;  %2161 = vmatmul.bf16.gmra.mxu1 %v5080_v50  ;;  %v2072_v9 = vadd.f32 %v2071_v44, %v2029_v59 }
 0x39e   : > { %2448 = vmatmul.bf16.gmra.mxu2 %v2291_v30 }
 0x39f   : > { %v2195_v55 = vadd.f32 %v5146_v61, %v2072_v9 }
 0x3a1   : > { %v2083_v16 = vpop.f32.mrf.mxu3  ;;  %v2247_v42 = vmul.f32 0.22916667, %v2195_v55  ;;  %vm2221_vm0 = vcmp.ge.f32.partialorder %v2195_v55, 0.0 }
 0x3a2   : > { %v1784_v22 = vpop.f32.mrf.mxu0  ;;  %v5178_v28 = vpop.f32.mrf.mxu1 }
 0x3a3   : > { %v2031_v62 = vadd.f32 %v5053_v40, %v1784_v22  ;;  %v2273_v17 = vsel %vm2221_vm0, %v2195_v55, %v2247_v42 }
 0x3a5   : > { %v2074_v38 = vadd.f32 %v2073_v23, %v2031_v62 }
 0x3a7   : > { %v2197_v57 = vadd.f32 %v5146_v61, %v2074_v38  ;;  %v3762_v38 = vld [vmem:[#allocation14 + $0x40] sm:$0xff] }
 0x3a8   : > { %2480 = vmatpush.bf16.msra.mxu3 %v3762_v38  ;;  %v3777_v38 = vld [vmem:[#allocation16 + $0x38] sm:$0xff] }
 0x3a9   : > { %v2086_v10 = vpop.f32.mrf.mxu3  ;;  %vm2223_vm14 = vcmp.ge.f32.partialorder %v2197_v57, 0.0  ;;  %v2249_v5 = vmul.f32 0.22916667, %v2197_v57  ;;  %2627 = vmatpush.bf16.msra.mxu0 %v3777_v38 }
 0x3aa   : > { %v1787_v50 = vpop.f32.mrf.mxu0  ;;  %v5183_v44 = vpop.f32.mrf.mxu1 }
 0x3ab   : > { %v2034_v25 = vadd.f32 %v5063_v2, %v1787_v50  ;;  %v2275_v49 = vsel %vm2223_vm14, %v2197_v57, %v2249_v5 }
 0x3ac   : > { %v2293_v60 = vpack.c.bf16 %v2275_v49, %v2273_v17 }
 0x3ad   : > { %2123 = vmatmul.bf16.gmra.mxu0 %v4983_v37  ;;  %2166 = vmatmul.bf16.gmra.mxu1 %v5099_v48  ;;  %v2077_v40 = vadd.f32 %v2076_v7, %v2034_v25 }
 0x3ae   : > { %2453 = vmatmul.bf16.gmra.mxu2 %v2293_v60 }
 0x3af   : > { %v2199_v18 = vadd.f32 %v5146_v61, %v2077_v40 }
 0x3b1   : > { %v2088_v23 = vpop.f32.mrf.mxu3  ;;  %v2251_v56 = vmul.f32 0.22916667, %v2199_v18  ;;  %vm2225_vm15 = vcmp.ge.f32.partialorder %v2199_v18, 0.0 }
 0x3b2   : > { %v1789_v43 = vpop.f32.mrf.mxu0  ;;  %v5188_v0 = vpop.f32.mrf.mxu1 }
 0x3b3   : > { %v2036_v11 = vadd.f32 %v5072_v35, %v1789_v43  ;;  %v2277_v36 = vsel %vm2225_vm15, %v2199_v18, %v2251_v56 }
 0x3b5   : > { %v2079_v2 = vadd.f32 %v2078_v1, %v2036_v11 }
 0x3b7   : > { %v2201_v59 = vadd.f32 %v5146_v61, %v2079_v2 }
 0x3b9   : > { %vm2227_vm2 = vcmp.ge.f32.partialorder %v2201_v59, 0.0  ;;  %v2253_v37 = vmul.f32 0.22916667, %v2201_v59 }
 0x3ba   : > { %v1792_v48 = vpop.f32.mrf.mxu0  ;;  %v5193_v24 = vpop.f32.mrf.mxu1 }
 0x3bb   : > { %v2039_v7 = vadd.f32 %v5082_v54, %v1792_v48  ;;  %v2279_v30 = vsel %vm2227_vm2, %v2201_v59, %v2253_v37 }
 0x3bc   : > { %v2295_v9 = vpack.c.bf16 %v2279_v30, %v2277_v36 }
 0x3bd   : > { %2128 = vmatmul.bf16.gmra.mxu0 %v4994_v14  ;;  %2171 = vmatmul.bf16.gmra.mxu1 %v5114_v19  ;;  %v2082_v35 = vadd.f32 %v2081_v3, %v2039_v7 }
 0x3be   : > { %2458 = vmatmul.bf16.gmra.mxu2 %v2295_v9 }
 0x3bf   : > { %v2203_v55 = vadd.f32 %v5146_v61, %v2082_v35 }
 0x3c1   : > { %v2255_v54 = vmul.f32 0.22916667, %v2203_v55  ;;  %vm2229_vm3 = vcmp.ge.f32.partialorder %v2203_v55, 0.0 }
 0x3c2   : > { %v1794_v1 = vpop.f32.mrf.mxu0  ;;  %v5198_v22 = vpop.f32.mrf.mxu1 }
 0x3c3   : > { %v2041_v62 = vadd.f32 %v5091_v58, %v1794_v1  ;;  %v2281_v5 = vsel %vm2229_vm3, %v2203_v55, %v2255_v54 }
 0x3c5   : > { %v2084_v42 = vadd.f32 %v2083_v16, %v2041_v62 }
 0x3c7   : > { %v2205_v57 = vadd.f32 %v5146_v61, %v2084_v42 }
 0x3c9   : > { %vm2231_vm4 = vcmp.ge.f32.partialorder %v2205_v57, 0.0  ;;  %v2257_v14 = vmul.f32 0.22916667, %v2205_v57 }
 0x3ca   : > { %v1797_v33 = vpop.f32.mrf.mxu0  ;;  %v5203_v19 = vpop.f32.mrf.mxu1 }
 0x3cb   : > { %v2044_v3 = vadd.f32 %v5101_v20, %v1797_v33  ;;  %v2283_v50 = vsel %vm2231_vm4, %v2205_v57, %v2257_v14  ;;  %v5209_v20 = vperm.slane %v5141_v51, 1 }
 0x3cc   : > { %v2297_v25 = vpack.c.bf16 %v2283_v50, %v2281_v5 }
 0x3cd   : > { %v2087_v17 = vadd.f32 %v2086_v10, %v2044_v3 }
 0x3ce   : > { %2463 = vmatmul.bf16.gmra.mxu2 %v2297_v25 }
 0x3cf   : > { %v2207_v58 = vadd.f32 %v5146_v61, %v2087_v17 }
 0x3d1   : > { %v2259_v60 = vmul.f32 0.22916667, %v2207_v58  ;;  %vm2233_vm5 = vcmp.ge.f32.partialorder %v2207_v58, 0.0 }
 0x3d2   : > { %v1799_v16 = vpop.f32.mrf.mxu0  ;;  %v1842_v49 = vpop.f32.mrf.mxu1 }
 0x3d3   : > { %v2285_v40 = vsel %vm2233_vm5, %v2207_v58, %v2259_v60 }
 0x3d4   : > { %v2299_v18 = vpack.c.bf16 %v2285_v40, %v2285_v40 }
 0x3da   : > { %v2099_v23 = vpop.f32.mrf.mxu0  ;;  %v2142_v43 = vpop.f32.mrf.mxu1 }
 0x3db   : > { %v2100_v34 = vadd.f32 %v2099_v23, %v5138_v15 }
 0x3dd   : > { %v2143_v11 = vadd.f32 %v2142_v43, %v2100_v34 }
 0x3de   : > { %2468 = vmatmul.bf16.gmra.mxu2 %v2299_v18 }
 0x3df   : > { %v2184_v56 = vadd.f32 %v5209_v20, %v2143_v11 }
 0x3e1   : > { %v2236_v37 = vmul.f32 0.22916667, %v2184_v56  ;;  %vm2210_vm6 = vcmp.ge.f32.partialorder %v2184_v56, 0.0 }
 0x3e2   : > { %v2101_v2 = vpop.f32.mrf.mxu0  ;;  %v2144_v10 = vpop.f32.mrf.mxu1 }
 0x3e3   : > { %v2102_v61 = vadd.f32 %v2101_v2, %v5148_v4  ;;  %v2262_v30 = vsel %vm2210_vm6, %v2184_v56, %v2236_v37 }
 0x3e5   : > { %v2145_v59 = vadd.f32 %v2144_v10, %v2102_v61 }
 0x3e7   : > { %v2186_v48 = vadd.f32 %v5209_v20, %v2145_v59 }
 0x3e9   : > { %vm2212_vm7 = vcmp.ge.f32.partialorder %v2186_v48, 0.0  ;;  %v2238_v7 = vmul.f32 0.22916667, %v2186_v48 }
 0x3ea   : > { %v2104_v15 = vpop.f32.mrf.mxu0  ;;  %v2147_v36 = vpop.f32.mrf.mxu1 }
 0x3eb   : > { %v2264_v9 = vsel %vm2212_vm7, %v2186_v48, %v2238_v7  ;;  %v2105_v51 = vadd.f32 %v2104_v15, %v5153_v13  ;;  %v3775_v7 = vld [vmem:[#allocation16 + $0x28] sm:$0xff] }
 0x3ec   : > { %v2288_v35 = vpack.c.bf16 %v2264_v9, %v2262_v30 }
 0x3ed   : > { %v2148_v1 = vadd.f32 %v2147_v36, %v2105_v51 }
 0x3ee   : > { %2481 = vmatmul.bf16.vlgmr.msra.gmra.mxu3 %v2288_v35 }
 0x3ef   : > { %v2188_v4 = vadd.f32 %v5209_v20, %v2148_v1 }
 0x3f1   : > { %v2240_v57 = vmul.f32 0.22916667, %v2188_v4  ;;  %vm2214_vm8 = vcmp.ge.f32.partialorder %v2188_v4, 0.0 }
 0x3f2   : > { %v2106_v55 = vpop.f32.mrf.mxu0  ;;  %v2149_v62 = vpop.f32.mrf.mxu1 }
 0x3f3   : > { %v2107_v42 = vadd.f32 %v2106_v55, %v5158_v8  ;;  %v2266_v50 = vsel %vm2214_vm8, %v2188_v4, %v2240_v57  ;;  %v3776_v8 = vld [vmem:[#allocation16 + $0x30] sm:$0xff] }
 0x3f4   : > { %2628 = vmatpush.bf16.msra.mxu0 %v3776_v8 }
 0x3f5   : > { %v2150_v54 = vadd.f32 %v2149_v62, %v2107_v42 }
 0x3f7   : > { %v2190_v14 = vadd.f32 %v5209_v20, %v2150_v54 }
 0x3f8   : > { %2629 = vmatpush.bf16.msra.mxu0 %v3775_v7 }
 0x3f9   : > { %v2242_v33 = vmul.f32 0.22916667, %v2190_v14  ;;  %vm2216_vm9 = vcmp.ge.f32.partialorder %v2190_v14, 0.0 }
 0x3fa   : > { %v2109_v3 = vpop.f32.mrf.mxu0  ;;  %v2152_v13 = vpop.f32.mrf.mxu1 }
 0x3fb   : > { %v2110_v5 = vadd.f32 %v2109_v3, %v5163_v41  ;;  %v2268_v25 = vsel %vm2216_vm9, %v2190_v14, %v2242_v33  ;;  %v3774_v33 = vld [vmem:[#allocation16 + $0x20] sm:$0xff] }
 0x3fc   : > { %v2290_v17 = vpack.c.bf16 %v2268_v25, %v2266_v50  ;;  %2630 = vmatpush.bf16.msra.mxu0 %v3774_v33 }
 0x3fd   : > { %v2153_v58 = vadd.f32 %v2152_v13, %v2110_v5 }
 0x3fe   : > { %2486 = vmatmul.bf16.gmra.mxu3 %v2290_v17 }
 0x3ff   : > { %v2192_v40 = vadd.f32 %v5209_v20, %v2153_v58 }
 0x401   : > { %v5219_v16 = vpop.f32.mrf.mxu2  ;;  %v2244_v34 = vmul.f32 0.22916667, %v2192_v40  ;;  %vm2218_vm10 = vcmp.ge.f32.partialorder %v2192_v40, 0.0 }
 0x402   : > { %v2111_v49 = vpop.f32.mrf.mxu0  ;;  %v2154_v60 = vpop.f32.mrf.mxu1 }
 0x403   : > { %v2112_v23 = vadd.f32 %v2111_v49, %v5168_v53  ;;  %v2270_v61 = vsel %vm2218_vm10, %v2192_v40, %v2244_v34  ;;  %v3773_v40 = vld [vmem:[#allocation16 + $0x18] sm:$0xff] }
 0x404   : > { %2631 = vmatpush.bf16.msra.mxu0 %v3773_v40 }
 0x405   : > { %v2155_v43 = vadd.f32 %v2154_v60, %v2112_v23 }
 0x407   : > { %v2194_v18 = vadd.f32 %v5209_v20, %v2155_v43 }
 0x409   : > { %vm2220_vm11 = vcmp.ge.f32.partialorder %v2194_v18, 0.0  ;;  %v2246_v41 = vmul.f32 0.22916667, %v2194_v18  ;;  %v5224_v11 = vpop.f32.mrf.mxu2 }
 0x40a   : > { %v2114_v2 = vpop.f32.mrf.mxu0  ;;  %v2157_v10 = vpop.f32.mrf.mxu1 }
 0x40b   : > { %v2115_v56 = vadd.f32 %v2114_v2, %v5173_v6  ;;  %v2272_v59 = vsel %vm2220_vm11, %v2194_v18, %v2246_v41 }
 0x40c   : > { %v2292_v37 = vpack.c.bf16 %v2272_v59, %v2270_v61 }
 0x40d   : > { %v2158_v48 = vadd.f32 %v2157_v10, %v2115_v56  ;;  %v3772_v56 = vld [vmem:[#allocation16 + $0x10] sm:$0xff] }
 0x40e   : > { %2491 = vmatmul.bf16.gmra.mxu3 %v2292_v37  ;;  %2632 = vmatpush.bf16.msra.mxu0 %v3772_v56 }
 0x40f   : > { %v2196_v30 = vadd.f32 %v5209_v20, %v2158_v48 }
 0x411   : > { %v5227_v53 = vpop.f32.mrf.mxu2  ;;  %v2248_v35 = vmul.f32 0.22916667, %v2196_v30  ;;  %vm2222_vm1 = vcmp.ge.f32.partialorder %v2196_v30, 0.0 }
 0x412   : > { %v2116_v15 = vpop.f32.mrf.mxu0  ;;  %v2159_v36 = vpop.f32.mrf.mxu1 }
 0x413   : > { %v2117_v9 = vadd.f32 %v2116_v15, %v5178_v28  ;;  %v2274_v42 = vsel %vm2222_vm1, %v2196_v30, %v2248_v35 }
 0x415   : > { %v2160_v51 = vadd.f32 %v2159_v36, %v2117_v9 }
 0x417   : > { %v2198_v1 = vadd.f32 %v5209_v20, %v2160_v51 }
 0x419   : > { %vm2224_vm12 = vcmp.ge.f32.partialorder %v2198_v1, 0.0  ;;  %v2250_v6 = vmul.f32 0.22916667, %v2198_v1  ;;  %v5232_v55 = vpop.f32.mrf.mxu2 }
 0x41a   : > { %v2119_v62 = vpop.f32.mrf.mxu0  ;;  %v2162_v38 = vpop.f32.mrf.mxu1 }
 0x41b   : > { %v2120_v4 = vadd.f32 %v2119_v62, %v5183_v44  ;;  %v2276_v54 = vsel %vm2224_vm12, %v2198_v1, %v2250_v6 }
 0x41c   : > { %v2294_v57 = vpack.c.bf16 %v2276_v54, %v2274_v42  ;;  %v3771_v42 = vld [vmem:[#allocation16 + $0x8] sm:$0xff] }
 0x41d   : > { %v2163_v14 = vadd.f32 %v2162_v38, %v2120_v4  ;;  %2633 = vmatpush.bf16.msra.mxu0 %v3771_v42 }
 0x41e   : > { %2496 = vmatmul.bf16.gmra.mxu3 %v2294_v57 }
 0x41f   : > { %v2200_v5 = vadd.f32 %v5209_v20, %v2163_v14 }
 0x421   : > { %v5235_v28 = vpop.f32.mrf.mxu2  ;;  %v2252_v17 = vmul.f32 0.22916667, %v2200_v5  ;;  %vm2226_vm13 = vcmp.ge.f32.partialorder %v2200_v5, 0.0 }
 0x422   : > { %v2121_v3 = vpop.f32.mrf.mxu0  ;;  %v2164_v13 = vpop.f32.mrf.mxu1 }
 0x423   : > { %v2122_v50 = vadd.f32 %v2121_v3, %v5188_v0  ;;  %v2278_v43 = vsel %vm2226_vm13, %v2200_v5, %v2252_v17  ;;  %v3770_v3 = vld [vmem:[#allocation16] sm:$0xff] }
 0x424   : > { %2634 = vmatpush.bf16.msra.mxu0 %v3770_v3 }
 0x425   : > { %v2165_v25 = vadd.f32 %v2164_v13, %v2122_v50  ;;  %v5262_v50 = vld [vmem:[#allocation19 + $0x5] ss:$0 sm:$0xff] }
 0x426   : > { %v2440_v17 = vadd.f32 %v5219_v16, %v5262_v50  ;;  %v2445_v16 = vadd.f32 %v5227_v53, %v5262_v50  ;;  %v2450_v53 = vadd.f32 %v5235_v28, %v5262_v50 }
 0x427   : > { %v2202_v58 = vadd.f32 %v5209_v20, %v2165_v25 }
 0x429   : > { %vm2228_vm0 = vcmp.ge.f32.partialorder %v2202_v58, 0.0  ;;  %v2254_v44 = vmul.f32 0.22916667, %v2202_v58  ;;  %v5240_v8 = vpop.f32.mrf.mxu2 }
 0x42a   : > { %v2124_v49 = vpop.f32.mrf.mxu0  ;;  %v2167_v60 = vpop.f32.mrf.mxu1 }
 0x42b   : > { %v2125_v23 = vadd.f32 %v2124_v49, %v5193_v24  ;;  %v2280_v34 = vsel %vm2228_vm0, %v2202_v58, %v2254_v44  ;;  %v2442_v44 = vadd.f32 %v5224_v11, %v5262_v50  ;;  %v2447_v11 = vadd.f32 %v5232_v55, %v5262_v50 }
 0x42c   : > { %v2296_v18 = vpack.c.bf16 %v2280_v34, %v2278_v43  ;;  %v3785_v43 = vld [vmem:[#allocation17 + $0x38] sm:$0xff]  ;;  %v2452_v55 = vadd.f32 %v5240_v8, %v5262_v50 }
 0x42d   : > { %v2168_v0 = vadd.f32 %v2167_v60, %v2125_v23  ;;  %2781 = vmatpush.bf16.msra.mxu1 %v3785_v43 }
 0x42e   : > { %2501 = vmatmul.bf16.gmra.mxu3 %v2296_v18 }
 0x42f   : > { %v2204_v61 = vadd.f32 %v5209_v20, %v2168_v0 }
 0x431   : > { %v5243_v41 = vpop.f32.mrf.mxu2  ;;  %v2256_v48 = vmul.f32 0.22916667, %v2204_v61  ;;  %vm2230_vm14 = vcmp.ge.f32.partialorder %v2204_v61, 0.0 }
 0x432   : > { %v2126_v2 = vpop.f32.mrf.mxu0  ;;  %v2169_v10 = vpop.f32.mrf.mxu1  ;;  %v2455_v28 = vadd.f32 %v5243_v41, %v5262_v50 }
 0x433   : > { %v2127_v59 = vadd.f32 %v2126_v2, %v5198_v22  ;;  %v2282_v51 = vsel %vm2230_vm14, %v2204_v61, %v2256_v48  ;;  %v3784_v48 = vld [vmem:[#allocation17 + $0x30] sm:$0xff] }
 0x434   : > { %2782 = vmatpush.bf16.msra.mxu1 %v3784_v48 }
 0x435   : > { %v2170_v37 = vadd.f32 %v2169_v10, %v2127_v59 }
 0x437   : > { %v2206_v24 = vadd.f32 %v5209_v20, %v2170_v37 }
 0x439   : > { %vm2232_vm15 = vcmp.ge.f32.partialorder %v2206_v24, 0.0  ;;  %v2258_v7 = vmul.f32 0.22916667, %v2206_v24  ;;  %v5248_v15 = vpop.f32.mrf.mxu2 }
 0x43a   : > { %v2129_v36 = vpop.f32.mrf.mxu0  ;;  %v2172_v30 = vpop.f32.mrf.mxu1  ;;  %v2457_v8 = vadd.f32 %v5248_v15, %v5262_v50 }
 0x43b   : > { %v2130_v9 = vadd.f32 %v2129_v36, %v5203_v19  ;;  %v2284_v35 = vsel %vm2232_vm15, %v2206_v24, %v2258_v7 }
 0x43c   : > { %v2298_v1 = vpack.c.bf16 %v2284_v35, %v2282_v51 }
 0x43d   : > { %v2173_v6 = vadd.f32 %v2172_v30, %v2130_v9 }
 0x43e   : > { %2506 = vmatmul.bf16.gmra.mxu3 %v2298_v1 }
 0x43f   : > { %v2208_v22 = vadd.f32 %v5209_v20, %v2173_v6 }
 0x441   : > { %v5252_v62 = vpop.f32.mrf.mxu2  ;;  %v2260_v54 = vmul.f32 0.22916667, %v2208_v22  ;;  %vm2234_vm2 = vcmp.ge.f32.partialorder %v2208_v22, 0.0 }
 0x442   : > { %v2131_v38 = vpop.f32.mrf.mxu0  ;;  %v2174_v4 = vpop.f32.mrf.mxu1  ;;  %v2460_v41 = vadd.f32 %v5252_v62, %v5262_v50  ;;  %v3779_v62 = vld [vmem:[#allocation17 + $0x8] sm:$0xff] }
 0x443   : > { %v2286_v14 = vsel %vm2234_vm2, %v2208_v22, %v2260_v54  ;;  %v3783_v22 = vld [vmem:[#allocation17 + $0x28] sm:$0xff] }
 0x444   : > { %v2300_v33 = vpack.c.bf16 %v2286_v14, %v2286_v14  ;;  %2783 = vmatpush.bf16.msra.mxu1 %v3783_v22  ;;  %v3782_v14 = vld [vmem:[#allocation17 + $0x20] sm:$0xff] }
 0x448   : > { %2784 = vmatpush.bf16.msra.mxu1 %v3782_v14 }
 0x449   : > { %v5254_v57 = vpop.f32.mrf.mxu2 }
 0x44a   : > { %v2462_v15 = vadd.f32 %v5254_v57, %v5262_v50 }
 0x44e   : > { %2511 = vmatmul.bf16.gmra.mxu3 %v2300_v33 }
 0x451   : > { %v5256_v19 = vpop.f32.mrf.mxu2 }
 0x459   : > { %v5258_v13 = vpop.f32.mrf.mxu2 }
 0x45a   : > { %v2467_v57 = vadd.f32 %v5258_v13, %v5262_v50 }
 0x461   : > { %v5260_v20 = vpop.f32.mrf.mxu2 }
 0x469   : > { %v2471_v5 = vpop.f32.mrf.mxu2 }
 0x471   : > { %v2482_v25 = vpop.f32.mrf.mxu3 }
 0x472   : > { %v2483_v58 = vadd.f32 %v2482_v25, %v2440_v17 }
 0x474   : > { %v2529_v60 = vmul.f32 0.22916667, %v2483_v58  ;;  %vm2516_vm3 = vcmp.ge.f32.partialorder %v2483_v58, 0.0 }
 0x476   : > { %v2542_v34 = vsel %vm2516_vm3, %v2483_v58, %v2529_v60 }
 0x479   : > { %v2484_v49 = vpop.f32.mrf.mxu3 }
 0x47a   : > { %v2485_v40 = vadd.f32 %v2484_v49, %v2442_v44 }
 0x47c   : > { %vm2517_vm4 = vcmp.ge.f32.partialorder %v2485_v40, 0.0  ;;  %v2530_v23 = vmul.f32 0.22916667, %v2485_v40 }
 0x47e   : > { %v2543_v18 = vsel %vm2517_vm4, %v2485_v40, %v2530_v23  ;;  %v3781_v40 = vld [vmem:[#allocation17 + $0x18] sm:$0xff] }
 0x47f   : > { %v2555_v0 = vpack.c.bf16 %v2543_v18, %v2542_v34  ;;  %2785 = vmatpush.bf16.msra.mxu1 %v3781_v40 }
 0x481   : > { %v2487_v2 = vpop.f32.mrf.mxu3  ;;  %2635 = vmatmul.bf16.vlgmr.msra.gmra.mxu0 %v2555_v0 }
 0x482   : > { %v2488_v10 = vadd.f32 %v2487_v2, %v2445_v16 }
 0x484   : > { %v2531_v61 = vmul.f32 0.22916667, %v2488_v10  ;;  %vm2518_vm5 = vcmp.ge.f32.partialorder %v2488_v10, 0.0 }
 0x486   : > { %v2544_v24 = vsel %vm2518_vm5, %v2488_v10, %v2531_v61  ;;  %v2465_v61 = vadd.f32 %v5256_v19, %v5262_v50 }
 0x489   : > { %v2489_v56 = vpop.f32.mrf.mxu3 }
 0x48a   : > { %v2490_v59 = vadd.f32 %v2489_v56, %v2447_v11  ;;  %v3780_v56 = vld [vmem:[#allocation17 + $0x10] sm:$0xff] }
 0x48b   : > { %2786 = vmatpush.bf16.msra.mxu1 %v3780_v56 }
 0x48c   : > { %vm2519_vm6 = vcmp.ge.f32.partialorder %v2490_v59, 0.0  ;;  %v2532_v37 = vmul.f32 0.22916667, %v2490_v59 }
 0x48e   : > { %v2545_v7 = vsel %vm2519_vm6, %v2490_v59, %v2532_v37 }
 0x48f   : > { %v2556_v36 = vpack.c.bf16 %v2545_v7, %v2544_v24  ;;  %2787 = vmatpush.bf16.msra.mxu1 %v3779_v62 }
 0x491   : > { %v2492_v30 = vpop.f32.mrf.mxu3  ;;  %2640 = vmatmul.bf16.gmra.mxu0 %v2556_v36 }
 0x492   : > { %v2493_v9 = vadd.f32 %v2492_v30, %v2450_v53 }
 0x494   : > { %v2533_v35 = vmul.f32 0.22916667, %v2493_v9  ;;  %vm2520_vm7 = vcmp.ge.f32.partialorder %v2493_v9, 0.0 }
 0x496   : > { %v2546_v38 = vsel %vm2520_vm7, %v2493_v9, %v2533_v35 }
 0x499   : > { %v2494_v51 = vpop.f32.mrf.mxu3 }
 0x49a   : > { %v2495_v1 = vadd.f32 %v2494_v51, %v2452_v55  ;;  %v2470_v55 = vadd.f32 %v5260_v20, %v5262_v50 }
 0x49c   : > { %vm2521_vm8 = vcmp.ge.f32.partialorder %v2495_v1, 0.0  ;;  %v2534_v6 = vmul.f32 0.22916667, %v2495_v1 }
 0x49e   : > { %v2547_v4 = vsel %vm2521_vm8, %v2495_v1, %v2534_v6  ;;  %v3778_v6 = vld [vmem:[#allocation17] sm:$0xff] }
 0x49f   : > { %v2557_v42 = vpack.c.bf16 %v2547_v4, %v2546_v38  ;;  %2788 = vmatpush.bf16.msra.mxu1 %v3778_v6  ;;  %v5290_v38 = vld [vmem:[#allocation19 + $0x6] ss:$0 sm:$0xff] }
 0x4a1   : > { %v2497_v54 = vpop.f32.mrf.mxu3  ;;  %2645 = vmatmul.bf16.gmra.mxu0 %v2557_v42 }
 0x4a2   : > { %v2498_v33 = vadd.f32 %v2497_v54, %v2455_v28 }
 0x4a4   : > { %v2535_v5 = vmul.f32 0.22916667, %v2498_v33  ;;  %vm2522_vm9 = vcmp.ge.f32.partialorder %v2498_v33, 0.0 }
 0x4a6   : > { %v2548_v58 = vsel %vm2522_vm9, %v2498_v33, %v2535_v5 }
 0x4a9   : > { %v2499_v3 = vpop.f32.mrf.mxu3 }
 0x4aa   : > { %v2500_v25 = vadd.f32 %v2499_v3, %v2457_v8 }
 0x4ac   : > { %vm2523_vm10 = vcmp.ge.f32.partialorder %v2500_v25, 0.0  ;;  %v2536_v17 = vmul.f32 0.22916667, %v2500_v25 }
 0x4ae   : > { %v2549_v44 = vsel %vm2523_vm10, %v2500_v25, %v2536_v17 }
 0x4af   : > { %v2558_v49 = vpack.c.bf16 %v2549_v44, %v2548_v58 }
 0x4b1   : > { %v2502_v60 = vpop.f32.mrf.mxu3  ;;  %2650 = vmatmul.bf16.gmra.mxu0 %v2558_v49 }
 0x4b2   : > { %v2503_v23 = vadd.f32 %v2502_v60, %v2460_v41 }
 0x4b4   : > { %v2537_v34 = vmul.f32 0.22916667, %v2503_v23  ;;  %vm2524_vm11 = vcmp.ge.f32.partialorder %v2503_v23, 0.0 }
 0x4b6   : > { %v2550_v2 = vsel %vm2524_vm11, %v2503_v23, %v2537_v34 }
 0x4b9   : > { %v2504_v43 = vpop.f32.mrf.mxu3 }
 0x4ba   : > { %v2505_v18 = vadd.f32 %v2504_v43, %v2462_v15 }
 0x4bc   : > { %vm2525_vm1 = vcmp.ge.f32.partialorder %v2505_v18, 0.0  ;;  %v2538_v0 = vmul.f32 0.22916667, %v2505_v18 }
 0x4be   : > { %v2551_v16 = vsel %vm2525_vm1, %v2505_v18, %v2538_v0 }
 0x4bf   : > { %v2559_v10 = vpack.c.bf16 %v2551_v16, %v2550_v2 }
 0x4c1   : > { %v2507_v11 = vpop.f32.mrf.mxu3  ;;  %2655 = vmatmul.bf16.gmra.mxu0 %v2559_v10 }
 0x4c2   : > { %v2508_v59 = vadd.f32 %v2507_v11, %v2465_v61 }
 0x4c4   : > { %v2539_v48 = vmul.f32 0.22916667, %v2508_v59  ;;  %vm2526_vm12 = vcmp.ge.f32.partialorder %v2508_v59, 0.0 }
 0x4c6   : > { %v2552_v36 = vsel %vm2526_vm12, %v2508_v59, %v2539_v48 }
 0x4c9   : > { %v2509_v37 = vpop.f32.mrf.mxu3 }
 0x4ca   : > { %v2510_v24 = vadd.f32 %v2509_v37, %v2467_v57 }
 0x4cc   : > { %vm2527_vm13 = vcmp.ge.f32.partialorder %v2510_v24, 0.0  ;;  %v2540_v7 = vmul.f32 0.22916667, %v2510_v24 }
 0x4ce   : > { %v2553_v30 = vsel %vm2527_vm13, %v2510_v24, %v2540_v7 }
 0x4cf   : > { %v2560_v53 = vpack.c.bf16 %v2553_v30, %v2552_v36 }
 0x4d1   : > { %v2512_v9 = vpop.f32.mrf.mxu3  ;;  %2660 = vmatmul.bf16.gmra.mxu0 %v2560_v53 }
 0x4d2   : > { %v2513_v19 = vadd.f32 %v2512_v9, %v2470_v55 }
 0x4d4   : > { %v2541_v51 = vmul.f32 0.22916667, %v2513_v19  ;;  %vm2528_vm0 = vcmp.ge.f32.partialorder %v2513_v19, 0.0 }
 0x4d6   : > { %v2554_v1 = vsel %vm2528_vm0, %v2513_v19, %v2541_v51 }
 0x4d7   : > { %v2561_v13 = vpack.c.bf16 %v2554_v1, %v2554_v1 }
 0x4d9   : > { %v2514_v35 = vpop.f32.mrf.mxu3 }
 0x4e1   : > { %2665 = vmatmul.bf16.gmra.mxu0 %v2561_v13 }
 0x4fe   : > { %v2636_v22 = vpop.f32.mrf.mxu0 }
 0x4ff   : > { %v2637_v4 = vadd.f32 %v2636_v22, %v5290_v38 }
 0x501   : > { %v2683_v54 = vmul.f32 0.22916667, %v2637_v4  ;;  %vm2670_vm14 = vcmp.ge.f32.partialorder %v2637_v4, 0.0 }
 0x503   : > { %v2696_v50 = vsel %vm2670_vm14, %v2637_v4, %v2683_v54 }
 0x506   : > { %v2638_v42 = vpop.f32.mrf.mxu0 }
 0x507   : > { %v2639_v28 = vadd.f32 %v2638_v42, %v5290_v38 }
 0x509   : > { %vm2671_vm15 = vcmp.ge.f32.partialorder %v2639_v28, 0.0  ;;  %v2684_v20 = vmul.f32 0.22916667, %v2639_v28 }
 0x50b   : > { %v2697_v14 = vsel %vm2671_vm15, %v2639_v28, %v2684_v20 }
 0x50c   : > { %v2709_v33 = vpack.c.bf16 %v2697_v14, %v2696_v50 }
 0x50e   : > { %v2641_v8 = vpop.f32.mrf.mxu0  ;;  %2789 = vmatmul.bf16.vlgmr.msra.gmra.mxu1 %v2709_v33 }
 0x50f   : > { %v2642_v3 = vadd.f32 %v2641_v8, %v5290_v38 }
 0x511   : > { %v2685_v25 = vmul.f32 0.22916667, %v2642_v3  ;;  %vm2672_vm2 = vcmp.ge.f32.partialorder %v2642_v3, 0.0 }
 0x513   : > { %v2698_v44 = vsel %vm2672_vm2, %v2642_v3, %v2685_v25  ;;  %v2732_v3 = vld [vmem:[#allocation19 + $0x7] ss:$0 sm:$0xff] }
 0x516   : > { %v2643_v5 = vpop.f32.mrf.mxu0 }
 0x517   : > { %v2644_v17 = vadd.f32 %v2643_v5, %v5290_v38 }
 0x519   : > { %vm2673_vm3 = vcmp.ge.f32.partialorder %v2644_v17, 0.0  ;;  %v2686_v58 = vmul.f32 0.22916667, %v2644_v17 }
 0x51b   : > { %v2699_v49 = vsel %vm2673_vm3, %v2644_v17, %v2686_v58 }
 0x51c   : > { %v2710_v60 = vpack.c.bf16 %v2699_v49, %v2698_v44 }
 0x51e   : > { %v2646_v41 = vpop.f32.mrf.mxu0  ;;  %2794 = vmatmul.bf16.gmra.mxu1 %v2710_v60 }
 0x51f   : > { %v2647_v40 = vadd.f32 %v2646_v41, %v5290_v38 }
 0x521   : > { %v2687_v15 = vmul.f32 0.22916667, %v2647_v40  ;;  %vm2674_vm4 = vcmp.ge.f32.partialorder %v2647_v40, 0.0 }
 0x523   : > { %v2700_v18 = vsel %vm2674_vm4, %v2647_v40, %v2687_v15 }
 0x526   : > { %v2648_v23 = vpop.f32.mrf.mxu0 }
 0x527   : > { %v2649_v43 = vadd.f32 %v2648_v23, %v5290_v38 }
 0x529   : > { %vm2675_vm5 = vcmp.ge.f32.partialorder %v2649_v43, 0.0  ;;  %v2688_v34 = vmul.f32 0.22916667, %v2649_v43 }
 0x52b   : > { %v2701_v0 = vsel %vm2675_vm5, %v2649_v43, %v2688_v34 }
 0x52c   : > { %v2711_v2 = vpack.c.bf16 %v2701_v0, %v2700_v18 }
 0x52e   : > { %v2651_v16 = vpop.f32.mrf.mxu0  ;;  %2799 = vmatmul.bf16.gmra.mxu1 %v2711_v2 }
 0x52f   : > { %v2652_v10 = vadd.f32 %v2651_v16, %v5290_v38 }
 0x531   : > { %v2689_v56 = vmul.f32 0.22916667, %v2652_v10  ;;  %vm2676_vm6 = vcmp.ge.f32.partialorder %v2652_v10, 0.0 }
 0x533   : > { %v2702_v59 = vsel %vm2676_vm6, %v2652_v10, %v2689_v56 }
 0x536   : > { %v2653_v11 = vpop.f32.mrf.mxu0 }
 0x537   : > { %v2654_v62 = vadd.f32 %v2653_v11, %v5290_v38 }
 0x539   : > { %vm2677_vm7 = vcmp.ge.f32.partialorder %v2654_v62, 0.0  ;;  %v2690_v61 = vmul.f32 0.22916667, %v2654_v62 }
 0x53b   : > { %v2703_v57 = vsel %vm2677_vm7, %v2654_v62, %v2690_v61 }
 0x53c   : > { %v2712_v37 = vpack.c.bf16 %v2703_v57, %v2702_v59 }
 0x53e   : > { %v2656_v48 = vpop.f32.mrf.mxu0  ;;  %2804 = vmatmul.bf16.gmra.mxu1 %v2712_v37 }
 0x53f   : > { %v2657_v24 = vadd.f32 %v2656_v48, %v5290_v38 }
 0x541   : > { %v2691_v36 = vmul.f32 0.22916667, %v2657_v24  ;;  %vm2678_vm8 = vcmp.ge.f32.partialorder %v2657_v24, 0.0 }
 0x543   : > { %v2704_v9 = vsel %vm2678_vm8, %v2657_v24, %v2691_v36 }
 0x546   : > { %v2658_v7 = vpop.f32.mrf.mxu0 }
 0x547   : > { %v2659_v30 = vadd.f32 %v2658_v7, %v5290_v38 }
 0x549   : > { %vm2679_vm9 = vcmp.ge.f32.partialorder %v2659_v30, 0.0  ;;  %v2692_v53 = vmul.f32 0.22916667, %v2659_v30 }
 0x54b   : > { %v2705_v55 = vsel %vm2679_vm9, %v2659_v30, %v2692_v53 }
 0x54c   : > { %v2713_v19 = vpack.c.bf16 %v2705_v55, %v2704_v9 }
 0x54e   : > { %v2661_v51 = vpop.f32.mrf.mxu0  ;;  %2809 = vmatmul.bf16.gmra.mxu1 %v2713_v19 }
 0x54f   : > { %v2662_v35 = vadd.f32 %v2661_v51, %v5290_v38 }
 0x551   : > { %v2693_v13 = vmul.f32 0.22916667, %v2662_v35  ;;  %vm2680_vm10 = vcmp.ge.f32.partialorder %v2662_v35, 0.0 }
 0x553   : > { %v2706_v4 = vsel %vm2680_vm10, %v2662_v35, %v2693_v13 }
 0x556   : > { %v2663_v1 = vpop.f32.mrf.mxu0 }
 0x557   : > { %v2664_v6 = vadd.f32 %v2663_v1, %v5290_v38 }
 0x559   : > { %vm2681_vm11 = vcmp.ge.f32.partialorder %v2664_v6, 0.0  ;;  %v2694_v22 = vmul.f32 0.22916667, %v2664_v6 }
 0x55b   : > { %v2707_v42 = vsel %vm2681_vm11, %v2664_v6, %v2694_v22 }
 0x55c   : > { %v2714_v54 = vpack.c.bf16 %v2707_v42, %v2706_v4 }
 0x55e   : > { %v2666_v28 = vpop.f32.mrf.mxu0  ;;  %2814 = vmatmul.bf16.gmra.mxu1 %v2714_v54 }
 0x55f   : > { %v2667_v20 = vadd.f32 %v2666_v28, %v5290_v38 }
 0x561   : > { %v2695_v50 = vmul.f32 0.22916667, %v2667_v20  ;;  %vm2682_vm1 = vcmp.ge.f32.partialorder %v2667_v20, 0.0 }
 0x563   : > { %v2708_v33 = vsel %vm2682_vm1, %v2667_v20, %v2695_v50 }
 0x564   : > { %v2715_v8 = vpack.c.bf16 %v2708_v33, %v2708_v33 }
 0x566   : > { %v2668_v14 = vpop.f32.mrf.mxu0 }
 0x56e   : > { %2819 = vmatmul.bf16.gmra.mxu1 %v2715_v8 }
 0x58b   : > { %v2790_v5 = vpop.f32.mrf.mxu1 }
 0x58c   : > { %v2791_v25 = vadd.f32 %v2790_v5, %v2732_v3 }
 0x58e   : > { %v2824_v17 = vadd.f32 %v5047_v45, %v2791_v25 }
 0x590   : > { %2837 = vst [vmem:[%s5308_s28] sm:$0xff] %v2824_v17 }
 0x593   : > { %v2792_v38 = vpop.f32.mrf.mxu1 }
 0x594   : > { %v2793_v58 = vadd.f32 %v2792_v38, %v2732_v3 }
 0x596   : > { %v2825_v44 = vadd.f32 %v5049_v31, %v2793_v58 }
 0x598   : > { %2838 = vst [vmem:[%s5308_s28 + $0x8] sm:$0xff] %v2825_v44 }
 0x59b   : > { %v2795_v49 = vpop.f32.mrf.mxu1 }
 0x59c   : > { %v2796_v60 = vadd.f32 %v2795_v49, %v2732_v3 }
 0x59e   : > { %v2826_v41 = vadd.f32 %v5066_v63, %v2796_v60 }
 0x5a0   : > { %2839 = vst [vmem:[%s5308_s28 + $0x10] sm:$0xff] %v2826_v41 }
 0x5a3   : > { %v2797_v45 = vpop.f32.mrf.mxu1 }
 0x5a4   : > { %v2798_v40 = vadd.f32 %v2797_v45, %v2732_v3 }
 0x5a6   : > { %v2827_v23 = vadd.f32 %v5068_v52, %v2798_v40 }
 0x5a8   : > { %2840 = vst [vmem:[%s5308_s28 + $0x18] sm:$0xff] %v2827_v23 }
 0x5ab   : > { %v2800_v15 = vpop.f32.mrf.mxu1 }
 0x5ac   : > { %v2801_v43 = vadd.f32 %v2800_v15, %v2732_v3 }
 0x5ae   : > { %v2828_v34 = vadd.f32 %v5085_v32, %v2801_v43 }
 0x5b0   : > { %2841 = vst [vmem:[%s5308_s28 + $0x20] sm:$0xff] %v2828_v34 }
 0x5b3   : > { %v2802_v31 = vpop.f32.mrf.mxu1 }
 0x5b4   : > { %v2803_v18 = vadd.f32 %v2802_v31, %v2732_v3 }
 0x5b6   : > { %v2829_v0 = vadd.f32 %v5087_v39, %v2803_v18 }
 0x5b8   : > { %2842 = vst [vmem:[%s5308_s28 + $0x28] sm:$0xff] %v2829_v0 }
 0x5bb   : > { %v2805_v63 = vpop.f32.mrf.mxu1 }
 0x5bc   : > { %v2806_v2 = vadd.f32 %v2805_v63, %v2732_v3 }
 0x5be   : > { %v2830_v16 = vadd.f32 %v5104_v21, %v2806_v2 }
 0x5c0   : > { %2843 = vst [vmem:[%s5308_s28 + $0x30] sm:$0xff] %v2830_v16 }
 0x5c3   : > { %v2807_v52 = vpop.f32.mrf.mxu1 }
 0x5c4   : > { %v2808_v10 = vadd.f32 %v2807_v52, %v2732_v3 }
 0x5c6   : > { %v2831_v11 = vadd.f32 %v5106_v12, %v2808_v10 }
 0x5c8   : > { %2844 = vst [vmem:[%s5308_s28 + $0x38] sm:$0xff] %v2831_v11 }
 0x5cb   : > { %v2810_v32 = vpop.f32.mrf.mxu1 }
 0x5cc   : > { %v2811_v56 = vadd.f32 %v2810_v32, %v2732_v3 }
 0x5ce   : > { %v2832_v62 = vadd.f32 %v5117_v27, %v2811_v56 }
 0x5d0   : > { %2845 = vst [vmem:[%s5308_s28 + $0x40] sm:$0xff] %v2832_v62 }
 0x5d3   : > { %v2812_v39 = vpop.f32.mrf.mxu1 }
 0x5d4   : > { %v2813_v61 = vadd.f32 %v2812_v39, %v2732_v3 }
 0x5d6   : > { %v2833_v59 = vadd.f32 %v5119_v47, %v2813_v61 }
 0x5d8   : > { %2846 = vst [vmem:[%s5308_s28 + $0x48] sm:$0xff] %v2833_v59 }
 0x5db   : > { %v2815_v21 = vpop.f32.mrf.mxu1 }
 0x5dc   : > { %v2816_v57 = vadd.f32 %v2815_v21, %v2732_v3 }
 0x5de   : > { %v2834_v37 = vadd.f32 %v5125_v26, %v2816_v57 }
 0x5e0   : > { %2847 = vst [vmem:[%s5308_s28 + $0x50] sm:$0xff] %v2834_v37 }
 0x5e3   : > { %v2817_v12 = vpop.f32.mrf.mxu1 }
 0x5e4   : > { %v2818_v48 = vadd.f32 %v2817_v12, %v2732_v3 }
 0x5e6   : > { %v2835_v24 = vadd.f32 %v5127_v29, %v2818_v48 }
 0x5e8   : > { %2848 = vst [vmem:[%s5308_s28 + $0x58] sm:$0xff] %v2835_v24 }
 0x5eb   : > { %v2820_v7 = vpop.f32.mrf.mxu1 }
 0x5ec   : > { %v2821_v27 = vadd.f32 %v2820_v7, %v2732_v3 }
 0x5ee   : > { %v2836_v36 = vadd.f32 %v5132_v46, %v2821_v27 }
 0x5ef   : > { %2857 = sbr.rel (!%p4552_p11) target bundleno = 1555 (0x613), region = 112 }
 0x5f0   : > { %2849 = vst [vmem:[%s5308_s28 + $0x60] sm:$0xff] %v2836_v36 }
 0x5f3   : > { %v2822_v30 = vpop.f32.mrf.mxu1 }
 0x5f4   : > { %s5472_s23 = smov (!%p2860_p3, %s2859_s23), 13 }
 0x5f5   : > { %s3642_s11 = sshll.u32 %s5472_s23, 3 }
 0x5f6   : > { %s2863_s13 = ssub.s32 104, %s3642_s11 }
 0x5f7   : > { %s2864_s30 = sshll.u32 %s2863_s13, 4 }
 0x5f8   : > { %2865 = vsyncadd %s2851_s12, %s2864_s30  ;;  %p5344_p7 = scmp.ne.s32.totalorder %s3642_s11, 0  ;;  %s3786_s22 = smul.u32 104, %s5457_s27 }
 0x5f9   : > { %s2870_s17 = sshll.u32 %s5308_s28, 4  ;;  %s3646_s16 = sshll.u32 %s5472_s23, 7  ;;  %s5354_s17 = int_to_ptr.vmem [resolvable:$true] %s2870_s17 }
 0x5fa   : > { %s5459_s26 = sld [smem:[#allocation37_spill]]  ;;  %s4319_s21 = sshra.s32 %s5354_s17, 4  ;;  %s4320_s21 = int_to_ptr.vmem [resolvable:$true] %s4319_s21 }
 0x5fb   : > { %s4321_s1 = sshrl.u32 %s3646_s16, 4  ;;  %s4437_s28 = smov [#allocation20]  }
 0x5fc   : > { %s4326_s14 = scalar_lea.vmem %s4320_s21, %s4321_s1  ;;  %s4330_s27 = scalar_lea.vmem %s4437_s28, 208 }
 0x5fd   : > { %p4327_p11 = scmp.ne.s32.totalorder %s4320_s21, %s4326_s14  ;;  %p4332_p12 = scmp.lt.s32.totalorder %s4330_s27, %s4326_s14 }
 0x5ff   : > { %p4328_p8 = pnand %p4327_p11, %p5344_p7 }
 0x600   : > { %s2868_s29 = scalar_lea.hbm %s5459_s26, %s3786_s22 }
 0x601   : > { %s2872_s24 = sshll.u32 %s2868_s29, 4  ;;  %p4329_p4 = pneg %p4328_p8  ;;  %s5356_s24 = int_to_ptr.hbm [resolvable:$true] %s2872_s24 }
 0x603   : > { %p4334_p13 = pnand %p4332_p12, %p4329_p4 }
 0x605   : > { %4337 = shalt.err (!%p4334_p13)
}
 0x606   : > { %s4338_s11 = sshra.s32 %s5356_s24, 4  ;;  %s4349_s15 = scalar_lea.hbm %s5459_s26, 200  ;;  %s4339_s11 = int_to_ptr.hbm [resolvable:$true] %s4338_s11 }
 0x607   : > { %s4345_s13 = scalar_lea.hbm %s4339_s11, %s4321_s1  ;;  %p4350_p6 = scmp.lt.s32.totalorder %s4339_s11, %s5459_s26 }
 0x608   : > { %p4346_p2 = scmp.ne.s32.totalorder %s4339_s11, %s4345_s13  ;;  %p4351_p10 = scmp.lt.s32.totalorder %s4349_s15, %s4345_s13 }
 0x60a   : > { %p4347_p5 = pnand %p4346_p2, %p5344_p7  ;;  %p4352_p1 = por %p4351_p10, %p4350_p6 }
 0x60c   : > { %p4348_p9 = pneg %p4347_p5 }
 0x60e   : > { %p4353_p0 = pnand %p4352_p1, %p4348_p9 }
 0x610   : > { %4356 = shalt.err (!%p4353_p0)
}
 0x611   : > { %s4438_s21 = smov 128   ;;  %s4439_s1 = smov 8  }
 0x612   : > { %2878 = dma.vmem_to_hbm [thread:$0]  (%p5344_p7), %s5354_s17, %s3646_s16, %s5356_s24, %s2851_s12, %s4438_s21, %s4438_s21, %s4439_s1  }
 0x613 PF: > { %s5460_s14 = sld [smem:[#allocation28_spill]]  ;;  %p5463_p11 = scmp.ge.s32.totalorder %s4416_s20, 2 }
 0x614   : > { %s5461_s28 = sld [smem:[#allocation33_spill]] }
 0x619   : > { %s2887_s27 = sand.u32 1, %s5460_s14  }
 0x61a   : > { %p5462_p3 = scmp.ne.s32.totalorder %s5461_s28, 0  ;;  %s2888_s11 = scalar_lea.sflag [#allocation4], %s2887_s27 }
 0x61c   : > { %p3877_p8 = pnand %p5463_p11, %p5462_p3 }
 0x61e   : > { %p3878_p4 = pneg %p3877_p8 }
 0x620   : > { %4399 = dma.done.wait (%p3878_p4), %s2888_s11, 1664  }
 0x621   : > { %4401 = vsyncadd (%p3878_p4), %s2888_s11, 4294965632  ;;  %s5464_s20 = sld [smem:[#allocation30_spill]]  ;;  %s5466_s17 = smov %s4408_s18 }
 0x622   : > { %s5465_s25 = sld [smem:[#allocation31_spill]]  ;;  %s5467_s18 = smov %s4412_s19 }
 0x627   : > { %p29_p12 = scmp.ge.s32.totalorder %s5464_s20, 4  }
 0x628   : > { %s5468_s19 = smov %s5465_s25 }
 0x629   :  { %31 = sbr.rel (!%p29_p12) target bundleno = 15 (0xf), region = 150 }
 0x62e   :  { %2894 = vsyncpa [#allocation3], 1 }
 0x62f   :  { %2896 = vsyncpa [#allocation3 + $0x1], 1 }
 0x630   :  { %2897 = vsyncpa [#allocation6], 1 }
 0x631   :  { %2898 = vsyncpa [#allocation9], 1 }
 0x632   :  { %2899 = vsyncpa [#allocation12], 1 }
 0x633   :  { %2900 = vsyncpa [#allocation15], 1 }
 0x634   :  { %2901 = vsyncpa [#allocation18], 1 }
 0x635   :  { %2902 = vsyncpa [#allocation4], 1 }
 0x636   :  { %2904 = vsyncpa [#allocation4 + $0x1], 1 }

</bundles_post_ra>
